<compile_context>
chip_gen: v5e
topology: v5e:2x2
jax: 0.10.0
libtpu: 0.0.40
codegen_flags: <defaults>
</compile_context>

<pallas_src>
import jax
import jax.numpy as jnp
from jax.experimental import pallas as pl
from jax.experimental.pallas import tpu as pltpu


# -----------------------------------------------------------------------------
# Fused kernel: 2-layer BiLSTM + MatchingAttention('general2') + linear + ReLU
#               + smax_fc + log_softmax
# -----------------------------------------------------------------------------
def lstm_meld_kernel(u_ref, mask_ref,
                     wi0, b0, wh0, wi1, b1, wh1,
                     wtr, btr, wlin, blin, wfc, bfc,
                     lp_ref, alpha_ref, em_ref):
    seq, batch, D_m = u_ref.shape
    De2 = em_ref.shape[-1]          # 2 * D_e
    De = De2 // 2
    G = 4 * De                      # gate width per direction (i,f,g,o)
    n_classes = lp_ref.shape[-1]
    f32 = jnp.float32

    # ---------------- one bidirectional LSTM layer ----------------
    def bilstm_layer(xw, wh):
        """xw: (seq, batch, 2G) = x @ [W_ih_f | W_ih_r] + (b_ih+b_hh) for both dirs.
           wh: (2*De, 2G) block-diagonal [W_hh_f, 0; 0, W_hh_r] (pre-transposed)."""
        hf = jnp.zeros((batch, De), f32)
        cf = jnp.zeros((batch, De), f32)
        hr = jnp.zeros((batch, De), f32)
        cr = jnp.zeros((batch, De), f32)
        outs_f = [None] * seq
        outs_r = [None] * seq

        def cell(gates, c_prev):
            # PyTorch LSTM gate order: i, f, g, o
            i = jax.nn.sigmoid(gates[:, 0:De])
            f = jax.nn.sigmoid(gates[:, De:2 * De])
            g = jnp.tanh(gates[:, 2 * De:3 * De])
            o = jax.nn.sigmoid(gates[:, 3 * De:4 * De])
            c = f * c_prev + i * g
            h = o * jnp.tanh(c)
            return h, c

        # static (fully unrolled) loop; fwd processes t=s, rev processes t=seq-1-s,
        # both hidden transforms share one MXU push via the block-diagonal weight.
        for s in range(seq):
            tr = seq - 1 - s
            hcat = jnp.concatenate([hf, hr], axis=1)                 # (batch, 2De)
            gh = jnp.dot(hcat, wh, preferred_element_type=f32)       # (batch, 2G)
            hf, cf = cell(xw[s, :, :G] + gh[:, :G], cf)
            hr, cr = cell(xw[tr, :, G:] + gh[:, G:], cr)
            outs_f[s] = hf
            outs_r[tr] = hr
        return jnp.concatenate([jnp.stack(outs_f, axis=0),
                                jnp.stack(outs_r, axis=0)], axis=-1)  # (seq,batch,2De)

    # ---------------- layer 0 ----------------
    u_flat = u_ref[...].reshape(seq * batch, D_m)
    xw0 = (jnp.dot(u_flat, wi0[...], preferred_element_type=f32)
           + b0[...]).reshape(seq, batch, 2 * G)
    h0 = bilstm_layer(xw0, wh0[...])
    # TODO(synk): nn.LSTM inter-layer dropout + self.dropout are training-only; identity here.

    # ---------------- layer 1 ----------------
    xw1 = (jnp.dot(h0.reshape(seq * batch, De2), wi1[...], preferred_element_type=f32)
           + b1[...]).reshape(seq, batch, 2 * G)
    emotions = bilstm_layer(xw1, wh1[...])                            # (seq, batch, 2De)
    em_ref[...] = emotions

    # ---------------- MatchingAttention('general2') head (all timesteps) --------
    mask = mask_ref[...]                                              # (batch, seq)
    xtr = (jnp.dot(emotions.reshape(seq * batch, De2), wtr[...],
                   preferred_element_type=f32)
           + btr[...]).reshape(seq, batch, De2)

    pools = []
    alphas = []
    for b in range(batch):                                            # batch is tiny & static
        em_b = emotions[:, b, :]                                      # (seq, 2De) (unmasked M)
        xt_b = xtr[:, b, :]                                           # (seq, 2De)
        m_row = mask[b:b + 1, :]                                      # (1, seq)
        # bmm(x_, M_*mask) * mask  ==  (x . M) * mask^2
        raw = jnp.sum(xt_b[:, None, :] * em_b[None, :, :], axis=-1)   # (t, s)
        a = jnp.tanh(raw * m_row * m_row)
        a_max = jnp.max(a, axis=1, keepdims=True)
        e = jnp.exp(a - a_max)
        sm = e * pl.reciprocal(jnp.sum(e, axis=1, keepdims=True), approx=True)
        am = sm * m_row
        den = jnp.sum(am, axis=1, keepdims=True)
        den = jnp.where(den > 0.0, den, 1.0)                          # 0/0 guard
        alpha_b = am * pl.reciprocal(den, approx=True)                # (t, s)
        pools.append(jnp.dot(alpha_b, em_b, preferred_element_type=f32))  # (t, 2De)
        alphas.append(alpha_b)

    alpha_ref[...] = jnp.stack(alphas, axis=1)                        # (seq, batch, seq)

    attn = jnp.stack(pools, axis=1).reshape(seq * batch, De2)
    hidden = jnp.maximum(
        jnp.dot(attn, wlin[...], preferred_element_type=f32) + blin[...], 0.0)
    logits = jnp.dot(hidden, wfc[...], preferred_element_type=f32) + bfc[...]
    lmax = jnp.max(logits, axis=-1, keepdims=True)
    lse = lmax + jnp.log(jnp.sum(jnp.exp(logits - lmax), axis=-1, keepdims=True))
    lp_ref[...] = (logits - lse).reshape(seq, batch, n_classes)


# -----------------------------------------------------------------------------
# Wrapper
# -----------------------------------------------------------------------------
def _fullspec(shape):
    nd = len(shape)
    return pl.BlockSpec(shape, lambda i, _n=nd: (0,) * _n)


def lstm_model_forward(U, qmask, umask, params, att2=True):
    """Mirrors LSTMModel.forward (eval mode). qmask is unused by the module."""
    if not att2:
        # TODO(synk): att2=False branch (plain linear head on emotions) not exercised.
        raise NotImplementedError("only the att2=True path is implemented")
    del qmask
    seq, batch, _ = U.shape
    De2 = params["wh1"].shape[0]              # 2 * D_e
    n_classes = params["w_fc"].shape[1]
    umask = umask.astype(jnp.float32)

    weights = [params["wi0"], params["b0"], params["wh0"],
               params["wi1"], params["b1"], params["wh1"],
               params["w_tr"], params["b_tr"], params["w_lin"], params["b_lin"],
               params["w_fc"], params["b_fc"]]

    in_specs = ([_fullspec(U.shape), _fullspec(umask.shape)]
                + [_fullspec(w.shape) for w in weights])
    out_shape = (jax.ShapeDtypeStruct((seq, batch, n_classes), jnp.float32),
                 jax.ShapeDtypeStruct((seq, batch, seq), jnp.float32),
                 jax.ShapeDtypeStruct((seq, batch, De2), jnp.float32))
    out_specs = [_fullspec(s.shape) for s in out_shape]

    log_prob, alpha, emotions = pl.pallas_call(
        lstm_meld_kernel,
        out_shape=out_shape,
        grid_spec=pltpu.PrefetchScalarGridSpec(
            num_scalar_prefetch=0, grid=(1,),
            in_specs=in_specs, out_specs=out_specs),
        compiler_params=pltpu.CompilerParams(
            dimension_semantics=("arbitrary",)),
    )(U, umask, *weights)

    alpha_f, alpha_b = [], []                  # empty, exactly like the PyTorch module
    return log_prob, alpha, alpha_f, alpha_b, emotions


# -----------------------------------------------------------------------------
# Deterministic synthetic parameters (PyTorch-shaped, then packed for the kernel)
# -----------------------------------------------------------------------------
def _blockdiag(a, b):
    r1, c1 = a.shape
    r2, c2 = b.shape
    top = jnp.concatenate([a, jnp.zeros((r1, c2), a.dtype)], axis=1)
    bot = jnp.concatenate([jnp.zeros((r2, c1), b.dtype), b], axis=1)
    return jnp.concatenate([top, bot], axis=0)


def make_params(key, D_m, D_e, D_h, n_classes):
    def nrm(k, shape):
        return jax.random.normal(k, shape, jnp.float32) * 0.1

    ks = iter(jax.random.split(key, 32))
    pt = {}
    # nn.LSTM(D_m, D_e, num_layers=2, bidirectional=True) parameters, PyTorch shapes.
    for layer, insz in ((0, D_m), (1, 2 * D_e)):
        for suf in ("", "_reverse"):
            pt[f"w_ih_l{layer}{suf}"] = nrm(next(ks), (4 * D_e, insz))
            pt[f"w_hh_l{layer}{suf}"] = nrm(next(ks), (4 * D_e, D_e))
            pt[f"b_ih_l{layer}{suf}"] = nrm(next(ks), (4 * D_e,))
            pt[f"b_hh_l{layer}{suf}"] = nrm(next(ks), (4 * D_e,))
    # MatchingAttention('general2').transform, linear, smax_fc (PyTorch shapes).
    pt["w_mat"] = nrm(next(ks), (2 * D_e, 2 * D_e))
    pt["b_mat"] = nrm(next(ks), (2 * D_e,))
    pt["w_lin"] = nrm(next(ks), (D_h, 2 * D_e))
    pt["b_lin"] = nrm(next(ks), (D_h,))
    pt["w_fc"] = nrm(next(ks), (n_classes, D_h))
    pt["b_fc"] = nrm(next(ks), (n_classes,))

    def pack_layer(layer):
        wi = jnp.concatenate([pt[f"w_ih_l{layer}"].T,
                              pt[f"w_ih_l{layer}_reverse"].T], axis=1)       # (in, 8De)
        b = jnp.concatenate([pt[f"b_ih_l{layer}"] + pt[f"b_hh_l{layer}"],
                             pt[f"b_ih_l{layer}_reverse"]
                             + pt[f"b_hh_l{layer}_reverse"]])[None, :]       # (1, 8De)
        wh = _blockdiag(pt[f"w_hh_l{layer}"].T,
                        pt[f"w_hh_l{layer}_reverse"].T)                      # (2De, 8De)
        return wi, b, wh

    wi0, b0, wh0 = pack_layer(0)
    wi1, b1, wh1 = pack_layer(1)
    return dict(
        wi0=wi0, b0=b0, wh0=wh0, wi1=wi1, b1=b1, wh1=wh1,
        w_tr=pt["w_mat"].T, b_tr=pt["b_mat"][None, :],
        w_lin=pt["w_lin"].T, b_lin=pt["b_lin"][None, :],
        w_fc=pt["w_fc"].T, b_fc=pt["b_fc"][None, :],
    )


# -----------------------------------------------------------------------------
# Example run
# -----------------------------------------------------------------------------
if __name__ == "__main__":
    seq, batch, party = 8, 2, 2
    D_m, D_e, D_h = 32, 32, 32
    n_classes = 7

    key = jax.random.PRNGKey(0)
    k_u, k_spk, k_p = jax.random.split(key, 3)

    U = jax.random.normal(k_u, (seq, batch, D_m), jnp.float32)
    speakers = jax.random.randint(k_spk, (seq, batch), 0, party)
    qmask = jax.nn.one_hot(speakers, party, dtype=jnp.float32)   # unused by LSTMModel
    umask = jnp.ones((batch, seq), jnp.float32)

    params = make_params(k_p, D_m, D_e, D_h, n_classes)

    log_prob, alpha, alpha_f, alpha_b, emotions = lstm_model_forward(
        U, qmask, umask, params, att2=True)
    jax.block_until_ready((log_prob, alpha, emotions))

    assert log_prob.shape == (seq, batch, n_classes)
    assert alpha.shape == (seq, batch, seq)
    assert emotions.shape == (seq, batch, 2 * D_e)
    assert bool(jnp.all(jnp.isfinite(log_prob)))
    assert bool(jnp.all(jnp.isfinite(alpha)))
    assert bool(jnp.all(jnp.isfinite(emotions)))
    print("KERNEL_OK")
</pallas_src>

<mosaic_0001>
module attributes {stable_mosaic.version = 11 : i64} {
  func.func @lstm_meld_kernel(%arg0: i32, %arg1: memref<8x2x32xf32, #tpu.memory_space<vmem>>, %arg2: memref<2x8xf32, #tpu.memory_space<vmem>>, %arg3: memref<32x256xf32, #tpu.memory_space<vmem>>, %arg4: memref<1x256xf32, #tpu.memory_space<vmem>>, %arg5: memref<64x256xf32, #tpu.memory_space<vmem>>, %arg6: memref<64x256xf32, #tpu.memory_space<vmem>>, %arg7: memref<1x256xf32, #tpu.memory_space<vmem>>, %arg8: memref<64x256xf32, #tpu.memory_space<vmem>>, %arg9: memref<64x64xf32, #tpu.memory_space<vmem>>, %arg10: memref<1x64xf32, #tpu.memory_space<vmem>>, %arg11: memref<64x32xf32, #tpu.memory_space<vmem>>, %arg12: memref<1x32xf32, #tpu.memory_space<vmem>>, %arg13: memref<32x7xf32, #tpu.memory_space<vmem>>, %arg14: memref<1x7xf32, #tpu.memory_space<vmem>>, %arg15: memref<8x2x7xf32, #tpu.memory_space<vmem>>, %arg16: memref<8x2x8xf32, #tpu.memory_space<vmem>>, %arg17: memref<8x2x64xf32, #tpu.memory_space<vmem>>) attributes {dimension_semantics = [#tpu.dimension_semantics<arbitrary>], iteration_bounds = array<i64: 1>, scalar_prefetch = 0 : i64, scratch_operands = 0 : i64, tpu.core_type = #tpu.core_type<tc>, window_params = [{pipeline_mode = #tpu.pipeline_mode<synchronous>, transform_indices = @transform_0, window_bounds = array<i64: 8, 2, 32>}, {pipeline_mode = #tpu.pipeline_mode<synchronous>, transform_indices = @transform_1, window_bounds = array<i64: 2, 8>}, {pipeline_mode = #tpu.pipeline_mode<synchronous>, transform_indices = @transform_2, window_bounds = array<i64: 32, 256>}, {pipeline_mode = #tpu.pipeline_mode<synchronous>, transform_indices = @transform_3, window_bounds = array<i64: 1, 256>}, {pipeline_mode = #tpu.pipeline_mode<synchronous>, transform_indices = @transform_4, window_bounds = array<i64: 64, 256>}, {pipeline_mode = #tpu.pipeline_mode<synchronous>, transform_indices = @transform_5, window_bounds = array<i64: 64, 256>}, {pipeline_mode = #tpu.pipeline_mode<synchronous>, transform_indices = @transform_6, window_bounds = array<i64: 1, 256>}, {pipeline_mode = #tpu.pipeline_mode<synchronous>, transform_indices = @transform_7, window_bounds = array<i64: 64, 256>}, {pipeline_mode = #tpu.pipeline_mode<synchronous>, transform_indices = @transform_8, window_bounds = array<i64: 64, 64>}, {pipeline_mode = #tpu.pipeline_mode<synchronous>, transform_indices = @transform_9, window_bounds = array<i64: 1, 64>}, {pipeline_mode = #tpu.pipeline_mode<synchronous>, transform_indices = @transform_10, window_bounds = array<i64: 64, 32>}, {pipeline_mode = #tpu.pipeline_mode<synchronous>, transform_indices = @transform_11, window_bounds = array<i64: 1, 32>}, {pipeline_mode = #tpu.pipeline_mode<synchronous>, transform_indices = @transform_12, window_bounds = array<i64: 32, 7>}, {pipeline_mode = #tpu.pipeline_mode<synchronous>, transform_indices = @transform_13, window_bounds = array<i64: 1, 7>}, {pipeline_mode = #tpu.pipeline_mode<synchronous>, transform_indices = @transform_14, window_bounds = array<i64: 8, 2, 7>}, {pipeline_mode = #tpu.pipeline_mode<synchronous>, transform_indices = @transform_15, window_bounds = array<i64: 8, 2, 8>}, {pipeline_mode = #tpu.pipeline_mode<synchronous>, transform_indices = @transform_16, window_bounds = array<i64: 8, 2, 64>}]} {
    %c0 = arith.constant 0 : index
    %c0_0 = arith.constant 0 : index
    %c0_1 = arith.constant 0 : index
    %0 = vector.load %arg1[%c0, %c0_0, %c0_1] : memref<8x2x32xf32, #tpu.memory_space<vmem>>, vector<8x2x32xf32>
    %1 = vector.shape_cast %0 : vector<8x2x32xf32> to vector<16x32xf32>
    %c0_2 = arith.constant 0 : index
    %c0_3 = arith.constant 0 : index
    %2 = vector.load %arg3[%c0_2, %c0_3] : memref<32x256xf32, #tpu.memory_space<vmem>>, vector<32x256xf32>
    %cst = arith.constant dense<0.000000e+00> : vector<16x256xf32>
    %3 = tpu.matmul %1, %2, %cst {dimension_numbers = #tpu.dot_dimension_numbers<[1], [0], [0], [1], [0, 0, 1, 1], [], []>} : vector<16x32xf32>, vector<32x256xf32>, vector<16x256xf32> -> vector<16x256xf32>
    %c0_4 = arith.constant 0 : index
    %c0_5 = arith.constant 0 : index
    %4 = vector.load %arg4[%c0_4, %c0_5] : memref<1x256xf32, #tpu.memory_space<vmem>>, vector<1x256xf32>
    %5 = vector.broadcast %4 : vector<1x256xf32> to vector<16x256xf32>
    %6 = arith.addf %3, %5 : vector<16x256xf32>
    %7 = vector.shape_cast %6 : vector<16x256xf32> to vector<8x2x256xf32>
    %c0_6 = arith.constant 0 : index
    %c0_7 = arith.constant 0 : index
    %8 = vector.load %arg5[%c0_6, %c0_7] : memref<64x256xf32, #tpu.memory_space<vmem>>, vector<64x256xf32>
    %cst_8 = arith.constant 0.000000e+00 : f32
    %9 = vector.broadcast %cst_8 : f32 to vector<2x32xf32>
    %cst_9 = arith.constant 0.000000e+00 : f32
    %10 = vector.broadcast %cst_9 : f32 to vector<2x32xf32>
    %cst_10 = arith.constant 0.000000e+00 : f32
    %11 = vector.broadcast %cst_10 : f32 to vector<2x32xf32>
    %cst_11 = arith.constant 0.000000e+00 : f32
    %12 = vector.broadcast %cst_11 : f32 to vector<2x32xf32>
    %13 = tpu.concatenate %9, %11 in 1 : vector<2x32xf32>, vector<2x32xf32> -> vector<2x64xf32>
    %cst_12 = arith.constant dense<0.000000e+00> : vector<2x256xf32>
    %14 = tpu.matmul %13, %8, %cst_12 {dimension_numbers = #tpu.dot_dimension_numbers<[1], [0], [0], [1], [0, 0, 1, 1], [], []>} : vector<2x64xf32>, vector<64x256xf32>, vector<2x256xf32> -> vector<2x256xf32>
    %15 = vector.extract_strided_slice %7 {offsets = [0, 0, 0], sizes = [1, 2, 128], strides = [1, 1, 1]} : vector<8x2x256xf32> to vector<1x2x128xf32>
    %16 = vector.shape_cast %15 : vector<1x2x128xf32> to vector<2x128xf32>
    %17 = vector.extract_strided_slice %14 {offsets = [0, 0], sizes = [2, 128], strides = [1, 1]} : vector<2x256xf32> to vector<2x128xf32>
    %18 = arith.addf %16, %17 : vector<2x128xf32>
    %19 = vector.extract_strided_slice %18 {offsets = [0, 0], sizes = [2, 32], strides = [1, 1]} : vector<2x128xf32> to vector<2x32xf32>
    %20 = arith.negf %19 : vector<2x32xf32>
    %21 = math.exp %20 : vector<2x32xf32>
    %cst_13 = arith.constant 1.000000e+00 : f32
    %22 = vector.broadcast %cst_13 : f32 to vector<2x32xf32>
    %23 = arith.addf %22, %21 : vector<2x32xf32>
    %24 = arith.divf %22, %23 : vector<2x32xf32>
    %25 = vector.extract_strided_slice %18 {offsets = [0, 32], sizes = [2, 32], strides = [1, 1]} : vector<2x128xf32> to vector<2x32xf32>
    %26 = arith.negf %25 : vector<2x32xf32>
    %27 = math.exp %26 : vector<2x32xf32>
    %cst_14 = arith.constant 1.000000e+00 : f32
    %28 = vector.broadcast %cst_14 : f32 to vector<2x32xf32>
    %29 = arith.addf %28, %27 : vector<2x32xf32>
    %30 = arith.divf %28, %29 : vector<2x32xf32>
    %31 = vector.extract_strided_slice %18 {offsets = [0, 64], sizes = [2, 32], strides = [1, 1]} : vector<2x128xf32> to vector<2x32xf32>
    %32 = math.tanh %31 : vector<2x32xf32>
    %33 = vector.extract_strided_slice %18 {offsets = [0, 96], sizes = [2, 32], strides = [1, 1]} : vector<2x128xf32> to vector<2x32xf32>
    %34 = arith.negf %33 : vector<2x32xf32>
    %35 = math.exp %34 : vector<2x32xf32>
    %cst_15 = arith.constant 1.000000e+00 : f32
    %36 = vector.broadcast %cst_15 : f32 to vector<2x32xf32>
    %37 = arith.addf %36, %35 : vector<2x32xf32>
    %38 = arith.divf %36, %37 : vector<2x32xf32>
    %39 = arith.mulf %30, %10 : vector<2x32xf32>
    %40 = arith.mulf %24, %32 : vector<2x32xf32>
    %41 = arith.addf %39, %40 : vector<2x32xf32>
    %42 = math.tanh %41 : vector<2x32xf32>
    %43 = arith.mulf %38, %42 : vector<2x32xf32>
    %44 = vector.extract_strided_slice %7 {offsets = [7, 0, 128], sizes = [1, 2, 128], strides = [1, 1, 1]} : vector<8x2x256xf32> to vector<1x2x128xf32>
    %45 = vector.shape_cast %44 : vector<1x2x128xf32> to vector<2x128xf32>
    %46 = vector.extract_strided_slice %14 {offsets = [0, 128], sizes = [2, 128], strides = [1, 1]} : vector<2x256xf32> to vector<2x128xf32>
    %47 = arith.addf %45, %46 : vector<2x128xf32>
    %48 = vector.extract_strided_slice %47 {offsets = [0, 0], sizes = [2, 32], strides = [1, 1]} : vector<2x128xf32> to vector<2x32xf32>
    %49 = arith.negf %48 : vector<2x32xf32>
    %50 = math.exp %49 : vector<2x32xf32>
    %cst_16 = arith.constant 1.000000e+00 : f32
    %51 = vector.broadcast %cst_16 : f32 to vector<2x32xf32>
    %52 = arith.addf %51, %50 : vector<2x32xf32>
    %53 = arith.divf %51, %52 : vector<2x32xf32>
    %54 = vector.extract_strided_slice %47 {offsets = [0, 32], sizes = [2, 32], strides = [1, 1]} : vector<2x128xf32> to vector<2x32xf32>
    %55 = arith.negf %54 : vector<2x32xf32>
    %56 = math.exp %55 : vector<2x32xf32>
    %cst_17 = arith.constant 1.000000e+00 : f32
    %57 = vector.broadcast %cst_17 : f32 to vector<2x32xf32>
    %58 = arith.addf %57, %56 : vector<2x32xf32>
    %59 = arith.divf %57, %58 : vector<2x32xf32>
    %60 = vector.extract_strided_slice %47 {offsets = [0, 64], sizes = [2, 32], strides = [1, 1]} : vector<2x128xf32> to vector<2x32xf32>
    %61 = math.tanh %60 : vector<2x32xf32>
    %62 = vector.extract_strided_slice %47 {offsets = [0, 96], sizes = [2, 32], strides = [1, 1]} : vector<2x128xf32> to vector<2x32xf32>
    %63 = arith.negf %62 : vector<2x32xf32>
    %64 = math.exp %63 : vector<2x32xf32>
    %cst_18 = arith.constant 1.000000e+00 : f32
    %65 = vector.broadcast %cst_18 : f32 to vector<2x32xf32>
    %66 = arith.addf %65, %64 : vector<2x32xf32>
    %67 = arith.divf %65, %66 : vector<2x32xf32>
    %68 = arith.mulf %59, %12 : vector<2x32xf32>
    %69 = arith.mulf %53, %61 : vector<2x32xf32>
    %70 = arith.addf %68, %69 : vector<2x32xf32>
    %71 = math.tanh %70 : vector<2x32xf32>
    %72 = arith.mulf %67, %71 : vector<2x32xf32>
    %73 = tpu.concatenate %43, %72 in 1 : vector<2x32xf32>, vector<2x32xf32> -> vector<2x64xf32>
    %cst_19 = arith.constant dense<0.000000e+00> : vector<2x256xf32>
    %74 = tpu.matmul %73, %8, %cst_19 {dimension_numbers = #tpu.dot_dimension_numbers<[1], [0], [0], [1], [0, 0, 1, 1], [], []>} : vector<2x64xf32>, vector<64x256xf32>, vector<2x256xf32> -> vector<2x256xf32>
    %75 = vector.extract_strided_slice %7 {offsets = [1, 0, 0], sizes = [1, 2, 128], strides = [1, 1, 1]} : vector<8x2x256xf32> to vector<1x2x128xf32>
    %76 = vector.shape_cast %75 : vector<1x2x128xf32> to vector<2x128xf32>
    %77 = vector.extract_strided_slice %74 {offsets = [0, 0], sizes = [2, 128], strides = [1, 1]} : vector<2x256xf32> to vector<2x128xf32>
    %78 = arith.addf %76, %77 : vector<2x128xf32>
    %79 = vector.extract_strided_slice %78 {offsets = [0, 0], sizes = [2, 32], strides = [1, 1]} : vector<2x128xf32> to vector<2x32xf32>
    %80 = arith.negf %79 : vector<2x32xf32>
    %81 = math.exp %80 : vector<2x32xf32>
    %cst_20 = arith.constant 1.000000e+00 : f32
    %82 = vector.broadcast %cst_20 : f32 to vector<2x32xf32>
    %83 = arith.addf %82, %81 : vector<2x32xf32>
    %84 = arith.divf %82, %83 : vector<2x32xf32>
    %85 = vector.extract_strided_slice %78 {offsets = [0, 32], sizes = [2, 32], strides = [1, 1]} : vector<2x128xf32> to vector<2x32xf32>
    %86 = arith.negf %85 : vector<2x32xf32>
    %87 = math.exp %86 : vector<2x32xf32>
    %cst_21 = arith.constant 1.000000e+00 : f32
    %88 = vector.broadcast %cst_21 : f32 to vector<2x32xf32>
    %89 = arith.addf %88, %87 : vector<2x32xf32>
    %90 = arith.divf %88, %89 : vector<2x32xf32>
    %91 = vector.extract_strided_slice %78 {offsets = [0, 64], sizes = [2, 32], strides = [1, 1]} : vector<2x128xf32> to vector<2x32xf32>
    %92 = math.tanh %91 : vector<2x32xf32>
    %93 = vector.extract_strided_slice %78 {offsets = [0, 96], sizes = [2, 32], strides = [1, 1]} : vector<2x128xf32> to vector<2x32xf32>
    %94 = arith.negf %93 : vector<2x32xf32>
    %95 = math.exp %94 : vector<2x32xf32>
    %cst_22 = arith.constant 1.000000e+00 : f32
    %96 = vector.broadcast %cst_22 : f32 to vector<2x32xf32>
    %97 = arith.addf %96, %95 : vector<2x32xf32>
    %98 = arith.divf %96, %97 : vector<2x32xf32>
    %99 = arith.mulf %90, %41 : vector<2x32xf32>
    %100 = arith.mulf %84, %92 : vector<2x32xf32>
    %101 = arith.addf %99, %100 : vector<2x32xf32>
    %102 = math.tanh %101 : vector<2x32xf32>
    %103 = arith.mulf %98, %102 : vector<2x32xf32>
    %104 = vector.extract_strided_slice %7 {offsets = [6, 0, 128], sizes = [1, 2, 128], strides = [1, 1, 1]} : vector<8x2x256xf32> to vector<1x2x128xf32>
    %105 = vector.shape_cast %104 : vector<1x2x128xf32> to vector<2x128xf32>
    %106 = vector.extract_strided_slice %74 {offsets = [0, 128], sizes = [2, 128], strides = [1, 1]} : vector<2x256xf32> to vector<2x128xf32>
    %107 = arith.addf %105, %106 : vector<2x128xf32>
    %108 = vector.extract_strided_slice %107 {offsets = [0, 0], sizes = [2, 32], strides = [1, 1]} : vector<2x128xf32> to vector<2x32xf32>
    %109 = arith.negf %108 : vector<2x32xf32>
    %110 = math.exp %109 : vector<2x32xf32>
    %cst_23 = arith.constant 1.000000e+00 : f32
    %111 = vector.broadcast %cst_23 : f32 to vector<2x32xf32>
    %112 = arith.addf %111, %110 : vector<2x32xf32>
    %113 = arith.divf %111, %112 : vector<2x32xf32>
    %114 = vector.extract_strided_slice %107 {offsets = [0, 32], sizes = [2, 32], strides = [1, 1]} : vector<2x128xf32> to vector<2x32xf32>
    %115 = arith.negf %114 : vector<2x32xf32>
    %116 = math.exp %115 : vector<2x32xf32>
    %cst_24 = arith.constant 1.000000e+00 : f32
    %117 = vector.broadcast %cst_24 : f32 to vector<2x32xf32>
    %118 = arith.addf %117, %116 : vector<2x32xf32>
    %119 = arith.divf %117, %118 : vector<2x32xf32>
    %120 = vector.extract_strided_slice %107 {offsets = [0, 64], sizes = [2, 32], strides = [1, 1]} : vector<2x128xf32> to vector<2x32xf32>
    %121 = math.tanh %120 : vector<2x32xf32>
    %122 = vector.extract_strided_slice %107 {offsets = [0, 96], sizes = [2, 32], strides = [1, 1]} : vector<2x128xf32> to vector<2x32xf32>
    %123 = arith.negf %122 : vector<2x32xf32>
    %124 = math.exp %123 : vector<2x32xf32>
    %cst_25 = arith.constant 1.000000e+00 : f32
    %125 = vector.broadcast %cst_25 : f32 to vector<2x32xf32>
    %126 = arith.addf %125, %124 : vector<2x32xf32>
    %127 = arith.divf %125, %126 : vector<2x32xf32>
    %128 = arith.mulf %119, %70 : vector<2x32xf32>
    %129 = arith.mulf %113, %121 : vector<2x32xf32>
    %130 = arith.addf %128, %129 : vector<2x32xf32>
    %131 = math.tanh %130 : vector<2x32xf32>
    %132 = arith.mulf %127, %131 : vector<2x32xf32>
    %133 = tpu.concatenate %103, %132 in 1 : vector<2x32xf32>, vector<2x32xf32> -> vector<2x64xf32>
    %cst_26 = arith.constant dense<0.000000e+00> : vector<2x256xf32>
    %134 = tpu.matmul %133, %8, %cst_26 {dimension_numbers = #tpu.dot_dimension_numbers<[1], [0], [0], [1], [0, 0, 1, 1], [], []>} : vector<2x64xf32>, vector<64x256xf32>, vector<2x256xf32> -> vector<2x256xf32>
    %135 = vector.extract_strided_slice %7 {offsets = [2, 0, 0], sizes = [1, 2, 128], strides = [1, 1, 1]} : vector<8x2x256xf32> to vector<1x2x128xf32>
    %136 = vector.shape_cast %135 : vector<1x2x128xf32> to vector<2x128xf32>
    %137 = vector.extract_strided_slice %134 {offsets = [0, 0], sizes = [2, 128], strides = [1, 1]} : vector<2x256xf32> to vector<2x128xf32>
    %138 = arith.addf %136, %137 : vector<2x128xf32>
    %139 = vector.extract_strided_slice %138 {offsets = [0, 0], sizes = [2, 32], strides = [1, 1]} : vector<2x128xf32> to vector<2x32xf32>
    %140 = arith.negf %139 : vector<2x32xf32>
    %141 = math.exp %140 : vector<2x32xf32>
    %cst_27 = arith.constant 1.000000e+00 : f32
    %142 = vector.broadcast %cst_27 : f32 to vector<2x32xf32>
    %143 = arith.addf %142, %141 : vector<2x32xf32>
    %144 = arith.divf %142, %143 : vector<2x32xf32>
    %145 = vector.extract_strided_slice %138 {offsets = [0, 32], sizes = [2, 32], strides = [1, 1]} : vector<2x128xf32> to vector<2x32xf32>
    %146 = arith.negf %145 : vector<2x32xf32>
    %147 = math.exp %146 : vector<2x32xf32>
    %cst_28 = arith.constant 1.000000e+00 : f32
    %148 = vector.broadcast %cst_28 : f32 to vector<2x32xf32>
    %149 = arith.addf %148, %147 : vector<2x32xf32>
    %150 = arith.divf %148, %149 : vector<2x32xf32>
    %151 = vector.extract_strided_slice %138 {offsets = [0, 64], sizes = [2, 32], strides = [1, 1]} : vector<2x128xf32> to vector<2x32xf32>
    %152 = math.tanh %151 : vector<2x32xf32>
    %153 = vector.extract_strided_slice %138 {offsets = [0, 96], sizes = [2, 32], strides = [1, 1]} : vector<2x128xf32> to vector<2x32xf32>
    %154 = arith.negf %153 : vector<2x32xf32>
    %155 = math.exp %154 : vector<2x32xf32>
    %cst_29 = arith.constant 1.000000e+00 : f32
    %156 = vector.broadcast %cst_29 : f32 to vector<2x32xf32>
    %157 = arith.addf %156, %155 : vector<2x32xf32>
    %158 = arith.divf %156, %157 : vector<2x32xf32>
    %159 = arith.mulf %150, %101 : vector<2x32xf32>
    %160 = arith.mulf %144, %152 : vector<2x32xf32>
    %161 = arith.addf %159, %160 : vector<2x32xf32>
    %162 = math.tanh %161 : vector<2x32xf32>
    %163 = arith.mulf %158, %162 : vector<2x32xf32>
    %164 = vector.extract_strided_slice %7 {offsets = [5, 0, 128], sizes = [1, 2, 128], strides = [1, 1, 1]} : vector<8x2x256xf32> to vector<1x2x128xf32>
    %165 = vector.shape_cast %164 : vector<1x2x128xf32> to vector<2x128xf32>
    %166 = vector.extract_strided_slice %134 {offsets = [0, 128], sizes = [2, 128], strides = [1, 1]} : vector<2x256xf32> to vector<2x128xf32>
    %167 = arith.addf %165, %166 : vector<2x128xf32>
    %168 = vector.extract_strided_slice %167 {offsets = [0, 0], sizes = [2, 32], strides = [1, 1]} : vector<2x128xf32> to vector<2x32xf32>
    %169 = arith.negf %168 : vector<2x32xf32>
    %170 = math.exp %169 : vector<2x32xf32>
    %cst_30 = arith.constant 1.000000e+00 : f32
    %171 = vector.broadcast %cst_30 : f32 to vector<2x32xf32>
    %172 = arith.addf %171, %170 : vector<2x32xf32>
    %173 = arith.divf %171, %172 : vector<2x32xf32>
    %174 = vector.extract_strided_slice %167 {offsets = [0, 32], sizes = [2, 32], strides = [1, 1]} : vector<2x128xf32> to vector<2x32xf32>
    %175 = arith.negf %174 : vector<2x32xf32>
    %176 = math.exp %175 : vector<2x32xf32>
    %cst_31 = arith.constant 1.000000e+00 : f32
    %177 = vector.broadcast %cst_31 : f32 to vector<2x32xf32>
    %178 = arith.addf %177, %176 : vector<2x32xf32>
    %179 = arith.divf %177, %178 : vector<2x32xf32>
    %180 = vector.extract_strided_slice %167 {offsets = [0, 64], sizes = [2, 32], strides = [1, 1]} : vector<2x128xf32> to vector<2x32xf32>
    %181 = math.tanh %180 : vector<2x32xf32>
    %182 = vector.extract_strided_slice %167 {offsets = [0, 96], sizes = [2, 32], strides = [1, 1]} : vector<2x128xf32> to vector<2x32xf32>
    %183 = arith.negf %182 : vector<2x32xf32>
    %184 = math.exp %183 : vector<2x32xf32>
    %cst_32 = arith.constant 1.000000e+00 : f32
    %185 = vector.broadcast %cst_32 : f32 to vector<2x32xf32>
    %186 = arith.addf %185, %184 : vector<2x32xf32>
    %187 = arith.divf %185, %186 : vector<2x32xf32>
    %188 = arith.mulf %179, %130 : vector<2x32xf32>
    %189 = arith.mulf %173, %181 : vector<2x32xf32>
    %190 = arith.addf %188, %189 : vector<2x32xf32>
    %191 = math.tanh %190 : vector<2x32xf32>
    %192 = arith.mulf %187, %191 : vector<2x32xf32>
    %193 = tpu.concatenate %163, %192 in 1 : vector<2x32xf32>, vector<2x32xf32> -> vector<2x64xf32>
    %cst_33 = arith.constant dense<0.000000e+00> : vector<2x256xf32>
    %194 = tpu.matmul %193, %8, %cst_33 {dimension_numbers = #tpu.dot_dimension_numbers<[1], [0], [0], [1], [0, 0, 1, 1], [], []>} : vector<2x64xf32>, vector<64x256xf32>, vector<2x256xf32> -> vector<2x256xf32>
    %195 = vector.extract_strided_slice %7 {offsets = [3, 0, 0], sizes = [1, 2, 128], strides = [1, 1, 1]} : vector<8x2x256xf32> to vector<1x2x128xf32>
    %196 = vector.shape_cast %195 : vector<1x2x128xf32> to vector<2x128xf32>
    %197 = vector.extract_strided_slice %194 {offsets = [0, 0], sizes = [2, 128], strides = [1, 1]} : vector<2x256xf32> to vector<2x128xf32>
    %198 = arith.addf %196, %197 : vector<2x128xf32>
    %199 = vector.extract_strided_slice %198 {offsets = [0, 0], sizes = [2, 32], strides = [1, 1]} : vector<2x128xf32> to vector<2x32xf32>
    %200 = arith.negf %199 : vector<2x32xf32>
    %201 = math.exp %200 : vector<2x32xf32>
    %cst_34 = arith.constant 1.000000e+00 : f32
    %202 = vector.broadcast %cst_34 : f32 to vector<2x32xf32>
    %203 = arith.addf %202, %201 : vector<2x32xf32>
    %204 = arith.divf %202, %203 : vector<2x32xf32>
    %205 = vector.extract_strided_slice %198 {offsets = [0, 32], sizes = [2, 32], strides = [1, 1]} : vector<2x128xf32> to vector<2x32xf32>
    %206 = arith.negf %205 : vector<2x32xf32>
    %207 = math.exp %206 : vector<2x32xf32>
    %cst_35 = arith.constant 1.000000e+00 : f32
    %208 = vector.broadcast %cst_35 : f32 to vector<2x32xf32>
    %209 = arith.addf %208, %207 : vector<2x32xf32>
    %210 = arith.divf %208, %209 : vector<2x32xf32>
    %211 = vector.extract_strided_slice %198 {offsets = [0, 64], sizes = [2, 32], strides = [1, 1]} : vector<2x128xf32> to vector<2x32xf32>
    %212 = math.tanh %211 : vector<2x32xf32>
    %213 = vector.extract_strided_slice %198 {offsets = [0, 96], sizes = [2, 32], strides = [1, 1]} : vector<2x128xf32> to vector<2x32xf32>
    %214 = arith.negf %213 : vector<2x32xf32>
    %215 = math.exp %214 : vector<2x32xf32>
    %cst_36 = arith.constant 1.000000e+00 : f32
    %216 = vector.broadcast %cst_36 : f32 to vector<2x32xf32>
    %217 = arith.addf %216, %215 : vector<2x32xf32>
    %218 = arith.divf %216, %217 : vector<2x32xf32>
    %219 = arith.mulf %210, %161 : vector<2x32xf32>
    %220 = arith.mulf %204, %212 : vector<2x32xf32>
    %221 = arith.addf %219, %220 : vector<2x32xf32>
    %222 = math.tanh %221 : vector<2x32xf32>
    %223 = arith.mulf %218, %222 : vector<2x32xf32>
    %224 = vector.extract_strided_slice %7 {offsets = [4, 0, 128], sizes = [1, 2, 128], strides = [1, 1, 1]} : vector<8x2x256xf32> to vector<1x2x128xf32>
    %225 = vector.shape_cast %224 : vector<1x2x128xf32> to vector<2x128xf32>
    %226 = vector.extract_strided_slice %194 {offsets = [0, 128], sizes = [2, 128], strides = [1, 1]} : vector<2x256xf32> to vector<2x128xf32>
    %227 = arith.addf %225, %226 : vector<2x128xf32>
    %228 = vector.extract_strided_slice %227 {offsets = [0, 0], sizes = [2, 32], strides = [1, 1]} : vector<2x128xf32> to vector<2x32xf32>
    %229 = arith.negf %228 : vector<2x32xf32>
    %230 = math.exp %229 : vector<2x32xf32>
    %cst_37 = arith.constant 1.000000e+00 : f32
    %231 = vector.broadcast %cst_37 : f32 to vector<2x32xf32>
    %232 = arith.addf %231, %230 : vector<2x32xf32>
    %233 = arith.divf %231, %232 : vector<2x32xf32>
    %234 = vector.extract_strided_slice %227 {offsets = [0, 32], sizes = [2, 32], strides = [1, 1]} : vector<2x128xf32> to vector<2x32xf32>
    %235 = arith.negf %234 : vector<2x32xf32>
    %236 = math.exp %235 : vector<2x32xf32>
    %cst_38 = arith.constant 1.000000e+00 : f32
    %237 = vector.broadcast %cst_38 : f32 to vector<2x32xf32>
    %238 = arith.addf %237, %236 : vector<2x32xf32>
    %239 = arith.divf %237, %238 : vector<2x32xf32>
    %240 = vector.extract_strided_slice %227 {offsets = [0, 64], sizes = [2, 32], strides = [1, 1]} : vector<2x128xf32> to vector<2x32xf32>
    %241 = math.tanh %240 : vector<2x32xf32>
    %242 = vector.extract_strided_slice %227 {offsets = [0, 96], sizes = [2, 32], strides = [1, 1]} : vector<2x128xf32> to vector<2x32xf32>
    %243 = arith.negf %242 : vector<2x32xf32>
    %244 = math.exp %243 : vector<2x32xf32>
    %cst_39 = arith.constant 1.000000e+00 : f32
    %245 = vector.broadcast %cst_39 : f32 to vector<2x32xf32>
    %246 = arith.addf %245, %244 : vector<2x32xf32>
    %247 = arith.divf %245, %246 : vector<2x32xf32>
    %248 = arith.mulf %239, %190 : vector<2x32xf32>
    %249 = arith.mulf %233, %241 : vector<2x32xf32>
    %250 = arith.addf %248, %249 : vector<2x32xf32>
    %251 = math.tanh %250 : vector<2x32xf32>
    %252 = arith.mulf %247, %251 : vector<2x32xf32>
    %253 = tpu.concatenate %223, %252 in 1 : vector<2x32xf32>, vector<2x32xf32> -> vector<2x64xf32>
    %cst_40 = arith.constant dense<0.000000e+00> : vector<2x256xf32>
    %254 = tpu.matmul %253, %8, %cst_40 {dimension_numbers = #tpu.dot_dimension_numbers<[1], [0], [0], [1], [0, 0, 1, 1], [], []>} : vector<2x64xf32>, vector<64x256xf32>, vector<2x256xf32> -> vector<2x256xf32>
    %255 = vector.extract_strided_slice %7 {offsets = [4, 0, 0], sizes = [1, 2, 128], strides = [1, 1, 1]} : vector<8x2x256xf32> to vector<1x2x128xf32>
    %256 = vector.shape_cast %255 : vector<1x2x128xf32> to vector<2x128xf32>
    %257 = vector.extract_strided_slice %254 {offsets = [0, 0], sizes = [2, 128], strides = [1, 1]} : vector<2x256xf32> to vector<2x128xf32>
    %258 = arith.addf %256, %257 : vector<2x128xf32>
    %259 = vector.extract_strided_slice %258 {offsets = [0, 0], sizes = [2, 32], strides = [1, 1]} : vector<2x128xf32> to vector<2x32xf32>
    %260 = arith.negf %259 : vector<2x32xf32>
    %261 = math.exp %260 : vector<2x32xf32>
    %cst_41 = arith.constant 1.000000e+00 : f32
    %262 = vector.broadcast %cst_41 : f32 to vector<2x32xf32>
    %263 = arith.addf %262, %261 : vector<2x32xf32>
    %264 = arith.divf %262, %263 : vector<2x32xf32>
    %265 = vector.extract_strided_slice %258 {offsets = [0, 32], sizes = [2, 32], strides = [1, 1]} : vector<2x128xf32> to vector<2x32xf32>
    %266 = arith.negf %265 : vector<2x32xf32>
    %267 = math.exp %266 : vector<2x32xf32>
    %cst_42 = arith.constant 1.000000e+00 : f32
    %268 = vector.broadcast %cst_42 : f32 to vector<2x32xf32>
    %269 = arith.addf %268, %267 : vector<2x32xf32>
    %270 = arith.divf %268, %269 : vector<2x32xf32>
    %271 = vector.extract_strided_slice %258 {offsets = [0, 64], sizes = [2, 32], strides = [1, 1]} : vector<2x128xf32> to vector<2x32xf32>
    %272 = math.tanh %271 : vector<2x32xf32>
    %273 = vector.extract_strided_slice %258 {offsets = [0, 96], sizes = [2, 32], strides = [1, 1]} : vector<2x128xf32> to vector<2x32xf32>
    %274 = arith.negf %273 : vector<2x32xf32>
    %275 = math.exp %274 : vector<2x32xf32>
    %cst_43 = arith.constant 1.000000e+00 : f32
    %276 = vector.broadcast %cst_43 : f32 to vector<2x32xf32>
    %277 = arith.addf %276, %275 : vector<2x32xf32>
    %278 = arith.divf %276, %277 : vector<2x32xf32>
    %279 = arith.mulf %270, %221 : vector<2x32xf32>
    %280 = arith.mulf %264, %272 : vector<2x32xf32>
    %281 = arith.addf %279, %280 : vector<2x32xf32>
    %282 = math.tanh %281 : vector<2x32xf32>
    %283 = arith.mulf %278, %282 : vector<2x32xf32>
    %284 = vector.extract_strided_slice %7 {offsets = [3, 0, 128], sizes = [1, 2, 128], strides = [1, 1, 1]} : vector<8x2x256xf32> to vector<1x2x128xf32>
    %285 = vector.shape_cast %284 : vector<1x2x128xf32> to vector<2x128xf32>
    %286 = vector.extract_strided_slice %254 {offsets = [0, 128], sizes = [2, 128], strides = [1, 1]} : vector<2x256xf32> to vector<2x128xf32>
    %287 = arith.addf %285, %286 : vector<2x128xf32>
    %288 = vector.extract_strided_slice %287 {offsets = [0, 0], sizes = [2, 32], strides = [1, 1]} : vector<2x128xf32> to vector<2x32xf32>
    %289 = arith.negf %288 : vector<2x32xf32>
    %290 = math.exp %289 : vector<2x32xf32>
    %cst_44 = arith.constant 1.000000e+00 : f32
    %291 = vector.broadcast %cst_44 : f32 to vector<2x32xf32>
    %292 = arith.addf %291, %290 : vector<2x32xf32>
    %293 = arith.divf %291, %292 : vector<2x32xf32>
    %294 = vector.extract_strided_slice %287 {offsets = [0, 32], sizes = [2, 32], strides = [1, 1]} : vector<2x128xf32> to vector<2x32xf32>
    %295 = arith.negf %294 : vector<2x32xf32>
    %296 = math.exp %295 : vector<2x32xf32>
    %cst_45 = arith.constant 1.000000e+00 : f32
    %297 = vector.broadcast %cst_45 : f32 to vector<2x32xf32>
    %298 = arith.addf %297, %296 : vector<2x32xf32>
    %299 = arith.divf %297, %298 : vector<2x32xf32>
    %300 = vector.extract_strided_slice %287 {offsets = [0, 64], sizes = [2, 32], strides = [1, 1]} : vector<2x128xf32> to vector<2x32xf32>
    %301 = math.tanh %300 : vector<2x32xf32>
    %302 = vector.extract_strided_slice %287 {offsets = [0, 96], sizes = [2, 32], strides = [1, 1]} : vector<2x128xf32> to vector<2x32xf32>
    %303 = arith.negf %302 : vector<2x32xf32>
    %304 = math.exp %303 : vector<2x32xf32>
    %cst_46 = arith.constant 1.000000e+00 : f32
    %305 = vector.broadcast %cst_46 : f32 to vector<2x32xf32>
    %306 = arith.addf %305, %304 : vector<2x32xf32>
    %307 = arith.divf %305, %306 : vector<2x32xf32>
    %308 = arith.mulf %299, %250 : vector<2x32xf32>
    %309 = arith.mulf %293, %301 : vector<2x32xf32>
    %310 = arith.addf %308, %309 : vector<2x32xf32>
    %311 = math.tanh %310 : vector<2x32xf32>
    %312 = arith.mulf %307, %311 : vector<2x32xf32>
    %313 = tpu.concatenate %283, %312 in 1 : vector<2x32xf32>, vector<2x32xf32> -> vector<2x64xf32>
    %cst_47 = arith.constant dense<0.000000e+00> : vector<2x256xf32>
    %314 = tpu.matmul %313, %8, %cst_47 {dimension_numbers = #tpu.dot_dimension_numbers<[1], [0], [0], [1], [0, 0, 1, 1], [], []>} : vector<2x64xf32>, vector<64x256xf32>, vector<2x256xf32> -> vector<2x256xf32>
    %315 = vector.extract_strided_slice %7 {offsets = [5, 0, 0], sizes = [1, 2, 128], strides = [1, 1, 1]} : vector<8x2x256xf32> to vector<1x2x128xf32>
    %316 = vector.shape_cast %315 : vector<1x2x128xf32> to vector<2x128xf32>
    %317 = vector.extract_strided_slice %314 {offsets = [0, 0], sizes = [2, 128], strides = [1, 1]} : vector<2x256xf32> to vector<2x128xf32>
    %318 = arith.addf %316, %317 : vector<2x128xf32>
    %319 = vector.extract_strided_slice %318 {offsets = [0, 0], sizes = [2, 32], strides = [1, 1]} : vector<2x128xf32> to vector<2x32xf32>
    %320 = arith.negf %319 : vector<2x32xf32>
    %321 = math.exp %320 : vector<2x32xf32>
    %cst_48 = arith.constant 1.000000e+00 : f32
    %322 = vector.broadcast %cst_48 : f32 to vector<2x32xf32>
    %323 = arith.addf %322, %321 : vector<2x32xf32>
    %324 = arith.divf %322, %323 : vector<2x32xf32>
    %325 = vector.extract_strided_slice %318 {offsets = [0, 32], sizes = [2, 32], strides = [1, 1]} : vector<2x128xf32> to vector<2x32xf32>
    %326 = arith.negf %325 : vector<2x32xf32>
    %327 = math.exp %326 : vector<2x32xf32>
    %cst_49 = arith.constant 1.000000e+00 : f32
    %328 = vector.broadcast %cst_49 : f32 to vector<2x32xf32>
    %329 = arith.addf %328, %327 : vector<2x32xf32>
    %330 = arith.divf %328, %329 : vector<2x32xf32>
    %331 = vector.extract_strided_slice %318 {offsets = [0, 64], sizes = [2, 32], strides = [1, 1]} : vector<2x128xf32> to vector<2x32xf32>
    %332 = math.tanh %331 : vector<2x32xf32>
    %333 = vector.extract_strided_slice %318 {offsets = [0, 96], sizes = [2, 32], strides = [1, 1]} : vector<2x128xf32> to vector<2x32xf32>
    %334 = arith.negf %333 : vector<2x32xf32>
    %335 = math.exp %334 : vector<2x32xf32>
    %cst_50 = arith.constant 1.000000e+00 : f32
    %336 = vector.broadcast %cst_50 : f32 to vector<2x32xf32>
    %337 = arith.addf %336, %335 : vector<2x32xf32>
    %338 = arith.divf %336, %337 : vector<2x32xf32>
    %339 = arith.mulf %330, %281 : vector<2x32xf32>
    %340 = arith.mulf %324, %332 : vector<2x32xf32>
    %341 = arith.addf %339, %340 : vector<2x32xf32>
    %342 = math.tanh %341 : vector<2x32xf32>
    %343 = arith.mulf %338, %342 : vector<2x32xf32>
    %344 = vector.extract_strided_slice %7 {offsets = [2, 0, 128], sizes = [1, 2, 128], strides = [1, 1, 1]} : vector<8x2x256xf32> to vector<1x2x128xf32>
    %345 = vector.shape_cast %344 : vector<1x2x128xf32> to vector<2x128xf32>
    %346 = vector.extract_strided_slice %314 {offsets = [0, 128], sizes = [2, 128], strides = [1, 1]} : vector<2x256xf32> to vector<2x128xf32>
    %347 = arith.addf %345, %346 : vector<2x128xf32>
    %348 = vector.extract_strided_slice %347 {offsets = [0, 0], sizes = [2, 32], strides = [1, 1]} : vector<2x128xf32> to vector<2x32xf32>
    %349 = arith.negf %348 : vector<2x32xf32>
    %350 = math.exp %349 : vector<2x32xf32>
    %cst_51 = arith.constant 1.000000e+00 : f32
    %351 = vector.broadcast %cst_51 : f32 to vector<2x32xf32>
    %352 = arith.addf %351, %350 : vector<2x32xf32>
    %353 = arith.divf %351, %352 : vector<2x32xf32>
    %354 = vector.extract_strided_slice %347 {offsets = [0, 32], sizes = [2, 32], strides = [1, 1]} : vector<2x128xf32> to vector<2x32xf32>
    %355 = arith.negf %354 : vector<2x32xf32>
    %356 = math.exp %355 : vector<2x32xf32>
    %cst_52 = arith.constant 1.000000e+00 : f32
    %357 = vector.broadcast %cst_52 : f32 to vector<2x32xf32>
    %358 = arith.addf %357, %356 : vector<2x32xf32>
    %359 = arith.divf %357, %358 : vector<2x32xf32>
    %360 = vector.extract_strided_slice %347 {offsets = [0, 64], sizes = [2, 32], strides = [1, 1]} : vector<2x128xf32> to vector<2x32xf32>
    %361 = math.tanh %360 : vector<2x32xf32>
    %362 = vector.extract_strided_slice %347 {offsets = [0, 96], sizes = [2, 32], strides = [1, 1]} : vector<2x128xf32> to vector<2x32xf32>
    %363 = arith.negf %362 : vector<2x32xf32>
    %364 = math.exp %363 : vector<2x32xf32>
    %cst_53 = arith.constant 1.000000e+00 : f32
    %365 = vector.broadcast %cst_53 : f32 to vector<2x32xf32>
    %366 = arith.addf %365, %364 : vector<2x32xf32>
    %367 = arith.divf %365, %366 : vector<2x32xf32>
    %368 = arith.mulf %359, %310 : vector<2x32xf32>
    %369 = arith.mulf %353, %361 : vector<2x32xf32>
    %370 = arith.addf %368, %369 : vector<2x32xf32>
    %371 = math.tanh %370 : vector<2x32xf32>
    %372 = arith.mulf %367, %371 : vector<2x32xf32>
    %373 = tpu.concatenate %343, %372 in 1 : vector<2x32xf32>, vector<2x32xf32> -> vector<2x64xf32>
    %cst_54 = arith.constant dense<0.000000e+00> : vector<2x256xf32>
    %374 = tpu.matmul %373, %8, %cst_54 {dimension_numbers = #tpu.dot_dimension_numbers<[1], [0], [0], [1], [0, 0, 1, 1], [], []>} : vector<2x64xf32>, vector<64x256xf32>, vector<2x256xf32> -> vector<2x256xf32>
    %375 = vector.extract_strided_slice %7 {offsets = [6, 0, 0], sizes = [1, 2, 128], strides = [1, 1, 1]} : vector<8x2x256xf32> to vector<1x2x128xf32>
    %376 = vector.shape_cast %375 : vector<1x2x128xf32> to vector<2x128xf32>
    %377 = vector.extract_strided_slice %374 {offsets = [0, 0], sizes = [2, 128], strides = [1, 1]} : vector<2x256xf32> to vector<2x128xf32>
    %378 = arith.addf %376, %377 : vector<2x128xf32>
    %379 = vector.extract_strided_slice %378 {offsets = [0, 0], sizes = [2, 32], strides = [1, 1]} : vector<2x128xf32> to vector<2x32xf32>
    %380 = arith.negf %379 : vector<2x32xf32>
    %381 = math.exp %380 : vector<2x32xf32>
    %cst_55 = arith.constant 1.000000e+00 : f32
    %382 = vector.broadcast %cst_55 : f32 to vector<2x32xf32>
    %383 = arith.addf %382, %381 : vector<2x32xf32>
    %384 = arith.divf %382, %383 : vector<2x32xf32>
    %385 = vector.extract_strided_slice %378 {offsets = [0, 32], sizes = [2, 32], strides = [1, 1]} : vector<2x128xf32> to vector<2x32xf32>
    %386 = arith.negf %385 : vector<2x32xf32>
    %387 = math.exp %386 : vector<2x32xf32>
    %cst_56 = arith.constant 1.000000e+00 : f32
    %388 = vector.broadcast %cst_56 : f32 to vector<2x32xf32>
    %389 = arith.addf %388, %387 : vector<2x32xf32>
    %390 = arith.divf %388, %389 : vector<2x32xf32>
    %391 = vector.extract_strided_slice %378 {offsets = [0, 64], sizes = [2, 32], strides = [1, 1]} : vector<2x128xf32> to vector<2x32xf32>
    %392 = math.tanh %391 : vector<2x32xf32>
    %393 = vector.extract_strided_slice %378 {offsets = [0, 96], sizes = [2, 32], strides = [1, 1]} : vector<2x128xf32> to vector<2x32xf32>
    %394 = arith.negf %393 : vector<2x32xf32>
    %395 = math.exp %394 : vector<2x32xf32>
    %cst_57 = arith.constant 1.000000e+00 : f32
    %396 = vector.broadcast %cst_57 : f32 to vector<2x32xf32>
    %397 = arith.addf %396, %395 : vector<2x32xf32>
    %398 = arith.divf %396, %397 : vector<2x32xf32>
    %399 = arith.mulf %390, %341 : vector<2x32xf32>
    %400 = arith.mulf %384, %392 : vector<2x32xf32>
    %401 = arith.addf %399, %400 : vector<2x32xf32>
    %402 = math.tanh %401 : vector<2x32xf32>
    %403 = arith.mulf %398, %402 : vector<2x32xf32>
    %404 = vector.extract_strided_slice %7 {offsets = [1, 0, 128], sizes = [1, 2, 128], strides = [1, 1, 1]} : vector<8x2x256xf32> to vector<1x2x128xf32>
    %405 = vector.shape_cast %404 : vector<1x2x128xf32> to vector<2x128xf32>
    %406 = vector.extract_strided_slice %374 {offsets = [0, 128], sizes = [2, 128], strides = [1, 1]} : vector<2x256xf32> to vector<2x128xf32>
    %407 = arith.addf %405, %406 : vector<2x128xf32>
    %408 = vector.extract_strided_slice %407 {offsets = [0, 0], sizes = [2, 32], strides = [1, 1]} : vector<2x128xf32> to vector<2x32xf32>
    %409 = arith.negf %408 : vector<2x32xf32>
    %410 = math.exp %409 : vector<2x32xf32>
    %cst_58 = arith.constant 1.000000e+00 : f32
    %411 = vector.broadcast %cst_58 : f32 to vector<2x32xf32>
    %412 = arith.addf %411, %410 : vector<2x32xf32>
    %413 = arith.divf %411, %412 : vector<2x32xf32>
    %414 = vector.extract_strided_slice %407 {offsets = [0, 32], sizes = [2, 32], strides = [1, 1]} : vector<2x128xf32> to vector<2x32xf32>
    %415 = arith.negf %414 : vector<2x32xf32>
    %416 = math.exp %415 : vector<2x32xf32>
    %cst_59 = arith.constant 1.000000e+00 : f32
    %417 = vector.broadcast %cst_59 : f32 to vector<2x32xf32>
    %418 = arith.addf %417, %416 : vector<2x32xf32>
    %419 = arith.divf %417, %418 : vector<2x32xf32>
    %420 = vector.extract_strided_slice %407 {offsets = [0, 64], sizes = [2, 32], strides = [1, 1]} : vector<2x128xf32> to vector<2x32xf32>
    %421 = math.tanh %420 : vector<2x32xf32>
    %422 = vector.extract_strided_slice %407 {offsets = [0, 96], sizes = [2, 32], strides = [1, 1]} : vector<2x128xf32> to vector<2x32xf32>
    %423 = arith.negf %422 : vector<2x32xf32>
    %424 = math.exp %423 : vector<2x32xf32>
    %cst_60 = arith.constant 1.000000e+00 : f32
    %425 = vector.broadcast %cst_60 : f32 to vector<2x32xf32>
    %426 = arith.addf %425, %424 : vector<2x32xf32>
    %427 = arith.divf %425, %426 : vector<2x32xf32>
    %428 = arith.mulf %419, %370 : vector<2x32xf32>
    %429 = arith.mulf %413, %421 : vector<2x32xf32>
    %430 = arith.addf %428, %429 : vector<2x32xf32>
    %431 = math.tanh %430 : vector<2x32xf32>
    %432 = arith.mulf %427, %431 : vector<2x32xf32>
    %433 = tpu.concatenate %403, %432 in 1 : vector<2x32xf32>, vector<2x32xf32> -> vector<2x64xf32>
    %cst_61 = arith.constant dense<0.000000e+00> : vector<2x256xf32>
    %434 = tpu.matmul %433, %8, %cst_61 {dimension_numbers = #tpu.dot_dimension_numbers<[1], [0], [0], [1], [0, 0, 1, 1], [], []>} : vector<2x64xf32>, vector<64x256xf32>, vector<2x256xf32> -> vector<2x256xf32>
    %435 = vector.extract_strided_slice %7 {offsets = [7, 0, 0], sizes = [1, 2, 128], strides = [1, 1, 1]} : vector<8x2x256xf32> to vector<1x2x128xf32>
    %436 = vector.shape_cast %435 : vector<1x2x128xf32> to vector<2x128xf32>
    %437 = vector.extract_strided_slice %434 {offsets = [0, 0], sizes = [2, 128], strides = [1, 1]} : vector<2x256xf32> to vector<2x128xf32>
    %438 = arith.addf %436, %437 : vector<2x128xf32>
    %439 = vector.extract_strided_slice %438 {offsets = [0, 0], sizes = [2, 32], strides = [1, 1]} : vector<2x128xf32> to vector<2x32xf32>
    %440 = arith.negf %439 : vector<2x32xf32>
    %441 = math.exp %440 : vector<2x32xf32>
    %cst_62 = arith.constant 1.000000e+00 : f32
    %442 = vector.broadcast %cst_62 : f32 to vector<2x32xf32>
    %443 = arith.addf %442, %441 : vector<2x32xf32>
    %444 = arith.divf %442, %443 : vector<2x32xf32>
    %445 = vector.extract_strided_slice %438 {offsets = [0, 32], sizes = [2, 32], strides = [1, 1]} : vector<2x128xf32> to vector<2x32xf32>
    %446 = arith.negf %445 : vector<2x32xf32>
    %447 = math.exp %446 : vector<2x32xf32>
    %cst_63 = arith.constant 1.000000e+00 : f32
    %448 = vector.broadcast %cst_63 : f32 to vector<2x32xf32>
    %449 = arith.addf %448, %447 : vector<2x32xf32>
    %450 = arith.divf %448, %449 : vector<2x32xf32>
    %451 = vector.extract_strided_slice %438 {offsets = [0, 64], sizes = [2, 32], strides = [1, 1]} : vector<2x128xf32> to vector<2x32xf32>
    %452 = math.tanh %451 : vector<2x32xf32>
    %453 = vector.extract_strided_slice %438 {offsets = [0, 96], sizes = [2, 32], strides = [1, 1]} : vector<2x128xf32> to vector<2x32xf32>
    %454 = arith.negf %453 : vector<2x32xf32>
    %455 = math.exp %454 : vector<2x32xf32>
    %cst_64 = arith.constant 1.000000e+00 : f32
    %456 = vector.broadcast %cst_64 : f32 to vector<2x32xf32>
    %457 = arith.addf %456, %455 : vector<2x32xf32>
    %458 = arith.divf %456, %457 : vector<2x32xf32>
    %459 = arith.mulf %450, %401 : vector<2x32xf32>
    %460 = arith.mulf %444, %452 : vector<2x32xf32>
    %461 = arith.addf %459, %460 : vector<2x32xf32>
    %462 = math.tanh %461 : vector<2x32xf32>
    %463 = arith.mulf %458, %462 : vector<2x32xf32>
    %464 = vector.extract_strided_slice %7 {offsets = [0, 0, 128], sizes = [1, 2, 128], strides = [1, 1, 1]} : vector<8x2x256xf32> to vector<1x2x128xf32>
    %465 = vector.shape_cast %464 : vector<1x2x128xf32> to vector<2x128xf32>
    %466 = vector.extract_strided_slice %434 {offsets = [0, 128], sizes = [2, 128], strides = [1, 1]} : vector<2x256xf32> to vector<2x128xf32>
    %467 = arith.addf %465, %466 : vector<2x128xf32>
    %468 = vector.extract_strided_slice %467 {offsets = [0, 0], sizes = [2, 32], strides = [1, 1]} : vector<2x128xf32> to vector<2x32xf32>
    %469 = arith.negf %468 : vector<2x32xf32>
    %470 = math.exp %469 : vector<2x32xf32>
    %cst_65 = arith.constant 1.000000e+00 : f32
    %471 = vector.broadcast %cst_65 : f32 to vector<2x32xf32>
    %472 = arith.addf %471, %470 : vector<2x32xf32>
    %473 = arith.divf %471, %472 : vector<2x32xf32>
    %474 = vector.extract_strided_slice %467 {offsets = [0, 32], sizes = [2, 32], strides = [1, 1]} : vector<2x128xf32> to vector<2x32xf32>
    %475 = arith.negf %474 : vector<2x32xf32>
    %476 = math.exp %475 : vector<2x32xf32>
    %cst_66 = arith.constant 1.000000e+00 : f32
    %477 = vector.broadcast %cst_66 : f32 to vector<2x32xf32>
    %478 = arith.addf %477, %476 : vector<2x32xf32>
    %479 = arith.divf %477, %478 : vector<2x32xf32>
    %480 = vector.extract_strided_slice %467 {offsets = [0, 64], sizes = [2, 32], strides = [1, 1]} : vector<2x128xf32> to vector<2x32xf32>
    %481 = math.tanh %480 : vector<2x32xf32>
    %482 = vector.extract_strided_slice %467 {offsets = [0, 96], sizes = [2, 32], strides = [1, 1]} : vector<2x128xf32> to vector<2x32xf32>
    %483 = arith.negf %482 : vector<2x32xf32>
    %484 = math.exp %483 : vector<2x32xf32>
    %cst_67 = arith.constant 1.000000e+00 : f32
    %485 = vector.broadcast %cst_67 : f32 to vector<2x32xf32>
    %486 = arith.addf %485, %484 : vector<2x32xf32>
    %487 = arith.divf %485, %486 : vector<2x32xf32>
    %488 = arith.mulf %479, %430 : vector<2x32xf32>
    %489 = arith.mulf %473, %481 : vector<2x32xf32>
    %490 = arith.addf %488, %489 : vector<2x32xf32>
    %491 = math.tanh %490 : vector<2x32xf32>
    %492 = arith.mulf %487, %491 : vector<2x32xf32>
    %493 = vector.shape_cast %43 : vector<2x32xf32> to vector<1x2x32xf32>
    %494 = vector.shape_cast %103 : vector<2x32xf32> to vector<1x2x32xf32>
    %495 = vector.shape_cast %163 : vector<2x32xf32> to vector<1x2x32xf32>
    %496 = vector.shape_cast %223 : vector<2x32xf32> to vector<1x2x32xf32>
    %497 = vector.shape_cast %283 : vector<2x32xf32> to vector<1x2x32xf32>
    %498 = vector.shape_cast %343 : vector<2x32xf32> to vector<1x2x32xf32>
    %499 = vector.shape_cast %403 : vector<2x32xf32> to vector<1x2x32xf32>
    %500 = vector.shape_cast %463 : vector<2x32xf32> to vector<1x2x32xf32>
    %501 = tpu.concatenate %493, %494, %495, %496, %497, %498, %499, %500 in 0 : vector<1x2x32xf32>, vector<1x2x32xf32>, vector<1x2x32xf32>, vector<1x2x32xf32>, vector<1x2x32xf32>, vector<1x2x32xf32>, vector<1x2x32xf32>, vector<1x2x32xf32> -> vector<8x2x32xf32>
    %502 = vector.shape_cast %492 : vector<2x32xf32> to vector<1x2x32xf32>
    %503 = vector.shape_cast %432 : vector<2x32xf32> to vector<1x2x32xf32>
    %504 = vector.shape_cast %372 : vector<2x32xf32> to vector<1x2x32xf32>
    %505 = vector.shape_cast %312 : vector<2x32xf32> to vector<1x2x32xf32>
    %506 = vector.shape_cast %252 : vector<2x32xf32> to vector<1x2x32xf32>
    %507 = vector.shape_cast %192 : vector<2x32xf32> to vector<1x2x32xf32>
    %508 = vector.shape_cast %132 : vector<2x32xf32> to vector<1x2x32xf32>
    %509 = vector.shape_cast %72 : vector<2x32xf32> to vector<1x2x32xf32>
    %510 = tpu.concatenate %502, %503, %504, %505, %506, %507, %508, %509 in 0 : vector<1x2x32xf32>, vector<1x2x32xf32>, vector<1x2x32xf32>, vector<1x2x32xf32>, vector<1x2x32xf32>, vector<1x2x32xf32>, vector<1x2x32xf32>, vector<1x2x32xf32> -> vector<8x2x32xf32>
    %511 = tpu.concatenate %501, %510 in 2 : vector<8x2x32xf32>, vector<8x2x32xf32> -> vector<8x2x64xf32>
    %512 = vector.shape_cast %511 : vector<8x2x64xf32> to vector<16x64xf32>
    %c0_68 = arith.constant 0 : index
    %c0_69 = arith.constant 0 : index
    %513 = vector.load %arg6[%c0_68, %c0_69] : memref<64x256xf32, #tpu.memory_space<vmem>>, vector<64x256xf32>
    %cst_70 = arith.constant dense<0.000000e+00> : vector<16x256xf32>
    %514 = tpu.matmul %512, %513, %cst_70 {dimension_numbers = #tpu.dot_dimension_numbers<[1], [0], [0], [1], [0, 0, 1, 1], [], []>} : vector<16x64xf32>, vector<64x256xf32>, vector<16x256xf32> -> vector<16x256xf32>
    %c0_71 = arith.constant 0 : index
    %c0_72 = arith.constant 0 : index
    %515 = vector.load %arg7[%c0_71, %c0_72] : memref<1x256xf32, #tpu.memory_space<vmem>>, vector<1x256xf32>
    %516 = vector.broadcast %515 : vector<1x256xf32> to vector<16x256xf32>
    %517 = arith.addf %514, %516 : vector<16x256xf32>
    %518 = vector.shape_cast %517 : vector<16x256xf32> to vector<8x2x256xf32>
    %c0_73 = arith.constant 0 : index
    %c0_74 = arith.constant 0 : index
    %519 = vector.load %arg8[%c0_73, %c0_74] : memref<64x256xf32, #tpu.memory_space<vmem>>, vector<64x256xf32>
    %cst_75 = arith.constant 0.000000e+00 : f32
    %520 = vector.broadcast %cst_75 : f32 to vector<2x32xf32>
    %cst_76 = arith.constant 0.000000e+00 : f32
    %521 = vector.broadcast %cst_76 : f32 to vector<2x32xf32>
    %cst_77 = arith.constant 0.000000e+00 : f32
    %522 = vector.broadcast %cst_77 : f32 to vector<2x32xf32>
    %cst_78 = arith.constant 0.000000e+00 : f32
    %523 = vector.broadcast %cst_78 : f32 to vector<2x32xf32>
    %524 = tpu.concatenate %520, %522 in 1 : vector<2x32xf32>, vector<2x32xf32> -> vector<2x64xf32>
    %cst_79 = arith.constant dense<0.000000e+00> : vector<2x256xf32>
    %525 = tpu.matmul %524, %519, %cst_79 {dimension_numbers = #tpu.dot_dimension_numbers<[1], [0], [0], [1], [0, 0, 1, 1], [], []>} : vector<2x64xf32>, vector<64x256xf32>, vector<2x256xf32> -> vector<2x256xf32>
    %526 = vector.extract_strided_slice %518 {offsets = [0, 0, 0], sizes = [1, 2, 128], strides = [1, 1, 1]} : vector<8x2x256xf32> to vector<1x2x128xf32>
    %527 = vector.shape_cast %526 : vector<1x2x128xf32> to vector<2x128xf32>
    %528 = vector.extract_strided_slice %525 {offsets = [0, 0], sizes = [2, 128], strides = [1, 1]} : vector<2x256xf32> to vector<2x128xf32>
    %529 = arith.addf %527, %528 : vector<2x128xf32>
    %530 = vector.extract_strided_slice %529 {offsets = [0, 0], sizes = [2, 32], strides = [1, 1]} : vector<2x128xf32> to vector<2x32xf32>
    %531 = arith.negf %530 : vector<2x32xf32>
    %532 = math.exp %531 : vector<2x32xf32>
    %cst_80 = arith.constant 1.000000e+00 : f32
    %533 = vector.broadcast %cst_80 : f32 to vector<2x32xf32>
    %534 = arith.addf %533, %532 : vector<2x32xf32>
    %535 = arith.divf %533, %534 : vector<2x32xf32>
    %536 = vector.extract_strided_slice %529 {offsets = [0, 32], sizes = [2, 32], strides = [1, 1]} : vector<2x128xf32> to vector<2x32xf32>
    %537 = arith.negf %536 : vector<2x32xf32>
    %538 = math.exp %537 : vector<2x32xf32>
    %cst_81 = arith.constant 1.000000e+00 : f32
    %539 = vector.broadcast %cst_81 : f32 to vector<2x32xf32>
    %540 = arith.addf %539, %538 : vector<2x32xf32>
    %541 = arith.divf %539, %540 : vector<2x32xf32>
    %542 = vector.extract_strided_slice %529 {offsets = [0, 64], sizes = [2, 32], strides = [1, 1]} : vector<2x128xf32> to vector<2x32xf32>
    %543 = math.tanh %542 : vector<2x32xf32>
    %544 = vector.extract_strided_slice %529 {offsets = [0, 96], sizes = [2, 32], strides = [1, 1]} : vector<2x128xf32> to vector<2x32xf32>
    %545 = arith.negf %544 : vector<2x32xf32>
    %546 = math.exp %545 : vector<2x32xf32>
    %cst_82 = arith.constant 1.000000e+00 : f32
    %547 = vector.broadcast %cst_82 : f32 to vector<2x32xf32>
    %548 = arith.addf %547, %546 : vector<2x32xf32>
    %549 = arith.divf %547, %548 : vector<2x32xf32>
    %550 = arith.mulf %541, %521 : vector<2x32xf32>
    %551 = arith.mulf %535, %543 : vector<2x32xf32>
    %552 = arith.addf %550, %551 : vector<2x32xf32>
    %553 = math.tanh %552 : vector<2x32xf32>
    %554 = arith.mulf %549, %553 : vector<2x32xf32>
    %555 = vector.extract_strided_slice %518 {offsets = [7, 0, 128], sizes = [1, 2, 128], strides = [1, 1, 1]} : vector<8x2x256xf32> to vector<1x2x128xf32>
    %556 = vector.shape_cast %555 : vector<1x2x128xf32> to vector<2x128xf32>
    %557 = vector.extract_strided_slice %525 {offsets = [0, 128], sizes = [2, 128], strides = [1, 1]} : vector<2x256xf32> to vector<2x128xf32>
    %558 = arith.addf %556, %557 : vector<2x128xf32>
    %559 = vector.extract_strided_slice %558 {offsets = [0, 0], sizes = [2, 32], strides = [1, 1]} : vector<2x128xf32> to vector<2x32xf32>
    %560 = arith.negf %559 : vector<2x32xf32>
    %561 = math.exp %560 : vector<2x32xf32>
    %cst_83 = arith.constant 1.000000e+00 : f32
    %562 = vector.broadcast %cst_83 : f32 to vector<2x32xf32>
    %563 = arith.addf %562, %561 : vector<2x32xf32>
    %564 = arith.divf %562, %563 : vector<2x32xf32>
    %565 = vector.extract_strided_slice %558 {offsets = [0, 32], sizes = [2, 32], strides = [1, 1]} : vector<2x128xf32> to vector<2x32xf32>
    %566 = arith.negf %565 : vector<2x32xf32>
    %567 = math.exp %566 : vector<2x32xf32>
    %cst_84 = arith.constant 1.000000e+00 : f32
    %568 = vector.broadcast %cst_84 : f32 to vector<2x32xf32>
    %569 = arith.addf %568, %567 : vector<2x32xf32>
    %570 = arith.divf %568, %569 : vector<2x32xf32>
    %571 = vector.extract_strided_slice %558 {offsets = [0, 64], sizes = [2, 32], strides = [1, 1]} : vector<2x128xf32> to vector<2x32xf32>
    %572 = math.tanh %571 : vector<2x32xf32>
    %573 = vector.extract_strided_slice %558 {offsets = [0, 96], sizes = [2, 32], strides = [1, 1]} : vector<2x128xf32> to vector<2x32xf32>
    %574 = arith.negf %573 : vector<2x32xf32>
    %575 = math.exp %574 : vector<2x32xf32>
    %cst_85 = arith.constant 1.000000e+00 : f32
    %576 = vector.broadcast %cst_85 : f32 to vector<2x32xf32>
    %577 = arith.addf %576, %575 : vector<2x32xf32>
    %578 = arith.divf %576, %577 : vector<2x32xf32>
    %579 = arith.mulf %570, %523 : vector<2x32xf32>
    %580 = arith.mulf %564, %572 : vector<2x32xf32>
    %581 = arith.addf %579, %580 : vector<2x32xf32>
    %582 = math.tanh %581 : vector<2x32xf32>
    %583 = arith.mulf %578, %582 : vector<2x32xf32>
    %584 = tpu.concatenate %554, %583 in 1 : vector<2x32xf32>, vector<2x32xf32> -> vector<2x64xf32>
    %cst_86 = arith.constant dense<0.000000e+00> : vector<2x256xf32>
    %585 = tpu.matmul %584, %519, %cst_86 {dimension_numbers = #tpu.dot_dimension_numbers<[1], [0], [0], [1], [0, 0, 1, 1], [], []>} : vector<2x64xf32>, vector<64x256xf32>, vector<2x256xf32> -> vector<2x256xf32>
    %586 = vector.extract_strided_slice %518 {offsets = [1, 0, 0], sizes = [1, 2, 128], strides = [1, 1, 1]} : vector<8x2x256xf32> to vector<1x2x128xf32>
    %587 = vector.shape_cast %586 : vector<1x2x128xf32> to vector<2x128xf32>
    %588 = vector.extract_strided_slice %585 {offsets = [0, 0], sizes = [2, 128], strides = [1, 1]} : vector<2x256xf32> to vector<2x128xf32>
    %589 = arith.addf %587, %588 : vector<2x128xf32>
    %590 = vector.extract_strided_slice %589 {offsets = [0, 0], sizes = [2, 32], strides = [1, 1]} : vector<2x128xf32> to vector<2x32xf32>
    %591 = arith.negf %590 : vector<2x32xf32>
    %592 = math.exp %591 : vector<2x32xf32>
    %cst_87 = arith.constant 1.000000e+00 : f32
    %593 = vector.broadcast %cst_87 : f32 to vector<2x32xf32>
    %594 = arith.addf %593, %592 : vector<2x32xf32>
    %595 = arith.divf %593, %594 : vector<2x32xf32>
    %596 = vector.extract_strided_slice %589 {offsets = [0, 32], sizes = [2, 32], strides = [1, 1]} : vector<2x128xf32> to vector<2x32xf32>
    %597 = arith.negf %596 : vector<2x32xf32>
    %598 = math.exp %597 : vector<2x32xf32>
    %cst_88 = arith.constant 1.000000e+00 : f32
    %599 = vector.broadcast %cst_88 : f32 to vector<2x32xf32>
    %600 = arith.addf %599, %598 : vector<2x32xf32>
    %601 = arith.divf %599, %600 : vector<2x32xf32>
    %602 = vector.extract_strided_slice %589 {offsets = [0, 64], sizes = [2, 32], strides = [1, 1]} : vector<2x128xf32> to vector<2x32xf32>
    %603 = math.tanh %602 : vector<2x32xf32>
    %604 = vector.extract_strided_slice %589 {offsets = [0, 96], sizes = [2, 32], strides = [1, 1]} : vector<2x128xf32> to vector<2x32xf32>
    %605 = arith.negf %604 : vector<2x32xf32>
    %606 = math.exp %605 : vector<2x32xf32>
    %cst_89 = arith.constant 1.000000e+00 : f32
    %607 = vector.broadcast %cst_89 : f32 to vector<2x32xf32>
    %608 = arith.addf %607, %606 : vector<2x32xf32>
    %609 = arith.divf %607, %608 : vector<2x32xf32>
    %610 = arith.mulf %601, %552 : vector<2x32xf32>
    %611 = arith.mulf %595, %603 : vector<2x32xf32>
    %612 = arith.addf %610, %611 : vector<2x32xf32>
    %613 = math.tanh %612 : vector<2x32xf32>
    %614 = arith.mulf %609, %613 : vector<2x32xf32>
    %615 = vector.extract_strided_slice %518 {offsets = [6, 0, 128], sizes = [1, 2, 128], strides = [1, 1, 1]} : vector<8x2x256xf32> to vector<1x2x128xf32>
    %616 = vector.shape_cast %615 : vector<1x2x128xf32> to vector<2x128xf32>
    %617 = vector.extract_strided_slice %585 {offsets = [0, 128], sizes = [2, 128], strides = [1, 1]} : vector<2x256xf32> to vector<2x128xf32>
    %618 = arith.addf %616, %617 : vector<2x128xf32>
    %619 = vector.extract_strided_slice %618 {offsets = [0, 0], sizes = [2, 32], strides = [1, 1]} : vector<2x128xf32> to vector<2x32xf32>
    %620 = arith.negf %619 : vector<2x32xf32>
    %621 = math.exp %620 : vector<2x32xf32>
    %cst_90 = arith.constant 1.000000e+00 : f32
    %622 = vector.broadcast %cst_90 : f32 to vector<2x32xf32>
    %623 = arith.addf %622, %621 : vector<2x32xf32>
    %624 = arith.divf %622, %623 : vector<2x32xf32>
    %625 = vector.extract_strided_slice %618 {offsets = [0, 32], sizes = [2, 32], strides = [1, 1]} : vector<2x128xf32> to vector<2x32xf32>
    %626 = arith.negf %625 : vector<2x32xf32>
    %627 = math.exp %626 : vector<2x32xf32>
    %cst_91 = arith.constant 1.000000e+00 : f32
    %628 = vector.broadcast %cst_91 : f32 to vector<2x32xf32>
    %629 = arith.addf %628, %627 : vector<2x32xf32>
    %630 = arith.divf %628, %629 : vector<2x32xf32>
    %631 = vector.extract_strided_slice %618 {offsets = [0, 64], sizes = [2, 32], strides = [1, 1]} : vector<2x128xf32> to vector<2x32xf32>
    %632 = math.tanh %631 : vector<2x32xf32>
    %633 = vector.extract_strided_slice %618 {offsets = [0, 96], sizes = [2, 32], strides = [1, 1]} : vector<2x128xf32> to vector<2x32xf32>
    %634 = arith.negf %633 : vector<2x32xf32>
    %635 = math.exp %634 : vector<2x32xf32>
    %cst_92 = arith.constant 1.000000e+00 : f32
    %636 = vector.broadcast %cst_92 : f32 to vector<2x32xf32>
    %637 = arith.addf %636, %635 : vector<2x32xf32>
    %638 = arith.divf %636, %637 : vector<2x32xf32>
    %639 = arith.mulf %630, %581 : vector<2x32xf32>
    %640 = arith.mulf %624, %632 : vector<2x32xf32>
    %641 = arith.addf %639, %640 : vector<2x32xf32>
    %642 = math.tanh %641 : vector<2x32xf32>
    %643 = arith.mulf %638, %642 : vector<2x32xf32>
    %644 = tpu.concatenate %614, %643 in 1 : vector<2x32xf32>, vector<2x32xf32> -> vector<2x64xf32>
    %cst_93 = arith.constant dense<0.000000e+00> : vector<2x256xf32>
    %645 = tpu.matmul %644, %519, %cst_93 {dimension_numbers = #tpu.dot_dimension_numbers<[1], [0], [0], [1], [0, 0, 1, 1], [], []>} : vector<2x64xf32>, vector<64x256xf32>, vector<2x256xf32> -> vector<2x256xf32>
    %646 = vector.extract_strided_slice %518 {offsets = [2, 0, 0], sizes = [1, 2, 128], strides = [1, 1, 1]} : vector<8x2x256xf32> to vector<1x2x128xf32>
    %647 = vector.shape_cast %646 : vector<1x2x128xf32> to vector<2x128xf32>
    %648 = vector.extract_strided_slice %645 {offsets = [0, 0], sizes = [2, 128], strides = [1, 1]} : vector<2x256xf32> to vector<2x128xf32>
    %649 = arith.addf %647, %648 : vector<2x128xf32>
    %650 = vector.extract_strided_slice %649 {offsets = [0, 0], sizes = [2, 32], strides = [1, 1]} : vector<2x128xf32> to vector<2x32xf32>
    %651 = arith.negf %650 : vector<2x32xf32>
    %652 = math.exp %651 : vector<2x32xf32>
    %cst_94 = arith.constant 1.000000e+00 : f32
    %653 = vector.broadcast %cst_94 : f32 to vector<2x32xf32>
    %654 = arith.addf %653, %652 : vector<2x32xf32>
    %655 = arith.divf %653, %654 : vector<2x32xf32>
    %656 = vector.extract_strided_slice %649 {offsets = [0, 32], sizes = [2, 32], strides = [1, 1]} : vector<2x128xf32> to vector<2x32xf32>
    %657 = arith.negf %656 : vector<2x32xf32>
    %658 = math.exp %657 : vector<2x32xf32>
    %cst_95 = arith.constant 1.000000e+00 : f32
    %659 = vector.broadcast %cst_95 : f32 to vector<2x32xf32>
    %660 = arith.addf %659, %658 : vector<2x32xf32>
    %661 = arith.divf %659, %660 : vector<2x32xf32>
    %662 = vector.extract_strided_slice %649 {offsets = [0, 64], sizes = [2, 32], strides = [1, 1]} : vector<2x128xf32> to vector<2x32xf32>
    %663 = math.tanh %662 : vector<2x32xf32>
    %664 = vector.extract_strided_slice %649 {offsets = [0, 96], sizes = [2, 32], strides = [1, 1]} : vector<2x128xf32> to vector<2x32xf32>
    %665 = arith.negf %664 : vector<2x32xf32>
    %666 = math.exp %665 : vector<2x32xf32>
    %cst_96 = arith.constant 1.000000e+00 : f32
    %667 = vector.broadcast %cst_96 : f32 to vector<2x32xf32>
    %668 = arith.addf %667, %666 : vector<2x32xf32>
    %669 = arith.divf %667, %668 : vector<2x32xf32>
    %670 = arith.mulf %661, %612 : vector<2x32xf32>
    %671 = arith.mulf %655, %663 : vector<2x32xf32>
    %672 = arith.addf %670, %671 : vector<2x32xf32>
    %673 = math.tanh %672 : vector<2x32xf32>
    %674 = arith.mulf %669, %673 : vector<2x32xf32>
    %675 = vector.extract_strided_slice %518 {offsets = [5, 0, 128], sizes = [1, 2, 128], strides = [1, 1, 1]} : vector<8x2x256xf32> to vector<1x2x128xf32>
    %676 = vector.shape_cast %675 : vector<1x2x128xf32> to vector<2x128xf32>
    %677 = vector.extract_strided_slice %645 {offsets = [0, 128], sizes = [2, 128], strides = [1, 1]} : vector<2x256xf32> to vector<2x128xf32>
    %678 = arith.addf %676, %677 : vector<2x128xf32>
    %679 = vector.extract_strided_slice %678 {offsets = [0, 0], sizes = [2, 32], strides = [1, 1]} : vector<2x128xf32> to vector<2x32xf32>
    %680 = arith.negf %679 : vector<2x32xf32>
    %681 = math.exp %680 : vector<2x32xf32>
    %cst_97 = arith.constant 1.000000e+00 : f32
    %682 = vector.broadcast %cst_97 : f32 to vector<2x32xf32>
    %683 = arith.addf %682, %681 : vector<2x32xf32>
    %684 = arith.divf %682, %683 : vector<2x32xf32>
    %685 = vector.extract_strided_slice %678 {offsets = [0, 32], sizes = [2, 32], strides = [1, 1]} : vector<2x128xf32> to vector<2x32xf32>
    %686 = arith.negf %685 : vector<2x32xf32>
    %687 = math.exp %686 : vector<2x32xf32>
    %cst_98 = arith.constant 1.000000e+00 : f32
    %688 = vector.broadcast %cst_98 : f32 to vector<2x32xf32>
    %689 = arith.addf %688, %687 : vector<2x32xf32>
    %690 = arith.divf %688, %689 : vector<2x32xf32>
    %691 = vector.extract_strided_slice %678 {offsets = [0, 64], sizes = [2, 32], strides = [1, 1]} : vector<2x128xf32> to vector<2x32xf32>
    %692 = math.tanh %691 : vector<2x32xf32>
    %693 = vector.extract_strided_slice %678 {offsets = [0, 96], sizes = [2, 32], strides = [1, 1]} : vector<2x128xf32> to vector<2x32xf32>
    %694 = arith.negf %693 : vector<2x32xf32>
    %695 = math.exp %694 : vector<2x32xf32>
    %cst_99 = arith.constant 1.000000e+00 : f32
    %696 = vector.broadcast %cst_99 : f32 to vector<2x32xf32>
    %697 = arith.addf %696, %695 : vector<2x32xf32>
    %698 = arith.divf %696, %697 : vector<2x32xf32>
    %699 = arith.mulf %690, %641 : vector<2x32xf32>
    %700 = arith.mulf %684, %692 : vector<2x32xf32>
    %701 = arith.addf %699, %700 : vector<2x32xf32>
    %702 = math.tanh %701 : vector<2x32xf32>
    %703 = arith.mulf %698, %702 : vector<2x32xf32>
    %704 = tpu.concatenate %674, %703 in 1 : vector<2x32xf32>, vector<2x32xf32> -> vector<2x64xf32>
    %cst_100 = arith.constant dense<0.000000e+00> : vector<2x256xf32>
    %705 = tpu.matmul %704, %519, %cst_100 {dimension_numbers = #tpu.dot_dimension_numbers<[1], [0], [0], [1], [0, 0, 1, 1], [], []>} : vector<2x64xf32>, vector<64x256xf32>, vector<2x256xf32> -> vector<2x256xf32>
    %706 = vector.extract_strided_slice %518 {offsets = [3, 0, 0], sizes = [1, 2, 128], strides = [1, 1, 1]} : vector<8x2x256xf32> to vector<1x2x128xf32>
    %707 = vector.shape_cast %706 : vector<1x2x128xf32> to vector<2x128xf32>
    %708 = vector.extract_strided_slice %705 {offsets = [0, 0], sizes = [2, 128], strides = [1, 1]} : vector<2x256xf32> to vector<2x128xf32>
    %709 = arith.addf %707, %708 : vector<2x128xf32>
    %710 = vector.extract_strided_slice %709 {offsets = [0, 0], sizes = [2, 32], strides = [1, 1]} : vector<2x128xf32> to vector<2x32xf32>
    %711 = arith.negf %710 : vector<2x32xf32>
    %712 = math.exp %711 : vector<2x32xf32>
    %cst_101 = arith.constant 1.000000e+00 : f32
    %713 = vector.broadcast %cst_101 : f32 to vector<2x32xf32>
    %714 = arith.addf %713, %712 : vector<2x32xf32>
    %715 = arith.divf %713, %714 : vector<2x32xf32>
    %716 = vector.extract_strided_slice %709 {offsets = [0, 32], sizes = [2, 32], strides = [1, 1]} : vector<2x128xf32> to vector<2x32xf32>
    %717 = arith.negf %716 : vector<2x32xf32>
    %718 = math.exp %717 : vector<2x32xf32>
    %cst_102 = arith.constant 1.000000e+00 : f32
    %719 = vector.broadcast %cst_102 : f32 to vector<2x32xf32>
    %720 = arith.addf %719, %718 : vector<2x32xf32>
    %721 = arith.divf %719, %720 : vector<2x32xf32>
    %722 = vector.extract_strided_slice %709 {offsets = [0, 64], sizes = [2, 32], strides = [1, 1]} : vector<2x128xf32> to vector<2x32xf32>
    %723 = math.tanh %722 : vector<2x32xf32>
    %724 = vector.extract_strided_slice %709 {offsets = [0, 96], sizes = [2, 32], strides = [1, 1]} : vector<2x128xf32> to vector<2x32xf32>
    %725 = arith.negf %724 : vector<2x32xf32>
    %726 = math.exp %725 : vector<2x32xf32>
    %cst_103 = arith.constant 1.000000e+00 : f32
    %727 = vector.broadcast %cst_103 : f32 to vector<2x32xf32>
    %728 = arith.addf %727, %726 : vector<2x32xf32>
    %729 = arith.divf %727, %728 : vector<2x32xf32>
    %730 = arith.mulf %721, %672 : vector<2x32xf32>
    %731 = arith.mulf %715, %723 : vector<2x32xf32>
    %732 = arith.addf %730, %731 : vector<2x32xf32>
    %733 = math.tanh %732 : vector<2x32xf32>
    %734 = arith.mulf %729, %733 : vector<2x32xf32>
    %735 = vector.extract_strided_slice %518 {offsets = [4, 0, 128], sizes = [1, 2, 128], strides = [1, 1, 1]} : vector<8x2x256xf32> to vector<1x2x128xf32>
    %736 = vector.shape_cast %735 : vector<1x2x128xf32> to vector<2x128xf32>
    %737 = vector.extract_strided_slice %705 {offsets = [0, 128], sizes = [2, 128], strides = [1, 1]} : vector<2x256xf32> to vector<2x128xf32>
    %738 = arith.addf %736, %737 : vector<2x128xf32>
    %739 = vector.extract_strided_slice %738 {offsets = [0, 0], sizes = [2, 32], strides = [1, 1]} : vector<2x128xf32> to vector<2x32xf32>
    %740 = arith.negf %739 : vector<2x32xf32>
    %741 = math.exp %740 : vector<2x32xf32>
    %cst_104 = arith.constant 1.000000e+00 : f32
    %742 = vector.broadcast %cst_104 : f32 to vector<2x32xf32>
    %743 = arith.addf %742, %741 : vector<2x32xf32>
    %744 = arith.divf %742, %743 : vector<2x32xf32>
    %745 = vector.extract_strided_slice %738 {offsets = [0, 32], sizes = [2, 32], strides = [1, 1]} : vector<2x128xf32> to vector<2x32xf32>
    %746 = arith.negf %745 : vector<2x32xf32>
    %747 = math.exp %746 : vector<2x32xf32>
    %cst_105 = arith.constant 1.000000e+00 : f32
    %748 = vector.broadcast %cst_105 : f32 to vector<2x32xf32>
    %749 = arith.addf %748, %747 : vector<2x32xf32>
    %750 = arith.divf %748, %749 : vector<2x32xf32>
    %751 = vector.extract_strided_slice %738 {offsets = [0, 64], sizes = [2, 32], strides = [1, 1]} : vector<2x128xf32> to vector<2x32xf32>
    %752 = math.tanh %751 : vector<2x32xf32>
    %753 = vector.extract_strided_slice %738 {offsets = [0, 96], sizes = [2, 32], strides = [1, 1]} : vector<2x128xf32> to vector<2x32xf32>
    %754 = arith.negf %753 : vector<2x32xf32>
    %755 = math.exp %754 : vector<2x32xf32>
    %cst_106 = arith.constant 1.000000e+00 : f32
    %756 = vector.broadcast %cst_106 : f32 to vector<2x32xf32>
    %757 = arith.addf %756, %755 : vector<2x32xf32>
    %758 = arith.divf %756, %757 : vector<2x32xf32>
    %759 = arith.mulf %750, %701 : vector<2x32xf32>
    %760 = arith.mulf %744, %752 : vector<2x32xf32>
    %761 = arith.addf %759, %760 : vector<2x32xf32>
    %762 = math.tanh %761 : vector<2x32xf32>
    %763 = arith.mulf %758, %762 : vector<2x32xf32>
    %764 = tpu.concatenate %734, %763 in 1 : vector<2x32xf32>, vector<2x32xf32> -> vector<2x64xf32>
    %cst_107 = arith.constant dense<0.000000e+00> : vector<2x256xf32>
    %765 = tpu.matmul %764, %519, %cst_107 {dimension_numbers = #tpu.dot_dimension_numbers<[1], [0], [0], [1], [0, 0, 1, 1], [], []>} : vector<2x64xf32>, vector<64x256xf32>, vector<2x256xf32> -> vector<2x256xf32>
    %766 = vector.extract_strided_slice %518 {offsets = [4, 0, 0], sizes = [1, 2, 128], strides = [1, 1, 1]} : vector<8x2x256xf32> to vector<1x2x128xf32>
    %767 = vector.shape_cast %766 : vector<1x2x128xf32> to vector<2x128xf32>
    %768 = vector.extract_strided_slice %765 {offsets = [0, 0], sizes = [2, 128], strides = [1, 1]} : vector<2x256xf32> to vector<2x128xf32>
    %769 = arith.addf %767, %768 : vector<2x128xf32>
    %770 = vector.extract_strided_slice %769 {offsets = [0, 0], sizes = [2, 32], strides = [1, 1]} : vector<2x128xf32> to vector<2x32xf32>
    %771 = arith.negf %770 : vector<2x32xf32>
    %772 = math.exp %771 : vector<2x32xf32>
    %cst_108 = arith.constant 1.000000e+00 : f32
    %773 = vector.broadcast %cst_108 : f32 to vector<2x32xf32>
    %774 = arith.addf %773, %772 : vector<2x32xf32>
    %775 = arith.divf %773, %774 : vector<2x32xf32>
    %776 = vector.extract_strided_slice %769 {offsets = [0, 32], sizes = [2, 32], strides = [1, 1]} : vector<2x128xf32> to vector<2x32xf32>
    %777 = arith.negf %776 : vector<2x32xf32>
    %778 = math.exp %777 : vector<2x32xf32>
    %cst_109 = arith.constant 1.000000e+00 : f32
    %779 = vector.broadcast %cst_109 : f32 to vector<2x32xf32>
    %780 = arith.addf %779, %778 : vector<2x32xf32>
    %781 = arith.divf %779, %780 : vector<2x32xf32>
    %782 = vector.extract_strided_slice %769 {offsets = [0, 64], sizes = [2, 32], strides = [1, 1]} : vector<2x128xf32> to vector<2x32xf32>
    %783 = math.tanh %782 : vector<2x32xf32>
    %784 = vector.extract_strided_slice %769 {offsets = [0, 96], sizes = [2, 32], strides = [1, 1]} : vector<2x128xf32> to vector<2x32xf32>
    %785 = arith.negf %784 : vector<2x32xf32>
    %786 = math.exp %785 : vector<2x32xf32>
    %cst_110 = arith.constant 1.000000e+00 : f32
    %787 = vector.broadcast %cst_110 : f32 to vector<2x32xf32>
    %788 = arith.addf %787, %786 : vector<2x32xf32>
    %789 = arith.divf %787, %788 : vector<2x32xf32>
    %790 = arith.mulf %781, %732 : vector<2x32xf32>
    %791 = arith.mulf %775, %783 : vector<2x32xf32>
    %792 = arith.addf %790, %791 : vector<2x32xf32>
    %793 = math.tanh %792 : vector<2x32xf32>
    %794 = arith.mulf %789, %793 : vector<2x32xf32>
    %795 = vector.extract_strided_slice %518 {offsets = [3, 0, 128], sizes = [1, 2, 128], strides = [1, 1, 1]} : vector<8x2x256xf32> to vector<1x2x128xf32>
    %796 = vector.shape_cast %795 : vector<1x2x128xf32> to vector<2x128xf32>
    %797 = vector.extract_strided_slice %765 {offsets = [0, 128], sizes = [2, 128], strides = [1, 1]} : vector<2x256xf32> to vector<2x128xf32>
    %798 = arith.addf %796, %797 : vector<2x128xf32>
    %799 = vector.extract_strided_slice %798 {offsets = [0, 0], sizes = [2, 32], strides = [1, 1]} : vector<2x128xf32> to vector<2x32xf32>
    %800 = arith.negf %799 : vector<2x32xf32>
    %801 = math.exp %800 : vector<2x32xf32>
    %cst_111 = arith.constant 1.000000e+00 : f32
    %802 = vector.broadcast %cst_111 : f32 to vector<2x32xf32>
    %803 = arith.addf %802, %801 : vector<2x32xf32>
    %804 = arith.divf %802, %803 : vector<2x32xf32>
    %805 = vector.extract_strided_slice %798 {offsets = [0, 32], sizes = [2, 32], strides = [1, 1]} : vector<2x128xf32> to vector<2x32xf32>
    %806 = arith.negf %805 : vector<2x32xf32>
    %807 = math.exp %806 : vector<2x32xf32>
    %cst_112 = arith.constant 1.000000e+00 : f32
    %808 = vector.broadcast %cst_112 : f32 to vector<2x32xf32>
    %809 = arith.addf %808, %807 : vector<2x32xf32>
    %810 = arith.divf %808, %809 : vector<2x32xf32>
    %811 = vector.extract_strided_slice %798 {offsets = [0, 64], sizes = [2, 32], strides = [1, 1]} : vector<2x128xf32> to vector<2x32xf32>
    %812 = math.tanh %811 : vector<2x32xf32>
    %813 = vector.extract_strided_slice %798 {offsets = [0, 96], sizes = [2, 32], strides = [1, 1]} : vector<2x128xf32> to vector<2x32xf32>
    %814 = arith.negf %813 : vector<2x32xf32>
    %815 = math.exp %814 : vector<2x32xf32>
    %cst_113 = arith.constant 1.000000e+00 : f32
    %816 = vector.broadcast %cst_113 : f32 to vector<2x32xf32>
    %817 = arith.addf %816, %815 : vector<2x32xf32>
    %818 = arith.divf %816, %817 : vector<2x32xf32>
    %819 = arith.mulf %810, %761 : vector<2x32xf32>
    %820 = arith.mulf %804, %812 : vector<2x32xf32>
    %821 = arith.addf %819, %820 : vector<2x32xf32>
    %822 = math.tanh %821 : vector<2x32xf32>
    %823 = arith.mulf %818, %822 : vector<2x32xf32>
    %824 = tpu.concatenate %794, %823 in 1 : vector<2x32xf32>, vector<2x32xf32> -> vector<2x64xf32>
    %cst_114 = arith.constant dense<0.000000e+00> : vector<2x256xf32>
    %825 = tpu.matmul %824, %519, %cst_114 {dimension_numbers = #tpu.dot_dimension_numbers<[1], [0], [0], [1], [0, 0, 1, 1], [], []>} : vector<2x64xf32>, vector<64x256xf32>, vector<2x256xf32> -> vector<2x256xf32>
    %826 = vector.extract_strided_slice %518 {offsets = [5, 0, 0], sizes = [1, 2, 128], strides = [1, 1, 1]} : vector<8x2x256xf32> to vector<1x2x128xf32>
    %827 = vector.shape_cast %826 : vector<1x2x128xf32> to vector<2x128xf32>
    %828 = vector.extract_strided_slice %825 {offsets = [0, 0], sizes = [2, 128], strides = [1, 1]} : vector<2x256xf32> to vector<2x128xf32>
    %829 = arith.addf %827, %828 : vector<2x128xf32>
    %830 = vector.extract_strided_slice %829 {offsets = [0, 0], sizes = [2, 32], strides = [1, 1]} : vector<2x128xf32> to vector<2x32xf32>
    %831 = arith.negf %830 : vector<2x32xf32>
    %832 = math.exp %831 : vector<2x32xf32>
    %cst_115 = arith.constant 1.000000e+00 : f32
    %833 = vector.broadcast %cst_115 : f32 to vector<2x32xf32>
    %834 = arith.addf %833, %832 : vector<2x32xf32>
    %835 = arith.divf %833, %834 : vector<2x32xf32>
    %836 = vector.extract_strided_slice %829 {offsets = [0, 32], sizes = [2, 32], strides = [1, 1]} : vector<2x128xf32> to vector<2x32xf32>
    %837 = arith.negf %836 : vector<2x32xf32>
    %838 = math.exp %837 : vector<2x32xf32>
    %cst_116 = arith.constant 1.000000e+00 : f32
    %839 = vector.broadcast %cst_116 : f32 to vector<2x32xf32>
    %840 = arith.addf %839, %838 : vector<2x32xf32>
    %841 = arith.divf %839, %840 : vector<2x32xf32>
    %842 = vector.extract_strided_slice %829 {offsets = [0, 64], sizes = [2, 32], strides = [1, 1]} : vector<2x128xf32> to vector<2x32xf32>
    %843 = math.tanh %842 : vector<2x32xf32>
    %844 = vector.extract_strided_slice %829 {offsets = [0, 96], sizes = [2, 32], strides = [1, 1]} : vector<2x128xf32> to vector<2x32xf32>
    %845 = arith.negf %844 : vector<2x32xf32>
    %846 = math.exp %845 : vector<2x32xf32>
    %cst_117 = arith.constant 1.000000e+00 : f32
    %847 = vector.broadcast %cst_117 : f32 to vector<2x32xf32>
    %848 = arith.addf %847, %846 : vector<2x32xf32>
    %849 = arith.divf %847, %848 : vector<2x32xf32>
    %850 = arith.mulf %841, %792 : vector<2x32xf32>
    %851 = arith.mulf %835, %843 : vector<2x32xf32>
    %852 = arith.addf %850, %851 : vector<2x32xf32>
    %853 = math.tanh %852 : vector<2x32xf32>
    %854 = arith.mulf %849, %853 : vector<2x32xf32>
    %855 = vector.extract_strided_slice %518 {offsets = [2, 0, 128], sizes = [1, 2, 128], strides = [1, 1, 1]} : vector<8x2x256xf32> to vector<1x2x128xf32>
    %856 = vector.shape_cast %855 : vector<1x2x128xf32> to vector<2x128xf32>
    %857 = vector.extract_strided_slice %825 {offsets = [0, 128], sizes = [2, 128], strides = [1, 1]} : vector<2x256xf32> to vector<2x128xf32>
    %858 = arith.addf %856, %857 : vector<2x128xf32>
    %859 = vector.extract_strided_slice %858 {offsets = [0, 0], sizes = [2, 32], strides = [1, 1]} : vector<2x128xf32> to vector<2x32xf32>
    %860 = arith.negf %859 : vector<2x32xf32>
    %861 = math.exp %860 : vector<2x32xf32>
    %cst_118 = arith.constant 1.000000e+00 : f32
    %862 = vector.broadcast %cst_118 : f32 to vector<2x32xf32>
    %863 = arith.addf %862, %861 : vector<2x32xf32>
    %864 = arith.divf %862, %863 : vector<2x32xf32>
    %865 = vector.extract_strided_slice %858 {offsets = [0, 32], sizes = [2, 32], strides = [1, 1]} : vector<2x128xf32> to vector<2x32xf32>
    %866 = arith.negf %865 : vector<2x32xf32>
    %867 = math.exp %866 : vector<2x32xf32>
    %cst_119 = arith.constant 1.000000e+00 : f32
    %868 = vector.broadcast %cst_119 : f32 to vector<2x32xf32>
    %869 = arith.addf %868, %867 : vector<2x32xf32>
    %870 = arith.divf %868, %869 : vector<2x32xf32>
    %871 = vector.extract_strided_slice %858 {offsets = [0, 64], sizes = [2, 32], strides = [1, 1]} : vector<2x128xf32> to vector<2x32xf32>
    %872 = math.tanh %871 : vector<2x32xf32>
    %873 = vector.extract_strided_slice %858 {offsets = [0, 96], sizes = [2, 32], strides = [1, 1]} : vector<2x128xf32> to vector<2x32xf32>
    %874 = arith.negf %873 : vector<2x32xf32>
    %875 = math.exp %874 : vector<2x32xf32>
    %cst_120 = arith.constant 1.000000e+00 : f32
    %876 = vector.broadcast %cst_120 : f32 to vector<2x32xf32>
    %877 = arith.addf %876, %875 : vector<2x32xf32>
    %878 = arith.divf %876, %877 : vector<2x32xf32>
    %879 = arith.mulf %870, %821 : vector<2x32xf32>
    %880 = arith.mulf %864, %872 : vector<2x32xf32>
    %881 = arith.addf %879, %880 : vector<2x32xf32>
    %882 = math.tanh %881 : vector<2x32xf32>
    %883 = arith.mulf %878, %882 : vector<2x32xf32>
    %884 = tpu.concatenate %854, %883 in 1 : vector<2x32xf32>, vector<2x32xf32> -> vector<2x64xf32>
    %cst_121 = arith.constant dense<0.000000e+00> : vector<2x256xf32>
    %885 = tpu.matmul %884, %519, %cst_121 {dimension_numbers = #tpu.dot_dimension_numbers<[1], [0], [0], [1], [0, 0, 1, 1], [], []>} : vector<2x64xf32>, vector<64x256xf32>, vector<2x256xf32> -> vector<2x256xf32>
    %886 = vector.extract_strided_slice %518 {offsets = [6, 0, 0], sizes = [1, 2, 128], strides = [1, 1, 1]} : vector<8x2x256xf32> to vector<1x2x128xf32>
    %887 = vector.shape_cast %886 : vector<1x2x128xf32> to vector<2x128xf32>
    %888 = vector.extract_strided_slice %885 {offsets = [0, 0], sizes = [2, 128], strides = [1, 1]} : vector<2x256xf32> to vector<2x128xf32>
    %889 = arith.addf %887, %888 : vector<2x128xf32>
    %890 = vector.extract_strided_slice %889 {offsets = [0, 0], sizes = [2, 32], strides = [1, 1]} : vector<2x128xf32> to vector<2x32xf32>
    %891 = arith.negf %890 : vector<2x32xf32>
    %892 = math.exp %891 : vector<2x32xf32>
    %cst_122 = arith.constant 1.000000e+00 : f32
    %893 = vector.broadcast %cst_122 : f32 to vector<2x32xf32>
    %894 = arith.addf %893, %892 : vector<2x32xf32>
    %895 = arith.divf %893, %894 : vector<2x32xf32>
    %896 = vector.extract_strided_slice %889 {offsets = [0, 32], sizes = [2, 32], strides = [1, 1]} : vector<2x128xf32> to vector<2x32xf32>
    %897 = arith.negf %896 : vector<2x32xf32>
    %898 = math.exp %897 : vector<2x32xf32>
    %cst_123 = arith.constant 1.000000e+00 : f32
    %899 = vector.broadcast %cst_123 : f32 to vector<2x32xf32>
    %900 = arith.addf %899, %898 : vector<2x32xf32>
    %901 = arith.divf %899, %900 : vector<2x32xf32>
    %902 = vector.extract_strided_slice %889 {offsets = [0, 64], sizes = [2, 32], strides = [1, 1]} : vector<2x128xf32> to vector<2x32xf32>
    %903 = math.tanh %902 : vector<2x32xf32>
    %904 = vector.extract_strided_slice %889 {offsets = [0, 96], sizes = [2, 32], strides = [1, 1]} : vector<2x128xf32> to vector<2x32xf32>
    %905 = arith.negf %904 : vector<2x32xf32>
    %906 = math.exp %905 : vector<2x32xf32>
    %cst_124 = arith.constant 1.000000e+00 : f32
    %907 = vector.broadcast %cst_124 : f32 to vector<2x32xf32>
    %908 = arith.addf %907, %906 : vector<2x32xf32>
    %909 = arith.divf %907, %908 : vector<2x32xf32>
    %910 = arith.mulf %901, %852 : vector<2x32xf32>
    %911 = arith.mulf %895, %903 : vector<2x32xf32>
    %912 = arith.addf %910, %911 : vector<2x32xf32>
    %913 = math.tanh %912 : vector<2x32xf32>
    %914 = arith.mulf %909, %913 : vector<2x32xf32>
    %915 = vector.extract_strided_slice %518 {offsets = [1, 0, 128], sizes = [1, 2, 128], strides = [1, 1, 1]} : vector<8x2x256xf32> to vector<1x2x128xf32>
    %916 = vector.shape_cast %915 : vector<1x2x128xf32> to vector<2x128xf32>
    %917 = vector.extract_strided_slice %885 {offsets = [0, 128], sizes = [2, 128], strides = [1, 1]} : vector<2x256xf32> to vector<2x128xf32>
    %918 = arith.addf %916, %917 : vector<2x128xf32>
    %919 = vector.extract_strided_slice %918 {offsets = [0, 0], sizes = [2, 32], strides = [1, 1]} : vector<2x128xf32> to vector<2x32xf32>
    %920 = arith.negf %919 : vector<2x32xf32>
    %921 = math.exp %920 : vector<2x32xf32>
    %cst_125 = arith.constant 1.000000e+00 : f32
    %922 = vector.broadcast %cst_125 : f32 to vector<2x32xf32>
    %923 = arith.addf %922, %921 : vector<2x32xf32>
    %924 = arith.divf %922, %923 : vector<2x32xf32>
    %925 = vector.extract_strided_slice %918 {offsets = [0, 32], sizes = [2, 32], strides = [1, 1]} : vector<2x128xf32> to vector<2x32xf32>
    %926 = arith.negf %925 : vector<2x32xf32>
    %927 = math.exp %926 : vector<2x32xf32>
    %cst_126 = arith.constant 1.000000e+00 : f32
    %928 = vector.broadcast %cst_126 : f32 to vector<2x32xf32>
    %929 = arith.addf %928, %927 : vector<2x32xf32>
    %930 = arith.divf %928, %929 : vector<2x32xf32>
    %931 = vector.extract_strided_slice %918 {offsets = [0, 64], sizes = [2, 32], strides = [1, 1]} : vector<2x128xf32> to vector<2x32xf32>
    %932 = math.tanh %931 : vector<2x32xf32>
    %933 = vector.extract_strided_slice %918 {offsets = [0, 96], sizes = [2, 32], strides = [1, 1]} : vector<2x128xf32> to vector<2x32xf32>
    %934 = arith.negf %933 : vector<2x32xf32>
    %935 = math.exp %934 : vector<2x32xf32>
    %cst_127 = arith.constant 1.000000e+00 : f32
    %936 = vector.broadcast %cst_127 : f32 to vector<2x32xf32>
    %937 = arith.addf %936, %935 : vector<2x32xf32>
    %938 = arith.divf %936, %937 : vector<2x32xf32>
    %939 = arith.mulf %930, %881 : vector<2x32xf32>
    %940 = arith.mulf %924, %932 : vector<2x32xf32>
    %941 = arith.addf %939, %940 : vector<2x32xf32>
    %942 = math.tanh %941 : vector<2x32xf32>
    %943 = arith.mulf %938, %942 : vector<2x32xf32>
    %944 = tpu.concatenate %914, %943 in 1 : vector<2x32xf32>, vector<2x32xf32> -> vector<2x64xf32>
    %cst_128 = arith.constant dense<0.000000e+00> : vector<2x256xf32>
    %945 = tpu.matmul %944, %519, %cst_128 {dimension_numbers = #tpu.dot_dimension_numbers<[1], [0], [0], [1], [0, 0, 1, 1], [], []>} : vector<2x64xf32>, vector<64x256xf32>, vector<2x256xf32> -> vector<2x256xf32>
    %946 = vector.extract_strided_slice %518 {offsets = [7, 0, 0], sizes = [1, 2, 128], strides = [1, 1, 1]} : vector<8x2x256xf32> to vector<1x2x128xf32>
    %947 = vector.shape_cast %946 : vector<1x2x128xf32> to vector<2x128xf32>
    %948 = vector.extract_strided_slice %945 {offsets = [0, 0], sizes = [2, 128], strides = [1, 1]} : vector<2x256xf32> to vector<2x128xf32>
    %949 = arith.addf %947, %948 : vector<2x128xf32>
    %950 = vector.extract_strided_slice %949 {offsets = [0, 0], sizes = [2, 32], strides = [1, 1]} : vector<2x128xf32> to vector<2x32xf32>
    %951 = arith.negf %950 : vector<2x32xf32>
    %952 = math.exp %951 : vector<2x32xf32>
    %cst_129 = arith.constant 1.000000e+00 : f32
    %953 = vector.broadcast %cst_129 : f32 to vector<2x32xf32>
    %954 = arith.addf %953, %952 : vector<2x32xf32>
    %955 = arith.divf %953, %954 : vector<2x32xf32>
    %956 = vector.extract_strided_slice %949 {offsets = [0, 32], sizes = [2, 32], strides = [1, 1]} : vector<2x128xf32> to vector<2x32xf32>
    %957 = arith.negf %956 : vector<2x32xf32>
    %958 = math.exp %957 : vector<2x32xf32>
    %cst_130 = arith.constant 1.000000e+00 : f32
    %959 = vector.broadcast %cst_130 : f32 to vector<2x32xf32>
    %960 = arith.addf %959, %958 : vector<2x32xf32>
    %961 = arith.divf %959, %960 : vector<2x32xf32>
    %962 = vector.extract_strided_slice %949 {offsets = [0, 64], sizes = [2, 32], strides = [1, 1]} : vector<2x128xf32> to vector<2x32xf32>
    %963 = math.tanh %962 : vector<2x32xf32>
    %964 = vector.extract_strided_slice %949 {offsets = [0, 96], sizes = [2, 32], strides = [1, 1]} : vector<2x128xf32> to vector<2x32xf32>
    %965 = arith.negf %964 : vector<2x32xf32>
    %966 = math.exp %965 : vector<2x32xf32>
    %cst_131 = arith.constant 1.000000e+00 : f32
    %967 = vector.broadcast %cst_131 : f32 to vector<2x32xf32>
    %968 = arith.addf %967, %966 : vector<2x32xf32>
    %969 = arith.divf %967, %968 : vector<2x32xf32>
    %970 = arith.mulf %961, %912 : vector<2x32xf32>
    %971 = arith.mulf %955, %963 : vector<2x32xf32>
    %972 = arith.addf %970, %971 : vector<2x32xf32>
    %973 = math.tanh %972 : vector<2x32xf32>
    %974 = arith.mulf %969, %973 : vector<2x32xf32>
    %975 = vector.extract_strided_slice %518 {offsets = [0, 0, 128], sizes = [1, 2, 128], strides = [1, 1, 1]} : vector<8x2x256xf32> to vector<1x2x128xf32>
    %976 = vector.shape_cast %975 : vector<1x2x128xf32> to vector<2x128xf32>
    %977 = vector.extract_strided_slice %945 {offsets = [0, 128], sizes = [2, 128], strides = [1, 1]} : vector<2x256xf32> to vector<2x128xf32>
    %978 = arith.addf %976, %977 : vector<2x128xf32>
    %979 = vector.extract_strided_slice %978 {offsets = [0, 0], sizes = [2, 32], strides = [1, 1]} : vector<2x128xf32> to vector<2x32xf32>
    %980 = arith.negf %979 : vector<2x32xf32>
    %981 = math.exp %980 : vector<2x32xf32>
    %cst_132 = arith.constant 1.000000e+00 : f32
    %982 = vector.broadcast %cst_132 : f32 to vector<2x32xf32>
    %983 = arith.addf %982, %981 : vector<2x32xf32>
    %984 = arith.divf %982, %983 : vector<2x32xf32>
    %985 = vector.extract_strided_slice %978 {offsets = [0, 32], sizes = [2, 32], strides = [1, 1]} : vector<2x128xf32> to vector<2x32xf32>
    %986 = arith.negf %985 : vector<2x32xf32>
    %987 = math.exp %986 : vector<2x32xf32>
    %cst_133 = arith.constant 1.000000e+00 : f32
    %988 = vector.broadcast %cst_133 : f32 to vector<2x32xf32>
    %989 = arith.addf %988, %987 : vector<2x32xf32>
    %990 = arith.divf %988, %989 : vector<2x32xf32>
    %991 = vector.extract_strided_slice %978 {offsets = [0, 64], sizes = [2, 32], strides = [1, 1]} : vector<2x128xf32> to vector<2x32xf32>
    %992 = math.tanh %991 : vector<2x32xf32>
    %993 = vector.extract_strided_slice %978 {offsets = [0, 96], sizes = [2, 32], strides = [1, 1]} : vector<2x128xf32> to vector<2x32xf32>
    %994 = arith.negf %993 : vector<2x32xf32>
    %995 = math.exp %994 : vector<2x32xf32>
    %cst_134 = arith.constant 1.000000e+00 : f32
    %996 = vector.broadcast %cst_134 : f32 to vector<2x32xf32>
    %997 = arith.addf %996, %995 : vector<2x32xf32>
    %998 = arith.divf %996, %997 : vector<2x32xf32>
    %999 = arith.mulf %990, %941 : vector<2x32xf32>
    %1000 = arith.mulf %984, %992 : vector<2x32xf32>
    %1001 = arith.addf %999, %1000 : vector<2x32xf32>
    %1002 = math.tanh %1001 : vector<2x32xf32>
    %1003 = arith.mulf %998, %1002 : vector<2x32xf32>
    %1004 = vector.shape_cast %554 : vector<2x32xf32> to vector<1x2x32xf32>
    %1005 = vector.shape_cast %614 : vector<2x32xf32> to vector<1x2x32xf32>
    %1006 = vector.shape_cast %674 : vector<2x32xf32> to vector<1x2x32xf32>
    %1007 = vector.shape_cast %734 : vector<2x32xf32> to vector<1x2x32xf32>
    %1008 = vector.shape_cast %794 : vector<2x32xf32> to vector<1x2x32xf32>
    %1009 = vector.shape_cast %854 : vector<2x32xf32> to vector<1x2x32xf32>
    %1010 = vector.shape_cast %914 : vector<2x32xf32> to vector<1x2x32xf32>
    %1011 = vector.shape_cast %974 : vector<2x32xf32> to vector<1x2x32xf32>
    %1012 = tpu.concatenate %1004, %1005, %1006, %1007, %1008, %1009, %1010, %1011 in 0 : vector<1x2x32xf32>, vector<1x2x32xf32>, vector<1x2x32xf32>, vector<1x2x32xf32>, vector<1x2x32xf32>, vector<1x2x32xf32>, vector<1x2x32xf32>, vector<1x2x32xf32> -> vector<8x2x32xf32>
    %1013 = vector.shape_cast %1003 : vector<2x32xf32> to vector<1x2x32xf32>
    %1014 = vector.shape_cast %943 : vector<2x32xf32> to vector<1x2x32xf32>
    %1015 = vector.shape_cast %883 : vector<2x32xf32> to vector<1x2x32xf32>
    %1016 = vector.shape_cast %823 : vector<2x32xf32> to vector<1x2x32xf32>
    %1017 = vector.shape_cast %763 : vector<2x32xf32> to vector<1x2x32xf32>
    %1018 = vector.shape_cast %703 : vector<2x32xf32> to vector<1x2x32xf32>
    %1019 = vector.shape_cast %643 : vector<2x32xf32> to vector<1x2x32xf32>
    %1020 = vector.shape_cast %583 : vector<2x32xf32> to vector<1x2x32xf32>
    %1021 = tpu.concatenate %1013, %1014, %1015, %1016, %1017, %1018, %1019, %1020 in 0 : vector<1x2x32xf32>, vector<1x2x32xf32>, vector<1x2x32xf32>, vector<1x2x32xf32>, vector<1x2x32xf32>, vector<1x2x32xf32>, vector<1x2x32xf32>, vector<1x2x32xf32> -> vector<8x2x32xf32>
    %1022 = tpu.concatenate %1012, %1021 in 2 : vector<8x2x32xf32>, vector<8x2x32xf32> -> vector<8x2x64xf32>
    %c0_135 = arith.constant 0 : index
    %c0_136 = arith.constant 0 : index
    %c0_137 = arith.constant 0 : index
    %1023 = vector.load %arg17[%c0_135, %c0_136, %c0_137] : memref<8x2x64xf32, #tpu.memory_space<vmem>>, vector<8x2x64xf32>
    tpu.vector_store %arg17[%c0_135, %c0_136, %c0_137], %1022 {strides = array<i32>} : memref<8x2x64xf32, #tpu.memory_space<vmem>>, vector<8x2x64xf32>,
    %c0_138 = arith.constant 0 : index
    %c0_139 = arith.constant 0 : index
    %1024 = vector.load %arg2[%c0_138, %c0_139] : memref<2x8xf32, #tpu.memory_space<vmem>>, vector<2x8xf32>
    %1025 = vector.shape_cast %1022 : vector<8x2x64xf32> to vector<16x64xf32>
    %c0_140 = arith.constant 0 : index
    %c0_141 = arith.constant 0 : index
    %1026 = vector.load %arg9[%c0_140, %c0_141] : memref<64x64xf32, #tpu.memory_space<vmem>>, vector<64x64xf32>
    %cst_142 = arith.constant dense<0.000000e+00> : vector<16x64xf32>
    %1027 = tpu.matmul %1025, %1026, %cst_142 {dimension_numbers = #tpu.dot_dimension_numbers<[1], [0], [0], [1], [0, 0, 1, 1], [], []>} : vector<16x64xf32>, vector<64x64xf32>, vector<16x64xf32> -> vector<16x64xf32>
    %c0_143 = arith.constant 0 : index
    %c0_144 = arith.constant 0 : index
    %1028 = vector.load %arg10[%c0_143, %c0_144] : memref<1x64xf32, #tpu.memory_space<vmem>>, vector<1x64xf32>
    %1029 = vector.broadcast %1028 : vector<1x64xf32> to vector<16x64xf32>
    %1030 = arith.addf %1027, %1029 : vector<16x64xf32>
    %1031 = vector.shape_cast %1030 : vector<16x64xf32> to vector<8x2x64xf32>
    %1032 = vector.extract_strided_slice %1022 {offsets = [0, 0, 0], sizes = [8, 1, 64], strides = [1, 1, 1]} : vector<8x2x64xf32> to vector<8x1x64xf32>
    %1033 = vector.shape_cast %1032 : vector<8x1x64xf32> to vector<8x64xf32>
    %1034 = vector.extract_strided_slice %1031 {offsets = [0, 0, 0], sizes = [8, 1, 64], strides = [1, 1, 1]} : vector<8x2x64xf32> to vector<8x1x64xf32>
    %1035 = vector.shape_cast %1034 : vector<8x1x64xf32> to vector<8x64xf32>
    %1036 = vector.extract_strided_slice %1024 {offsets = [0, 0], sizes = [1, 8], strides = [1, 1]} : vector<2x8xf32> to vector<1x8xf32>
    %1037 = vector.shape_cast %1035 : vector<8x64xf32> to vector<8x1x64xf32>
    %1038 = vector.shape_cast %1033 : vector<8x64xf32> to vector<1x8x64xf32>
    %1039 = vector.broadcast %1037 : vector<8x1x64xf32> to vector<8x8x64xf32>
    %1040 = vector.broadcast %1038 : vector<1x8x64xf32> to vector<8x8x64xf32>
    %1041 = arith.mulf %1039, %1040 : vector<8x8x64xf32>
    %cst_145 = arith.constant dense<0.000000e+00> : vector<8x8xf32>
    %1042 = vector.multi_reduction <add>, %1041, %cst_145 [2] : vector<8x8x64xf32> to vector<8x8xf32>
    %1043 = vector.broadcast %1036 : vector<1x8xf32> to vector<8x8xf32>
    %1044 = arith.mulf %1042, %1043 : vector<8x8xf32>
    %1045 = vector.broadcast %1036 : vector<1x8xf32> to vector<8x8xf32>
    %1046 = arith.mulf %1044, %1045 : vector<8x8xf32>
    %1047 = math.tanh %1046 : vector<8x8xf32>
    %cst_146 = arith.constant dense<0xFF800000> : vector<8xf32>
    %1048 = vector.multi_reduction <maximumf>, %1047, %cst_146 [1] : vector<8x8xf32> to vector<8xf32>
    %1049 = vector.shape_cast %1048 : vector<8xf32> to vector<8x1xf32>
    %1050 = vector.broadcast %1049 : vector<8x1xf32> to vector<8x8xf32>
    %1051 = arith.subf %1047, %1050 : vector<8x8xf32>
    %1052 = math.exp %1051 : vector<8x8xf32>
    %cst_147 = arith.constant dense<0.000000e+00> : vector<8xf32>
    %1053 = vector.multi_reduction <add>, %1052, %cst_147 [1] : vector<8x8xf32> to vector<8xf32>
    %1054 = vector.shape_cast %1053 : vector<8xf32> to vector<8x1xf32>
    %1055 = tpu.reciprocal %1054 {approx = true} : vector<8x1xf32> -> vector<8x1xf32>
    %1056 = vector.broadcast %1055 : vector<8x1xf32> to vector<8x8xf32>
    %1057 = arith.mulf %1052, %1056 : vector<8x8xf32>
    %1058 = vector.broadcast %1036 : vector<1x8xf32> to vector<8x8xf32>
    %1059 = arith.mulf %1057, %1058 : vector<8x8xf32>
    %cst_148 = arith.constant dense<0.000000e+00> : vector<8xf32>
    %1060 = vector.multi_reduction <add>, %1059, %cst_148 [1] : vector<8x8xf32> to vector<8xf32>
    %1061 = vector.shape_cast %1060 : vector<8xf32> to vector<8x1xf32>
    %cst_149 = arith.constant 0.000000e+00 : f32
    %1062 = vector.broadcast %cst_149 : f32 to vector<8x1xf32>
    %1063 = arith.cmpf ogt, %1061, %1062 : vector<8x1xf32>
    %cst_150 = arith.constant 1.000000e+00 : f32
    %1064 = vector.broadcast %cst_150 : f32 to vector<8x1xf32>
    %1065 = arith.select %1063, %1061, %1064 : vector<8x1xi1>, vector<8x1xf32>
    %1066 = tpu.reciprocal %1065 {approx = true} : vector<8x1xf32> -> vector<8x1xf32>
    %1067 = vector.broadcast %1066 : vector<8x1xf32> to vector<8x8xf32>
    %1068 = arith.mulf %1059, %1067 : vector<8x8xf32>
    %cst_151 = arith.constant dense<0.000000e+00> : vector<8x64xf32>
    %1069 = tpu.matmul %1068, %1033, %cst_151 {dimension_numbers = #tpu.dot_dimension_numbers<[1], [0], [0], [1], [0, 0, 1, 1], [], []>} : vector<8x8xf32>, vector<8x64xf32>, vector<8x64xf32> -> vector<8x64xf32>
    %1070 = vector.extract_strided_slice %1022 {offsets = [0, 1, 0], sizes = [8, 1, 64], strides = [1, 1, 1]} : vector<8x2x64xf32> to vector<8x1x64xf32>
    %1071 = vector.shape_cast %1070 : vector<8x1x64xf32> to vector<8x64xf32>
    %1072 = vector.extract_strided_slice %1031 {offsets = [0, 1, 0], sizes = [8, 1, 64], strides = [1, 1, 1]} : vector<8x2x64xf32> to vector<8x1x64xf32>
    %1073 = vector.shape_cast %1072 : vector<8x1x64xf32> to vector<8x64xf32>
    %1074 = vector.extract_strided_slice %1024 {offsets = [1, 0], sizes = [1, 8], strides = [1, 1]} : vector<2x8xf32> to vector<1x8xf32>
    %1075 = vector.shape_cast %1073 : vector<8x64xf32> to vector<8x1x64xf32>
    %1076 = vector.shape_cast %1071 : vector<8x64xf32> to vector<1x8x64xf32>
    %1077 = vector.broadcast %1075 : vector<8x1x64xf32> to vector<8x8x64xf32>
    %1078 = vector.broadcast %1076 : vector<1x8x64xf32> to vector<8x8x64xf32>
    %1079 = arith.mulf %1077, %1078 : vector<8x8x64xf32>
    %cst_152 = arith.constant dense<0.000000e+00> : vector<8x8xf32>
    %1080 = vector.multi_reduction <add>, %1079, %cst_152 [2] : vector<8x8x64xf32> to vector<8x8xf32>
    %1081 = vector.broadcast %1074 : vector<1x8xf32> to vector<8x8xf32>
    %1082 = arith.mulf %1080, %1081 : vector<8x8xf32>
    %1083 = vector.broadcast %1074 : vector<1x8xf32> to vector<8x8xf32>
    %1084 = arith.mulf %1082, %1083 : vector<8x8xf32>
    %1085 = math.tanh %1084 : vector<8x8xf32>
    %cst_153 = arith.constant dense<0xFF800000> : vector<8xf32>
    %1086 = vector.multi_reduction <maximumf>, %1085, %cst_153 [1] : vector<8x8xf32> to vector<8xf32>
    %1087 = vector.shape_cast %1086 : vector<8xf32> to vector<8x1xf32>
    %1088 = vector.broadcast %1087 : vector<8x1xf32> to vector<8x8xf32>
    %1089 = arith.subf %1085, %1088 : vector<8x8xf32>
    %1090 = math.exp %1089 : vector<8x8xf32>
    %cst_154 = arith.constant dense<0.000000e+00> : vector<8xf32>
    %1091 = vector.multi_reduction <add>, %1090, %cst_154 [1] : vector<8x8xf32> to vector<8xf32>
    %1092 = vector.shape_cast %1091 : vector<8xf32> to vector<8x1xf32>
    %1093 = tpu.reciprocal %1092 {approx = true} : vector<8x1xf32> -> vector<8x1xf32>
    %1094 = vector.broadcast %1093 : vector<8x1xf32> to vector<8x8xf32>
    %1095 = arith.mulf %1090, %1094 : vector<8x8xf32>
    %1096 = vector.broadcast %1074 : vector<1x8xf32> to vector<8x8xf32>
    %1097 = arith.mulf %1095, %1096 : vector<8x8xf32>
    %cst_155 = arith.constant dense<0.000000e+00> : vector<8xf32>
    %1098 = vector.multi_reduction <add>, %1097, %cst_155 [1] : vector<8x8xf32> to vector<8xf32>
    %1099 = vector.shape_cast %1098 : vector<8xf32> to vector<8x1xf32>
    %cst_156 = arith.constant 0.000000e+00 : f32
    %1100 = vector.broadcast %cst_156 : f32 to vector<8x1xf32>
    %1101 = arith.cmpf ogt, %1099, %1100 : vector<8x1xf32>
    %cst_157 = arith.constant 1.000000e+00 : f32
    %1102 = vector.broadcast %cst_157 : f32 to vector<8x1xf32>
    %1103 = arith.select %1101, %1099, %1102 : vector<8x1xi1>, vector<8x1xf32>
    %1104 = tpu.reciprocal %1103 {approx = true} : vector<8x1xf32> -> vector<8x1xf32>
    %1105 = vector.broadcast %1104 : vector<8x1xf32> to vector<8x8xf32>
    %1106 = arith.mulf %1097, %1105 : vector<8x8xf32>
    %cst_158 = arith.constant dense<0.000000e+00> : vector<8x64xf32>
    %1107 = tpu.matmul %1106, %1071, %cst_158 {dimension_numbers = #tpu.dot_dimension_numbers<[1], [0], [0], [1], [0, 0, 1, 1], [], []>} : vector<8x8xf32>, vector<8x64xf32>, vector<8x64xf32> -> vector<8x64xf32>
    %1108 = vector.shape_cast %1068 : vector<8x8xf32> to vector<8x1x8xf32>
    %1109 = vector.shape_cast %1106 : vector<8x8xf32> to vector<8x1x8xf32>
    %1110 = tpu.concatenate %1108, %1109 in 1 : vector<8x1x8xf32>, vector<8x1x8xf32> -> vector<8x2x8xf32>
    %c0_159 = arith.constant 0 : index
    %c0_160 = arith.constant 0 : index
    %c0_161 = arith.constant 0 : index
    %1111 = vector.load %arg16[%c0_159, %c0_160, %c0_161] : memref<8x2x8xf32, #tpu.memory_space<vmem>>, vector<8x2x8xf32>
    tpu.vector_store %arg16[%c0_159, %c0_160, %c0_161], %1110 {strides = array<i32>} : memref<8x2x8xf32, #tpu.memory_space<vmem>>, vector<8x2x8xf32>,
    %1112 = vector.shape_cast %1069 : vector<8x64xf32> to vector<8x1x64xf32>
    %1113 = vector.shape_cast %1107 : vector<8x64xf32> to vector<8x1x64xf32>
    %1114 = tpu.concatenate %1112, %1113 in 1 : vector<8x1x64xf32>, vector<8x1x64xf32> -> vector<8x2x64xf32>
    %1115 = vector.shape_cast %1114 : vector<8x2x64xf32> to vector<16x64xf32>
    %c0_162 = arith.constant 0 : index
    %c0_163 = arith.constant 0 : index
    %1116 = vector.load %arg11[%c0_162, %c0_163] : memref<64x32xf32, #tpu.memory_space<vmem>>, vector<64x32xf32>
    %cst_164 = arith.constant dense<0.000000e+00> : vector<16x32xf32>
    %1117 = tpu.matmul %1115, %1116, %cst_164 {dimension_numbers = #tpu.dot_dimension_numbers<[1], [0], [0], [1], [0, 0, 1, 1], [], []>} : vector<16x64xf32>, vector<64x32xf32>, vector<16x32xf32> -> vector<16x32xf32>
    %c0_165 = arith.constant 0 : index
    %c0_166 = arith.constant 0 : index
    %1118 = vector.load %arg12[%c0_165, %c0_166] : memref<1x32xf32, #tpu.memory_space<vmem>>, vector<1x32xf32>
    %1119 = vector.broadcast %1118 : vector<1x32xf32> to vector<16x32xf32>
    %1120 = arith.addf %1117, %1119 : vector<16x32xf32>
    %cst_167 = arith.constant 0.000000e+00 : f32
    %1121 = vector.broadcast %cst_167 : f32 to vector<16x32xf32>
    %1122 = arith.maximumf %1120, %1121 : vector<16x32xf32>
    %c0_168 = arith.constant 0 : index
    %c0_169 = arith.constant 0 : index
    %1123 = vector.load %arg13[%c0_168, %c0_169] : memref<32x7xf32, #tpu.memory_space<vmem>>, vector<32x7xf32>
    %cst_170 = arith.constant dense<0.000000e+00> : vector<16x7xf32>
    %1124 = tpu.matmul %1122, %1123, %cst_170 {dimension_numbers = #tpu.dot_dimension_numbers<[1], [0], [0], [1], [0, 0, 1, 1], [], []>} : vector<16x32xf32>, vector<32x7xf32>, vector<16x7xf32> -> vector<16x7xf32>
    %c0_171 = arith.constant 0 : index
    %c0_172 = arith.constant 0 : index
    %1125 = vector.load %arg14[%c0_171, %c0_172] : memref<1x7xf32, #tpu.memory_space<vmem>>, vector<1x7xf32>
    %1126 = vector.broadcast %1125 : vector<1x7xf32> to vector<16x7xf32>
    %1127 = arith.addf %1124, %1126 : vector<16x7xf32>
    %cst_173 = arith.constant dense<0xFF800000> : vector<16xf32>
    %1128 = vector.multi_reduction <maximumf>, %1127, %cst_173 [1] : vector<16x7xf32> to vector<16xf32>
    %1129 = vector.shape_cast %1128 : vector<16xf32> to vector<16x1xf32>
    %1130 = vector.broadcast %1129 : vector<16x1xf32> to vector<16x7xf32>
    %1131 = arith.subf %1127, %1130 : vector<16x7xf32>
    %1132 = math.exp %1131 : vector<16x7xf32>
    %cst_174 = arith.constant dense<0.000000e+00> : vector<16xf32>
    %1133 = vector.multi_reduction <add>, %1132, %cst_174 [1] : vector<16x7xf32> to vector<16xf32>
    %1134 = vector.shape_cast %1133 : vector<16xf32> to vector<16x1xf32>
    %1135 = math.log %1134 : vector<16x1xf32>
    %1136 = arith.addf %1129, %1135 : vector<16x1xf32>
    %1137 = vector.broadcast %1136 : vector<16x1xf32> to vector<16x7xf32>
    %1138 = arith.subf %1127, %1137 : vector<16x7xf32>
    %1139 = vector.shape_cast %1138 : vector<16x7xf32> to vector<8x2x7xf32>
    %c0_175 = arith.constant 0 : index
    %c0_176 = arith.constant 0 : index
    %c0_177 = arith.constant 0 : index
    %1140 = vector.load %arg15[%c0_175, %c0_176, %c0_177] : memref<8x2x7xf32, #tpu.memory_space<vmem>>, vector<8x2x7xf32>
    tpu.vector_store %arg15[%c0_175, %c0_176, %c0_177], %1139 {strides = array<i32>} : memref<8x2x7xf32, #tpu.memory_space<vmem>>, vector<8x2x7xf32>,
    return
  }
  func.func @transform_0(%arg0: i32) -> (i32, i32, i32) {
    %c0_i32 = arith.constant 0 : i32
    %c0_i32_0 = arith.constant 0 : i32
    %c0_i32_1 = arith.constant 0 : i32
    %c0_i32_2 = arith.constant 0 : i32
    return %c0_i32, %c0_i32_0, %c0_i32_1 : i32, i32, i32
  }
  func.func @transform_1(%arg0: i32) -> (i32, i32) {
    %c0_i32 = arith.constant 0 : i32
    %c0_i32_0 = arith.constant 0 : i32
    %c0_i32_1 = arith.constant 0 : i32
    return %c0_i32, %c0_i32_0 : i32, i32
  }
  func.func @transform_2(%arg0: i32) -> (i32, i32) {
    %c0_i32 = arith.constant 0 : i32
    %c0_i32_0 = arith.constant 0 : i32
    %c0_i32_1 = arith.constant 0 : i32
    return %c0_i32, %c0_i32_0 : i32, i32
  }
  func.func @transform_3(%arg0: i32) -> (i32, i32) {
    %c0_i32 = arith.constant 0 : i32
    %c0_i32_0 = arith.constant 0 : i32
    %c0_i32_1 = arith.constant 0 : i32
    return %c0_i32, %c0_i32_0 : i32, i32
  }
  func.func @transform_4(%arg0: i32) -> (i32, i32) {
    %c0_i32 = arith.constant 0 : i32
    %c0_i32_0 = arith.constant 0 : i32
    %c0_i32_1 = arith.constant 0 : i32
    return %c0_i32, %c0_i32_0 : i32, i32
  }
  func.func @transform_5(%arg0: i32) -> (i32, i32) {
    %c0_i32 = arith.constant 0 : i32
    %c0_i32_0 = arith.constant 0 : i32
    %c0_i32_1 = arith.constant 0 : i32
    return %c0_i32, %c0_i32_0 : i32, i32
  }
  func.func @transform_6(%arg0: i32) -> (i32, i32) {
    %c0_i32 = arith.constant 0 : i32
    %c0_i32_0 = arith.constant 0 : i32
    %c0_i32_1 = arith.constant 0 : i32
    return %c0_i32, %c0_i32_0 : i32, i32
  }
  func.func @transform_7(%arg0: i32) -> (i32, i32) {
    %c0_i32 = arith.constant 0 : i32
    %c0_i32_0 = arith.constant 0 : i32
    %c0_i32_1 = arith.constant 0 : i32
    return %c0_i32, %c0_i32_0 : i32, i32
  }
  func.func @transform_8(%arg0: i32) -> (i32, i32) {
    %c0_i32 = arith.constant 0 : i32
    %c0_i32_0 = arith.constant 0 : i32
    %c0_i32_1 = arith.constant 0 : i32
    return %c0_i32, %c0_i32_0 : i32, i32
  }
  func.func @transform_9(%arg0: i32) -> (i32, i32) {
    %c0_i32 = arith.constant 0 : i32
    %c0_i32_0 = arith.constant 0 : i32
    %c0_i32_1 = arith.constant 0 : i32
    return %c0_i32, %c0_i32_0 : i32, i32
  }
  func.func @transform_10(%arg0: i32) -> (i32, i32) {
    %c0_i32 = arith.constant 0 : i32
    %c0_i32_0 = arith.constant 0 : i32
    %c0_i32_1 = arith.constant 0 : i32
    return %c0_i32, %c0_i32_0 : i32, i32
  }
  func.func @transform_11(%arg0: i32) -> (i32, i32) {
    %c0_i32 = arith.constant 0 : i32
    %c0_i32_0 = arith.constant 0 : i32
    %c0_i32_1 = arith.constant 0 : i32
    return %c0_i32, %c0_i32_0 : i32, i32
  }
  func.func @transform_12(%arg0: i32) -> (i32, i32) {
    %c0_i32 = arith.constant 0 : i32
    %c0_i32_0 = arith.constant 0 : i32
    %c0_i32_1 = arith.constant 0 : i32
    return %c0_i32, %c0_i32_0 : i32, i32
  }
  func.func @transform_13(%arg0: i32) -> (i32, i32) {
    %c0_i32 = arith.constant 0 : i32
    %c0_i32_0 = arith.constant 0 : i32
    %c0_i32_1 = arith.constant 0 : i32
    return %c0_i32, %c0_i32_0 : i32, i32
  }
  func.func @transform_14(%arg0: i32) -> (i32, i32, i32) {
    %c0_i32 = arith.constant 0 : i32
    %c0_i32_0 = arith.constant 0 : i32
    %c0_i32_1 = arith.constant 0 : i32
    %c0_i32_2 = arith.constant 0 : i32
    return %c0_i32, %c0_i32_0, %c0_i32_1 : i32, i32, i32
  }
  func.func @transform_15(%arg0: i32) -> (i32, i32, i32) {
    %c0_i32 = arith.constant 0 : i32
    %c0_i32_0 = arith.constant 0 : i32
    %c0_i32_1 = arith.constant 0 : i32
    %c0_i32_2 = arith.constant 0 : i32
    return %c0_i32, %c0_i32_0, %c0_i32_1 : i32, i32, i32
  }
  func.func @transform_16(%arg0: i32) -> (i32, i32, i32) {
    %c0_i32 = arith.constant 0 : i32
    %c0_i32_0 = arith.constant 0 : i32
    %c0_i32_1 = arith.constant 0 : i32
    %c0_i32_2 = arith.constant 0 : i32
    return %c0_i32, %c0_i32_0, %c0_i32_1 : i32, i32, i32
  }
}

</mosaic_0001>

<bundles_post_ra>
// kernel: tpu_custom_call.1
= control target key start
LH: loop header
LB: loop body
LE: loop exit
PB: predicated region body
PF: predicated region fallthrough
CT: control target
= control target key end

     0   :  { %s6146_s0 = inlined_call_operand.vmem [shape: f32[8,2,32], index: 0, kind: input, shape index: {}]   ;;  %s6147_s1 = inlined_call_operand.vmem [shape: f32[2,8], index: 1, kind: input, shape index: {}]   ;;  %s6148_s2 = inlined_call_operand.vmem [shape: f32[32,256], index: 2, kind: input, shape index: {}]   ;;  %s6149_s3 = inlined_call_operand.vmem [shape: f32[1,256], index: 3, kind: input, shape index: {}]   ;;  %s6150_s4 = inlined_call_operand.hbm [shape: f32[64,256], index: 4, kind: input, shape index: {}]   ;;  %s6151_s5 = inlined_call_operand.hbm [shape: f32[64,256], index: 5, kind: input, shape index: {}]   ;;  %s6152_s6 = inlined_call_operand.vmem [shape: f32[1,256], index: 6, kind: input, shape index: {}]   ;;  %s6153_s7 = inlined_call_operand.hbm [shape: f32[64,256], index: 7, kind: input, shape index: {}]   ;;  %s6154_s8 = inlined_call_operand.hbm [shape: f32[64,64], index: 8, kind: input, shape index: {}]   ;;  %s6155_s9 = inlined_call_operand.vmem [shape: f32[1,64], index: 9, kind: input, shape index: {}]   ;;  %s6156_s10 = inlined_call_operand.vmem [shape: f32[64,32], index: 10, kind: input, shape index: {}]   ;;  %s6157_s11 = inlined_call_operand.vmem [shape: f32[1,32], index: 11, kind: input, shape index: {}]   ;;  %s6158_s12 = inlined_call_operand.vmem [shape: f32[32,7], index: 12, kind: input, shape index: {}]   ;;  %s6159_s13 = inlined_call_operand.vmem [shape: f32[1,7], index: 13, kind: input, shape index: {}]   ;;  %s6160_s14 = inlined_call_operand.vmem [shape: f32[8,2,7], index: 14, kind: output, shape index: {0}]   ;;  %s6161_s15 = inlined_call_operand.hbm [shape: f32[8,2,8], index: 15, kind: output, shape index: {1}]   ;;  %s6162_s16 = inlined_call_operand.hbm [shape: f32[8,2,64], index: 16, kind: output, shape index: {2}]  }
   0x1   :  { %6164 = sst [smem:[#allocation18_spill]] %s6146_s0 }
   0x2   :  { %22 = vsyncpa [#allocation3], 0 }
   0x3   :  { %23 = vsyncpa [#allocation6], 0 }
   0x4   :  { %24 = vsyncpa [#allocation9], 0 }
   0x5   :  { %25 = vsyncpa [#allocation4], 0 }
   0x6   :  { %26 = vsyncpa [#allocation12], 0  ;;  %s52_s23 = sshll.u32 %s6151_s5, 4  ;;  %s4492_s24 = smov [#allocation5]   ;;  %s53_s23 = int_to_ptr.hbm [resolvable:$true] %s52_s23 }
   0x7   :  { %s54_s25 = sshll.u32 %s4492_s24, 4  ;;  %s39_s28 = sshll.u32 %s6150_s4, 4  ;;  %s55_s25 = int_to_ptr.vmem [resolvable:$true] %s54_s25  ;;  %s40_s28 = int_to_ptr.hbm [resolvable:$true] %s39_s28 }
   0x8   :  { %s4493_s29 = smov 256   ;;  %s4494_s30 = smov 16  }
   0x9   :  { %60 = dma.hbm_to_vmem [thread:$0]  %s53_s23, 2048, %s55_s25, [#allocation6], %s4493_s29, %s4493_s29, %s4494_s30  }
   0xa   :  { %s4495_s0 = smov [#allocation2]   ;;  %s67_s20 = sshll.u32 %s6153_s7, 4  ;;  %s68_s20 = int_to_ptr.hbm [resolvable:$true] %s67_s20 }
   0xb   :  { %s41_s17 = sshll.u32 %s4495_s0, 4  ;;  %s80_s22 = sshll.u32 %s6154_s8, 4  ;;  %s42_s17 = int_to_ptr.vmem [resolvable:$true] %s41_s17  ;;  %s81_s22 = int_to_ptr.hbm [resolvable:$true] %s80_s22 }
   0xc   :  { %47 = dma.hbm_to_vmem [thread:$0]  %s40_s28, 2048, %s42_s17, [#allocation3], %s4493_s29, %s4493_s29, %s4494_s30  }
   0xd   :  { %s4496_s24 = smov [#allocation7]   ;;  %s4497_s4 = smov [#allocation8]  }
   0xe   :  { %s69_s26 = sshll.u32 %s4496_s24, 4  ;;  %s82_s23 = sshll.u32 %s4497_s4, 4  ;;  %s70_s26 = int_to_ptr.vmem [resolvable:$true] %s69_s26  ;;  %s83_s23 = int_to_ptr.vmem [resolvable:$true] %s82_s23 }
   0xf   :  { %75 = dma.hbm_to_vmem [thread:$0]  %s68_s20, 2048, %s70_s26, [#allocation6], %s4493_s29, %s4493_s29, %s4494_s30  }
  0x10   :  { %s4498_s25 = smov 128   ;;  %s4499_s27 = smov 8  }
  0x11   :  { %88 = dma.hbm_to_vmem [thread:$0]  %s81_s22, 1024, %s83_s23, [#allocation9], %s4498_s25, %s4498_s25, %s4499_s27  }
  0x12   :  { %4482 = dma.done.wait [#allocation3], 2048  }
  0x13   :  { %4483 = vsyncadd [#allocation3], 4294965248 }
  0x14   :  { %4484 = dma.done.wait [#allocation6], 4096  }
  0x15   :  { %4485 = vsyncadd [#allocation6], 4294963200 }
  0x16   :  { %4486 = dma.done.wait [#allocation9], 1024  }
  0x17   :  { %4487 = vsyncadd [#allocation9], 4294966272  ;;  %v4604_v0 = vld [vmem:[#allocation2 + $0x70] sm:$0xff]  ;;  %v4609_v2 = vld [vmem:[#allocation2 + $0x60] sm:$0xff]  ;;  %s6165_s23 = sld [smem:[#allocation18_spill]]  ;;  %vm162_vm0 = vcmask 261120  }
  0x18   :  { %v130_v1 = vld [vmem:[%s6148_s2 + $0x38] sm:$0xff]  ;;  %273 = vmatpush.msra.mxu2 %v4604_v0  ;;  %v129_v3 = vld [vmem:[%s6148_s2 + $0x30] sm:$0xff]  ;;  %v128_v4 = vld [vmem:[%s6148_s2 + $0x28] sm:$0xff]  ;;  %v4500_v33 = vmov 0.0   ;;  %vm227_vm1 = vcmask 1045504   ;;  %vm221_vm2 = vcmask 1043458  }
  0x19   :  { %202 = vmatpush.msra.mxu1 %v130_v1  ;;  %v4618_v5 = vld [vmem:[#allocation2 + $0x50] sm:$0xff]  ;;  %179 = vmatpush.msra.mxu0 %v129_v3  ;;  %v4620_v6 = vld [vmem:[#allocation2 + $0x78] sm:$0xff]  ;;  %v4629_v9 = vld [vmem:[#allocation2 + $0x40] sm:$0xff]  ;;  %vm224_vm3 = vcmask 1045508   ;;  %vm219_vm4 = vcmask 1041408   ;;  %s4502_s4 = smov 32  }
  0x1a   :  { %v127_v7 = vld [vmem:[%s6148_s2 + $0x20] sm:$0xff]  ;;  %v126_v8 = vld [vmem:[%s6148_s2 + $0x18] sm:$0xff]  ;;  %274 = vmatpush.msra.mxu2 %v4609_v2  ;;  %v4631_v10 = vld [vmem:[#allocation2 + $0x68] sm:$0xff]  ;;  %293 = vmatpush.msra.mxu3 %v4620_v6  ;;  %vm261_vm13 = vcmask 523264   ;;  %s3868_s0 = sshll.u32 %s6161_s15, 4  ;;  %s4505_s17 = smov [#allocation11]   ;;  %s3869_s0 = int_to_ptr.hbm [resolvable:$true] %s3868_s0 }
  0x1b   :  { %203 = vmatpush.msra.mxu1 %v128_v4  ;;  %v125_v11 = vld [vmem:[%s6148_s2 + $0x10] sm:$0xff]  ;;  %180 = vmatpush.msra.mxu0 %v127_v7  ;;  %v124_v12 = vld [vmem:[%s6148_s2 + $0x8] sm:$0xff]  ;;  %v4654_v17 = vld [vmem:[#allocation2 + $0x30] sm:$0xff]  ;;  %s3879_s18 = sshll.u32 %s4505_s17, 4  ;;  %s3881_s5 = sshll.u32 %s6162_s16, 4  ;;  %s3880_s18 = int_to_ptr.vmem [resolvable:$true] %s3879_s18  ;;  %s3882_s5 = int_to_ptr.hbm [resolvable:$true] %s3881_s5 }
  0x1c   :  { %275 = vmatpush.msra.mxu2 %v4618_v5  ;;  %294 = vmatpush.msra.mxu3 %v4631_v10  ;;  %v4656_v18 = vld [vmem:[#allocation2 + $0x58] sm:$0xff]  ;;  %v4662_v20 = vld [vmem:[#allocation2 + $0x48] sm:$0xff]  ;;  %v4665_v21 = vld [vmem:[#allocation2 + $0x20] sm:$0xff] }
  0x1d   :  { %v115_v13 = vld [vmem:[%s6165_s23] sm:$0x3]  ;;  %v116_v14 = vld [vmem:[%s6165_s23 + $0x2] sm:$0x3]  ;;  %204 = vmatpush.msra.mxu1 %v126_v8  ;;  %v117_v15 = vld [vmem:[%s6165_s23 + $0x4] sm:$0x3]  ;;  %181 = vmatpush.msra.mxu0 %v125_v11 }
  0x1e   :  { %v118_v16 = vld [vmem:[%s6165_s23 + $0x6] sm:$0x3]  ;;  %145 = vst [vmem:[#allocation1] ss:$4 sm:$0xff] %v115_v13  ;;  %276 = vmatpush.msra.mxu2 %v4629_v9  ;;  %295 = vmatpush.msra.mxu3 %v4656_v18  ;;  %v119_v23 = vld [vmem:[%s6165_s23 + $0x8] sm:$0x3] }
  0x1f   :  { %147 = vst [vmem:[#allocation1 + $0x1] ss:$4 sm:$0xff] %v116_v14  ;;  %v123_v19 = vld [vmem:[%s6148_s2] sm:$0xff]  ;;  %205 = vmatpush.msra.mxu1 %v124_v12  ;;  %v120_v24 = vld [vmem:[%s6165_s23 + $0xa] sm:$0x3]  ;;  %v4681_v26 = vld [vmem:[#allocation2 + $0x10] sm:$0xff] }
  0x20   :  { %149 = vst [vmem:[#allocation1 + $0x2] ss:$4 sm:$0xff] %v117_v15  ;;  %182 = vmatpush.msra.mxu0 %v123_v19  ;;  %v4667_v22 = vld [vmem:[#allocation2 + $0x38] sm:$0xff]  ;;  %277 = vmatpush.msra.mxu2 %v4654_v17  ;;  %v121_v25 = vld [vmem:[%s6165_s23 + $0xc] sm:$0x3]  ;;  %v4688_v28 = vld [vmem:[#allocation2 + $0x28] sm:$0xff] }
  0x21   :  { %151 = vst [vmem:[#allocation1 + $0x3] ss:$4 sm:$0xff] %v118_v16  ;;  %296 = vmatpush.msra.mxu3 %v4662_v20  ;;  %v122_v27 = vld [vmem:[%s6165_s23 + $0xe] sm:$0x3]  ;;  %427 = vmatpush.msrb.mxu1 %v4620_v6  ;;  %v4698_v30 = vld [vmem:[#allocation2 + $0x18] sm:$0xff]  ;;  %v4705_v32 = vld [vmem:[#allocation2 + $0x8] sm:$0xff] }
  0x22   :  { %407 = vmatpush.msrb.mxu0 %v4604_v0  ;;  %153 = vst [vmem:[#allocation1 + $0x20] ss:$4 sm:$0xff] %v119_v23  ;;  %278 = vmatpush.msra.mxu2 %v4665_v21  ;;  %v4692_v29 = vld [vmem:[#allocation2] sm:$0xff]  ;;  %v131_v35 = vld [vmem:[%s6149_s3] sm:$0x3]  ;;  %s4501_s3 = smov 64  }
  0x23   :  { %155 = vst [vmem:[#allocation1 + $0x21] ss:$4 sm:$0xff] %v120_v24  ;;  %297 = vmatpush.msra.mxu3 %v4667_v22  ;;  %428 = vmatpush.msrb.mxu1 %v4631_v10  ;;  %v134_v36 = vperm.slane %v131_v35, 1  ;;  %v133_v37 = vperm.slane %v131_v35, 0  ;;  %s4506_s2 = smov 2  }
  0x24   :  { %408 = vmatpush.msrb.mxu0 %v4609_v2  ;;  %157 = vst [vmem:[#allocation1 + $0x22] ss:$4 sm:$0xff] %v121_v25  ;;  %279 = vmatpush.msra.mxu2 %v4681_v26 }
  0x25   :  { %159 = vst [vmem:[#allocation1 + $0x23] ss:$4 sm:$0xff] %v122_v27  ;;  %298 = vmatpush.msra.mxu3 %v4688_v28  ;;  %429 = vmatpush.msrb.mxu1 %v4656_v18 }
  0x26   :  { %409 = vmatpush.msrb.mxu0 %v4618_v5  ;;  %280 = vmatpush.msra.mxu2 %v4692_v29 }
  0x27   :  { %281 = vmatmul.f32.vlgmr.msra.gmra.mxu2 %v4500_v33  ;;  %299 = vmatpush.msra.mxu3 %v4698_v30 }
  0x28   :  { %v160_v31 = vld.sshfl [vmem:[#allocation1] sm:$0xff pattern:$0x73625140]  ;;  %410 = vmatpush.msrb.mxu0 %v4629_v9  ;;  %430 = vmatpush.msrb.mxu1 %v4662_v20 }
  0x29   :  { %3905 = vmatmul.msk.f32.vlgmr.msra.gmra.mxu1 %vm162_vm0, %v160_v31  ;;  %3903 = vmatmul.msk.f32.vlgmr.msra.gmra.mxu0 %vm162_vm0, %v160_v31 }
  0x2a   :  { %411 = vmatpush.msrb.mxu0 %v4654_v17  ;;  %300 = vmatpush.msra.mxu3 %v4705_v32 }
  0x2b   :  { %541 = vmatpush.msrb.mxu2 %v4604_v0  ;;  %301 = vmatmul.f32.vlgmr.msra.gmra.mxu3 %v4500_v33 }
  0x2c   :  { %431 = vmatpush.msrb.mxu1 %v4667_v22  ;;  %v161_v34 = vld.sshfl [vmem:[#allocation1 + $0x20] sm:$0xff pattern:$0x73625140]  ;;  %412 = vmatpush.msrb.mxu0 %v4665_v21 }
  0x2d   :  { %561 = vmatpush.msrb.mxu3 %v4620_v6  ;;  %542 = vmatpush.msrb.mxu2 %v4609_v2 }
  0x2e   :  { %432 = vmatpush.msrb.mxu1 %v4688_v28  ;;  %413 = vmatpush.msrb.mxu0 %v4681_v26 }
  0x2f   :  { %562 = vmatpush.msrb.mxu3 %v4631_v10  ;;  %543 = vmatpush.msrb.mxu2 %v4618_v5 }
  0x30   :  { %433 = vmatpush.msrb.mxu1 %v4698_v30  ;;  %414 = vmatpush.msrb.mxu0 %v4692_v29 }
  0x31   :  { %3906 = vmatmul.msk.f32.gmra.mxu1 %vm162_vm0, %v161_v34  ;;  %3904 = vmatmul.msk.f32.gmra.mxu0 %vm162_vm0, %v161_v34 }
  0x32   :  { %563 = vmatpush.msrb.mxu3 %v4656_v18  ;;  %434 = vmatpush.msrb.mxu1 %v4705_v32 }
  0x33   :  { %675 = vmatpush.msra.mxu0 %v4604_v0  ;;  %544 = vmatpush.msrb.mxu2 %v4629_v9 }
  0x34   :  { %564 = vmatpush.msrb.mxu3 %v4662_v20  ;;  %695 = vmatpush.msra.mxu1 %v4620_v6 }
  0x35   :  { %676 = vmatpush.msra.mxu0 %v4609_v2  ;;  %545 = vmatpush.msrb.mxu2 %v4654_v17 }
  0x36   :  { %565 = vmatpush.msrb.mxu3 %v4667_v22  ;;  %696 = vmatpush.msra.mxu1 %v4631_v10 }
  0x37   :  { %677 = vmatpush.msra.mxu0 %v4618_v5  ;;  %546 = vmatpush.msrb.mxu2 %v4665_v21 }
  0x38   :  { %566 = vmatpush.msrb.mxu3 %v4688_v28  ;;  %697 = vmatpush.msra.mxu1 %v4656_v18 }
  0x39   :  { %678 = vmatpush.msra.mxu0 %v4629_v9  ;;  %547 = vmatpush.msrb.mxu2 %v4681_v26 }
  0x3a   :  { %567 = vmatpush.msrb.mxu3 %v4698_v30  ;;  %698 = vmatpush.msra.mxu1 %v4662_v20 }
  0x3b   :  { %679 = vmatpush.msra.mxu0 %v4654_v17  ;;  %548 = vmatpush.msrb.mxu2 %v4692_v29 }
  0x3c   :  { %568 = vmatpush.msrb.mxu3 %v4705_v32  ;;  %699 = vmatpush.msra.mxu1 %v4667_v22 }
  0x3d   :  { %680 = vmatpush.msra.mxu0 %v4665_v21  ;;  %809 = vmatpush.msra.mxu2 %v4604_v0 }
  0x3e   :  { %829 = vmatpush.msra.mxu3 %v4620_v6  ;;  %700 = vmatpush.msra.mxu1 %v4688_v28 }
  0x3f   :  { %681 = vmatpush.msra.mxu0 %v4681_v26  ;;  %810 = vmatpush.msra.mxu2 %v4609_v2 }
  0x40   :  { %830 = vmatpush.msra.mxu3 %v4631_v10  ;;  %701 = vmatpush.msra.mxu1 %v4698_v30 }
  0x41   :  { %682 = vmatpush.msra.mxu0 %v4692_v29  ;;  %811 = vmatpush.msra.mxu2 %v4618_v5 }
  0x42   :  { %831 = vmatpush.msra.mxu3 %v4656_v18  ;;  %702 = vmatpush.msra.mxu1 %v4705_v32 }
  0x43   :  { %812 = vmatpush.msra.mxu2 %v4629_v9 }
  0x44   :  { %832 = vmatpush.msra.mxu3 %v4662_v20 }
  0x45   :  { %813 = vmatpush.msra.mxu2 %v4654_v17 }
  0x46   :  { %833 = vmatpush.msra.mxu3 %v4667_v22 }
  0x47   :  { %814 = vmatpush.msra.mxu2 %v4665_v21 }
  0x48   :  { %834 = vmatpush.msra.mxu3 %v4688_v28 }
  0x49   :  { %815 = vmatpush.msra.mxu2 %v4681_v26 }
  0x4a   :  { %835 = vmatpush.msra.mxu3 %v4698_v30 }
  0x4b   :  { %816 = vmatpush.msra.mxu2 %v4692_v29 }
  0x4c   :  { %836 = vmatpush.msra.mxu3 %v4705_v32 }
  0xa6   :  { %v207_v38 = vpop.f32.mrf.mxu1  ;;  %v184_v39 = vpop.f32.mrf.mxu0 }
  0xa7   :  { %v208_v40 = vadd.f32 %v207_v38, %v134_v36  ;;  %v185_v41 = vadd.f32 %v184_v39, %v133_v37 }
  0xa9   :  { %v217_v42 = vrot.slane %v208_v40, 6 }
  0xaa   :  { %v282_v47 = vpop.f32.mrf.mxu2 }
  0xab   :  { %v4774_v43 = vsel %vm221_vm2, %v185_v41, %v217_v42  ;;  %v4777_v44 = vsel %vm224_vm3, %v185_v41, %v217_v42  ;;  %v4780_v45 = vsel %vm227_vm1, %v217_v42, %v185_v41  ;;  %v4783_v46 = vsel %vm219_vm4, %v185_v41, %v217_v42 }
  0xac   :  { %v305_v50 = vadd.f32 %v282_v47, %v4783_v46 }
  0xae   :  { %v210_v48 = vpop.f32.mrf.mxu1  ;;  %v187_v49 = vpop.f32.mrf.mxu0  ;;  %4002 = vtanh.f32 %v305_v50  ;;  %v3907_v1 = vmul.f32 -1.442695, %v305_v50 }
  0xaf   :  { %v211_v51 = vadd.f32 %v210_v48, %v134_v36  ;;  %v188_v52 = vadd.f32 %v187_v49, %v133_v37  ;;  %v302_v59 = vpop.f32.mrf.mxu3 }
  0xb1   :  { %v218_v53 = vrot.slane %v211_v51, 6 }
  0xb3   :  { %v4787_v54 = vsel %vm227_vm1, %v218_v53, %v188_v52  ;;  %v4790_v55 = vsel %vm224_vm3, %v188_v52, %v218_v53  ;;  %v4793_v56 = vsel %vm221_vm2, %v188_v52, %v218_v53  ;;  %v4796_v57 = vsel %vm219_vm4, %v188_v52, %v218_v53 }
  0xb4   :  { %v236_v58 = vrot.slane %v4787_v54, 6  ;;  %v4003_v60 = vpop.eup %4002 }
  0xb5   :  { %328 = vrot.lane.b32.xlu0 %v4003_v60, %s4501_s3 }
  0xb6   :  { %v343_v61 = vrot.slane %v236_v58, 2 }
  0xb8   :  { %v345_v62 = vadd.f32 %v343_v61, %v302_v59 }
  0xba   :  { %4004 = vtanh.f32 %v345_v62  ;;  %v3908_v4 = vmul.f32 -1.442695, %v345_v62 }
  0xbb   :  { %4006 = vpow2.f32 %v3907_v1 }
  0xbc   :  { %4008 = vpow2.f32 %v3908_v4 }
  0xc0   :  { %v4005_v63 = vpop.eup %4004 }
  0xc1   :  { %368 = vrot.lane.b32.xlu0 %v4005_v63, %s4501_s3  ;;  %v4007_v3 = vpop.eup %4006 }
  0xc2   :  { %v309_v7 = vadd.f32 1.0, %v4007_v3  ;;  %v4009_v8 = vpop.eup %4008 }
  0xc3   :  { %v349_v12 = vadd.f32 1.0, %v4009_v8 }
  0xc4   :  { %4010 = vrcp.f32 %v309_v7  ;;  %v321_v24 = vand.u32 2147483648, %v309_v7  ;;  %vm315_vm6 = vweird.f32 %v309_v7  ;;  %v319_v25 = vand.u32 2147483647, %v309_v7 }
  0xc5   :  { %4012 = vrcp.f32 %v349_v12  ;;  %v361_v40 = vand.u32 2147483648, %v349_v12  ;;  %vm355_vm10 = vweird.f32 %v349_v12  ;;  %v359_v41 = vand.u32 2147483647, %v349_v12 }
  0xc6   :  { %v322_v34 = vor.u32 1.1754944e-38, %v321_v24  ;;  %vm320_vm8 = vcmp.eq.f32.partialorder %v319_v25, 8.507059e+37 }
  0xc7   :  { %v362_v47 = vor.u32 1.1754944e-38, %v361_v40  ;;  %vm360_vm12 = vcmp.eq.f32.partialorder %v359_v41, 8.507059e+37 }
  0xca   :  { %v4011_v11 = vpop.eup %4010 }
  0xcb   :  { %v311_v13 = vmul.f32 %v4011_v11, %v309_v7  ;;  %v4013_v15 = vpop.eup %4012  ;;  %vm316_vm5 = vweird.f32 %v4011_v11 }
  0xcc   :  { %v351_v19 = vmul.f32 %v4013_v15, %v349_v12  ;;  %vm317_vm7 = vmor %vm315_vm6, %vm316_vm5  ;;  %vm356_vm9 = vweird.f32 %v4013_v15 }
  0xcd   :  { %v312_v14 = vsub.f32 1.0, %v311_v13  ;;  %vm357_vm11 = vmor %vm355_vm10, %vm356_vm9 }
  0xce   :  { %v352_v27 = vsub.f32 1.0, %v351_v19 }
  0xcf   :  { %v313_v16 = vmul.f32 %v4011_v11, %v312_v14 }
  0xd0   :  { %v353_v35 = vmul.f32 %v4013_v15, %v352_v27 }
  0xd1   :  { %v314_v23 = vadd.f32 %v4011_v11, %v313_v16  ;;  %v223_v16 = vrot.slane %v4774_v43, 2 }
  0xd2   :  { %v354_v39 = vadd.f32 %v4013_v15, %v353_v35 }
  0xd3   :  { %v318_v31 = vsel %vm317_vm7, %v4011_v11, %v314_v23 }
  0xd4   :  { %v323_v37 = vsel %vm320_vm8, %v322_v34, %v318_v31  ;;  %v358_v42 = vsel %vm357_vm11, %v4013_v15, %v354_v39  ;;  %v234_v15 = vrot.slane %v4790_v55, 4 }
  0xd5   :  { %v363_v48 = vsel %vm360_vm12, %v362_v47, %v358_v42  ;;  %v326_v51 = vmul.f32 0.0, %v323_v37 }
  0xd6   :  { %v366_v60 = vmul.f32 0.0, %v363_v48  ;;  %v477_v19 = vrot.slane %v234_v15, 2 }
 0x127   :  { %v329_v36 = vpop.permute.xlu0 %328 }
 0x128   :  { %v331_v38 = vmul.f32 %v329_v36, %v323_v37 }
 0x12a   :  { %333 = vrot.lane.b32.xlu1 %v331_v38, %s4502_s4 }
 0x133   :  { %v369_v49 = vpop.permute.xlu0 %368 }
 0x134   :  { %v371_v50 = vmul.f32 %v369_v49, %v363_v48 }
 0x136   :  { %373 = vrot.lane.b32.xlu1 %v371_v50, %s4502_s4 }
 0x19c   :  { %v334_v52 = vpop.permute.xlu1 %333 }
 0x19d   :  { %v4805_v53 = vadd.f32 %v334_v52, %v326_v51 }
 0x19f   :  { %4014 = vtanh.f32 %v4805_v53 }
 0x1a5   :  { %v4015_v59 = vpop.eup %4014 }
 0x1a6   :  { %339 = vrot.lane.b32.xlu2 %v4015_v59, %s4501_s3 }
 0x1a8   :  { %v374_v61 = vpop.permute.xlu1 %373 }
 0x1a9   :  { %v4809_v62 = vadd.f32 %v374_v61, %v366_v60 }
 0x1ab   :  { %4016 = vtanh.f32 %v4809_v62 }
 0x1b1   :  { %v4017_v63 = vpop.eup %4016 }
 0x1b2   :  { %379 = vrot.lane.b32.xlu2 %v4017_v63, %s4501_s3 }
 0x200   :  { %v340_v1 = vpop.permute.xlu2 %339 }
 0x201   :  { %v4813_v3 = vmul.f32 %v340_v1, %v323_v37 }
 0x203   :  { %384 = vst [vmem:[#allocation1] ss:$4 sm:$0xff] %v4813_v3 }
 0x20a   :  { %v385_v4 = vld.sshfl [vmem:[#allocation1] sm:$0xff pattern:$0x73625140] }
 0x20b   :  { %386 = vrot.lane.b32.xlu0 %v385_v4, %s4502_s4 }
 0x20c   :  { %v380_v7 = vpop.permute.xlu2 %379 }
 0x20d   :  { %v4816_v8 = vmul.f32 %v380_v7, %v363_v48 }
 0x20f   :  { %390 = vst [vmem:[#allocation1] ss:$4 sm:$0xff] %v4816_v8 }
 0x216   :  { %v391_v11 = vld.sshfl [vmem:[#allocation1] sm:$0xff pattern:$0x73625140] }
 0x217   :  { %392 = vrot.lane.b32.xlu1 %v391_v11, %s4501_s3 }
 0x27d   :  { %v387_v12 = vpop.permute.xlu0 %386 }
 0x289   :  { %v393_v13 = vpop.permute.xlu1 %392 }
 0x28a   :  { %v395_v14 = vsel %vm162_vm0, %v387_v12, %v393_v13 }
 0x28b   :  { %3909 = vmatmul.msk.f32.vlgmr.msrb.gmra.mxu0 %vm261_vm13, %v395_v14  ;;  %3910 = vmatmul.msk.f32.vlgmr.msrb.gmra.mxu1 %vm261_vm13, %v395_v14 }
 0x28c   :  { %943 = vmatpush.msrb.mxu0 %v4604_v0  ;;  %963 = vmatpush.msrb.mxu1 %v4620_v6 }
 0x28e   :  { %944 = vmatpush.msrb.mxu0 %v4609_v2  ;;  %964 = vmatpush.msrb.mxu1 %v4631_v10 }
 0x290   :  { %945 = vmatpush.msrb.mxu0 %v4618_v5  ;;  %965 = vmatpush.msrb.mxu1 %v4656_v18 }
 0x292   :  { %946 = vmatpush.msrb.mxu0 %v4629_v9  ;;  %966 = vmatpush.msrb.mxu1 %v4662_v20 }
 0x294   :  { %947 = vmatpush.msrb.mxu0 %v4654_v17  ;;  %967 = vmatpush.msrb.mxu1 %v4667_v22 }
 0x296   :  { %948 = vmatpush.msrb.mxu0 %v4665_v21  ;;  %968 = vmatpush.msrb.mxu1 %v4688_v28 }
 0x298   :  { %949 = vmatpush.msrb.mxu0 %v4681_v26  ;;  %969 = vmatpush.msrb.mxu1 %v4698_v30 }
 0x29a   :  { %950 = vmatpush.msrb.mxu0 %v4692_v29  ;;  %970 = vmatpush.msrb.mxu1 %v4705_v32 }
 0x308   :  { %v416_v23 = vpop.f32.mrf.mxu0  ;;  %v436_v24 = vpop.f32.mrf.mxu1 }
 0x309   :  { %v439_v25 = vadd.f32 %v416_v23, %v223_v16  ;;  %v479_v27 = vadd.f32 %v477_v19, %v436_v24 }
 0x30b   :  { %4018 = vtanh.f32 %v439_v25  ;;  %v3911_v35 = vmul.f32 -1.442695, %v439_v25  ;;  %v3912_v39 = vmul.f32 -1.442695, %v479_v27 }
 0x30c   :  { %4020 = vtanh.f32 %v479_v27 }
 0x30d   :  { %4022 = vpow2.f32 %v3911_v35 }
 0x311   :  { %v4019_v31 = vpop.eup %4018 }
 0x312   :  { %v4021_v34 = vpop.eup %4020  ;;  %462 = vrot.lane.b32.xlu2 %v4019_v31, %s4501_s3 }
 0x313   :  { %502 = vrot.lane.b32.xlu0 %v4021_v34, %s4501_s3  ;;  %v4023_v36 = vpop.eup %4022 }
 0x314   :  { %v443_v37 = vadd.f32 1.0, %v4023_v36 }
 0x316   :  { %4024 = vrcp.f32 %v443_v37  ;;  %v455_v50 = vand.u32 2147483648, %v443_v37  ;;  %vm449_vm15 = vweird.f32 %v443_v37  ;;  %v453_v51 = vand.u32 2147483647, %v443_v37 }
 0x317   :  { %4026 = vpow2.f32 %v3912_v39 }
 0x318   :  { %v456_v59 = vor.u32 1.1754944e-38, %v455_v50  ;;  %vm454_vm6 = vcmp.eq.f32.partialorder %v453_v51, 8.507059e+37 }
 0x31c   :  { %v4025_v38 = vpop.eup %4024 }
 0x31d   :  { %v445_v40 = vmul.f32 %v4025_v38, %v443_v37  ;;  %v4027_v47 = vpop.eup %4026  ;;  %vm450_vm14 = vweird.f32 %v4025_v38 }
 0x31e   :  { %v483_v48 = vadd.f32 1.0, %v4027_v47  ;;  %vm451_vm5 = vmor %vm449_vm15, %vm450_vm14 }
 0x31f   :  { %v446_v41 = vsub.f32 1.0, %v445_v40 }
 0x320   :  { %4028 = vrcp.f32 %v483_v48  ;;  %v495_v13 = vand.u32 2147483648, %v483_v48  ;;  %vm489_vm8 = vweird.f32 %v483_v48  ;;  %v493_v14 = vand.u32 2147483647, %v483_v48 }
 0x321   :  { %v447_v42 = vmul.f32 %v4025_v38, %v446_v41 }
 0x322   :  { %v496_v23 = vor.u32 1.1754944e-38, %v495_v13  ;;  %vm494_vm10 = vcmp.eq.f32.partialorder %v493_v14, 8.507059e+37 }
 0x323   :  { %v448_v49 = vadd.f32 %v4025_v38, %v447_v42 }
 0x325   :  { %v452_v52 = vsel %vm451_vm5, %v4025_v38, %v448_v49 }
 0x326   :  { %v457_v61 = vsel %vm454_vm6, %v456_v59, %v452_v52  ;;  %v4029_v1 = vpop.eup %4028  ;;  %v232_v52 = vrot.slane %v4793_v56, 2  ;;  %v226_v59 = vrot.slane %v4777_v44, 4 }
 0x327   :  { %v485_v4 = vmul.f32 %v4029_v1, %v483_v48  ;;  %vm490_vm7 = vweird.f32 %v4029_v1  ;;  %v460_v31 = vmul.f32 %v457_v61, %v4805_v53 }
 0x328   :  { %vm491_vm9 = vmor %vm489_vm8, %vm490_vm7 }
 0x329   :  { %v486_v7 = vsub.f32 1.0, %v485_v4 }
 0x32b   :  { %v487_v11 = vmul.f32 %v4029_v1, %v486_v7 }
 0x32d   :  { %v488_v12 = vadd.f32 %v4029_v1, %v487_v11 }
 0x32f   :  { %v492_v19 = vsel %vm491_vm9, %v4029_v1, %v488_v12 }
 0x330   :  { %v497_v25 = vsel %vm494_vm10, %v496_v23, %v492_v19 }
 0x331   :  { %v500_v34 = vmul.f32 %v497_v25, %v4809_v62 }
 0x36c   :  { %v463_v60 = vpop.permute.xlu2 %462 }
 0x36d   :  { %v465_v63 = vmul.f32 %v463_v60, %v457_v61  ;;  %v611_v60 = vrot.slane %v232_v52, 2 }
 0x36f   :  { %467 = vrot.lane.b32.xlu1 %v465_v63, %s4502_s4 }
 0x385   :  { %v503_v24 = vpop.permute.xlu0 %502 }
 0x386   :  { %v505_v27 = vmul.f32 %v503_v24, %v497_v25 }
 0x388   :  { %507 = vrot.lane.b32.xlu2 %v505_v27, %s4502_s4 }
 0x3e1   :  { %v468_v35 = vpop.permute.xlu1 %467 }
 0x3e2   :  { %v508_v36 = vpop.permute.xlu2 %507  ;;  %v4852_v37 = vadd.f32 %v468_v35, %v460_v31 }
 0x3e3   :  { %v4854_v38 = vadd.f32 %v508_v36, %v500_v34 }
 0x3e4   :  { %4030 = vtanh.f32 %v4852_v37 }
 0x3e5   :  { %4032 = vtanh.f32 %v4854_v38 }
 0x3ea   :  { %v4031_v39 = vpop.eup %4030 }
 0x3eb   :  { %v4033_v40 = vpop.eup %4032  ;;  %473 = vrot.lane.b32.xlu0 %v4031_v39, %s4501_s3 }
 0x3ec   :  { %513 = vrot.lane.b32.xlu1 %v4033_v40, %s4501_s3 }
 0x45d   :  { %v474_v41 = vpop.permute.xlu0 %473 }
 0x45e   :  { %v476_v53 = vmul.f32 %v474_v41, %v457_v61  ;;  %v514_v62 = vpop.permute.xlu1 %513 }
 0x45f   :  { %v4860_v42 = vmul.f32 %v514_v62, %v497_v25 }
 0x460   :  { %518 = vst [vmem:[#allocation1] ss:$4 sm:$0xff] %v476_v53 }
 0x461   :  { %1325 = vst [vmem:[#allocation1 + $0x20] ss:$4 sm:$0xff] %v476_v53 }
 0x467   :  { %v519_v47 = vld.sshfl [vmem:[#allocation1] sm:$0xff pattern:$0x73625140] }
 0x468   :  { %524 = vst [vmem:[#allocation1] ss:$4 sm:$0xff] %v4860_v42  ;;  %520 = vrot.lane.b32.xlu2 %v519_v47, %s4502_s4 }
 0x46f   :  { %v525_v48 = vld.sshfl [vmem:[#allocation1] sm:$0xff pattern:$0x73625140] }
 0x470   :  { %526 = vrot.lane.b32.xlu0 %v525_v48, %s4501_s3 }
 0x4c2   :  { %v521_v49 = vpop.permute.xlu2 %520 }
 0x4e2   :  { %v527_v50 = vpop.permute.xlu0 %526 }
 0x4e3   :  { %v529_v51 = vsel %vm162_vm0, %v521_v49, %v527_v50 }
 0x4e4   :  { %3913 = vmatmul.msk.f32.vlgmr.msrb.gmra.mxu2 %vm261_vm13, %v529_v51  ;;  %3914 = vmatmul.msk.f32.vlgmr.msrb.gmra.mxu3 %vm261_vm13, %v529_v51 }
 0x4e5   :  { %1077 = vmatpush.msrb.mxu2 %v4604_v0  ;;  %1097 = vmatpush.msrb.mxu3 %v4620_v6 }
 0x4e7   :  { %1078 = vmatpush.msrb.mxu2 %v4609_v2  ;;  %1098 = vmatpush.msrb.mxu3 %v4631_v10 }
 0x4e9   :  { %1079 = vmatpush.msrb.mxu2 %v4618_v5  ;;  %1099 = vmatpush.msrb.mxu3 %v4656_v18 }
 0x4eb   :  { %1080 = vmatpush.msrb.mxu2 %v4629_v9  ;;  %1100 = vmatpush.msrb.mxu3 %v4662_v20 }
 0x4ed   :  { %1081 = vmatpush.msrb.mxu2 %v4654_v17  ;;  %1101 = vmatpush.msrb.mxu3 %v4667_v22 }
 0x4ef   :  { %1082 = vmatpush.msrb.mxu2 %v4665_v21  ;;  %1102 = vmatpush.msrb.mxu3 %v4688_v28 }
 0x4f1   :  { %1083 = vmatpush.msrb.mxu2 %v4681_v26  ;;  %1103 = vmatpush.msrb.mxu3 %v4698_v30 }
 0x4f3   :  { %1084 = vmatpush.msrb.mxu2 %v4692_v29  ;;  %1104 = vmatpush.msrb.mxu3 %v4705_v32 }
 0x567   :  { %v550_v61 = vpop.f32.mrf.mxu2  ;;  %v570_v63 = vpop.f32.mrf.mxu3 }
 0x568   :  { %v573_v1 = vadd.f32 %v550_v61, %v226_v59  ;;  %v613_v4 = vadd.f32 %v611_v60, %v570_v63 }
 0x56a   :  { %4034 = vtanh.f32 %v573_v1  ;;  %v3916_v12 = vmul.f32 -1.442695, %v613_v4  ;;  %v3915_v23 = vmul.f32 -1.442695, %v573_v1 }
 0x56b   :  { %4036 = vtanh.f32 %v613_v4 }
 0x56c   :  { %4038 = vpow2.f32 %v3916_v12 }
 0x570   :  { %v4035_v7 = vpop.eup %4034 }
 0x571   :  { %v4037_v11 = vpop.eup %4036  ;;  %596 = vrot.lane.b32.xlu1 %v4035_v7, %s4501_s3 }
 0x572   :  { %636 = vrot.lane.b32.xlu2 %v4037_v11, %s4501_s3  ;;  %v4039_v13 = vpop.eup %4038 }
 0x573   :  { %v617_v14 = vadd.f32 1.0, %v4039_v13 }
 0x575   :  { %4040 = vrcp.f32 %v617_v14  ;;  %v629_v36 = vand.u32 2147483648, %v617_v14  ;;  %vm623_vm12 = vweird.f32 %v617_v14  ;;  %v627_v39 = vand.u32 2147483647, %v617_v14 }
 0x576   :  { %4042 = vpow2.f32 %v3915_v23 }
 0x577   :  { %v630_v41 = vor.u32 1.1754944e-38, %v629_v36  ;;  %vm628_vm15 = vcmp.eq.f32.partialorder %v627_v39, 8.507059e+37 }
 0x57b   :  { %v4041_v19 = vpop.eup %4040 }
 0x57c   :  { %v619_v24 = vmul.f32 %v4041_v19, %v617_v14  ;;  %v4043_v27 = vpop.eup %4042  ;;  %vm624_vm11 = vweird.f32 %v4041_v19 }
 0x57d   :  { %v577_v34 = vadd.f32 1.0, %v4043_v27  ;;  %vm625_vm14 = vmor %vm623_vm12, %vm624_vm11 }
 0x57e   :  { %v620_v25 = vsub.f32 1.0, %v619_v24 }
 0x57f   :  { %4044 = vrcp.f32 %v577_v34  ;;  %v589_v61 = vand.u32 2147483648, %v577_v34  ;;  %vm583_vm6 = vweird.f32 %v577_v34  ;;  %v587_v63 = vand.u32 2147483647, %v577_v34 }
 0x580   :  { %v621_v31 = vmul.f32 %v4041_v19, %v620_v25 }
 0x581   :  { %v590_v4 = vor.u32 1.1754944e-38, %v589_v61  ;;  %vm588_vm8 = vcmp.eq.f32.partialorder %v587_v63, 8.507059e+37 }
 0x582   :  { %v622_v35 = vadd.f32 %v4041_v19, %v621_v31 }
 0x584   :  { %v626_v40 = vsel %vm625_vm14, %v4041_v19, %v622_v35 }
 0x585   :  { %v631_v62 = vsel %vm628_vm15, %v630_v41, %v626_v40  ;;  %v4045_v47 = vpop.eup %4044 }
 0x586   :  { %v579_v49 = vmul.f32 %v4045_v47, %v577_v34  ;;  %vm584_vm5 = vweird.f32 %v4045_v47  ;;  %v634_v13 = vmul.f32 %v631_v62, %v4854_v38 }
 0x587   :  { %vm585_vm7 = vmor %vm583_vm6, %vm584_vm5 }
 0x588   :  { %v580_v50 = vsub.f32 1.0, %v579_v49 }
 0x58a   :  { %v581_v51 = vmul.f32 %v4045_v47, %v580_v50 }
 0x58c   :  { %v582_v60 = vadd.f32 %v4045_v47, %v581_v51 }
 0x58e   :  { %v586_v1 = vsel %vm585_vm7, %v4045_v47, %v582_v60 }
 0x58f   :  { %v591_v11 = vsel %vm588_vm8, %v590_v4, %v586_v1 }
 0x590   :  { %v594_v24 = vmul.f32 %v591_v11, %v4852_v37 }
 0x5cc   :  { %v637_v53 = vpop.permute.xlu2 %636 }
 0x5cd   :  { %v639_v48 = vmul.f32 %v637_v53, %v631_v62 }
 0x5cf   :  { %641 = vrot.lane.b32.xlu1 %v639_v48, %s4502_s4 }
 0x5e3   :  { %v597_v7 = vpop.permute.xlu1 %596 }
 0x5e4   :  { %v599_v12 = vmul.f32 %v597_v7, %v591_v11 }
 0x5e6   :  { %601 = vrot.lane.b32.xlu0 %v599_v12, %s4502_s4 }
 0x641   :  { %v642_v14 = vpop.permute.xlu1 %641 }
 0x642   :  { %v4895_v19 = vadd.f32 %v642_v14, %v634_v13 }
 0x644   :  { %4046 = vtanh.f32 %v4895_v19 }
 0x64a   :  { %v4047_v23 = vpop.eup %4046 }
 0x64b   :  { %647 = vrot.lane.b32.xlu0 %v4047_v23, %s4501_s3 }
 0x658   :  { %v602_v25 = vpop.permute.xlu0 %601 }
 0x659   :  { %v4900_v27 = vadd.f32 %v602_v25, %v594_v24 }
 0x65b   :  { %4048 = vtanh.f32 %v4900_v27 }
 0x661   :  { %v4049_v31 = vpop.eup %4048 }
 0x662   :  { %607 = vrot.lane.b32.xlu2 %v4049_v31, %s4501_s3 }
 0x6bc   :  { %v608_v34 = vpop.permute.xlu2 %607 }
 0x6bd   :  { %v4904_v38 = vmul.f32 %v608_v34, %v591_v11  ;;  %v648_v35 = vpop.permute.xlu0 %647 }
 0x6be   :  { %v4907_v36 = vmul.f32 %v648_v35, %v631_v62 }
 0x6bf   :  { %652 = vst [vmem:[#allocation1] ss:$4 sm:$0xff] %v4904_v38 }
 0x6c6   :  { %v653_v39 = vld.sshfl [vmem:[#allocation1] sm:$0xff pattern:$0x73625140] }
 0x6c7   :  { %658 = vst [vmem:[#allocation1] ss:$4 sm:$0xff] %v4907_v36  ;;  %654 = vrot.lane.b32.xlu1 %v653_v39, %s4502_s4 }
 0x6ce   :  { %v659_v37 = vld.sshfl [vmem:[#allocation1] sm:$0xff pattern:$0x73625140] }
 0x6cf   :  { %660 = vrot.lane.b32.xlu2 %v659_v37, %s4501_s3 }
 0x729   :  { %v661_v40 = vpop.permute.xlu2 %660 }
 0x739   :  { %v655_v41 = vpop.permute.xlu1 %654 }
 0x73a   :  { %v663_v53 = vsel %vm162_vm0, %v655_v41, %v661_v40 }
 0x73b   :  { %3917 = vmatmul.msk.f32.vlgmr.msra.gmra.mxu0 %vm261_vm13, %v663_v53  ;;  %3918 = vmatmul.msk.f32.vlgmr.msra.gmra.mxu1 %vm261_vm13, %v663_v53 }
 0x73c   :  { %1211 = vmatpush.msra.mxu0 %v4604_v0  ;;  %1231 = vmatpush.msra.mxu1 %v4620_v6  ;;  %v229_v0 = vrot.slane %v4780_v45, 6 }
 0x73e   :  { %1212 = vmatpush.msra.mxu0 %v4609_v2  ;;  %1232 = vmatpush.msra.mxu1 %v4631_v10  ;;  %v745_v2 = vrot.slane %v4796_v57, 2 }
 0x740   :  { %1213 = vmatpush.msra.mxu0 %v4618_v5  ;;  %1233 = vmatpush.msra.mxu1 %v4656_v18 }
 0x742   :  { %1214 = vmatpush.msra.mxu0 %v4629_v9  ;;  %1234 = vmatpush.msra.mxu1 %v4662_v20 }
 0x744   :  { %1215 = vmatpush.msra.mxu0 %v4654_v17  ;;  %1235 = vmatpush.msra.mxu1 %v4667_v22 }
 0x746   :  { %1216 = vmatpush.msra.mxu0 %v4665_v21  ;;  %1236 = vmatpush.msra.mxu1 %v4688_v28 }
 0x748   :  { %1217 = vmatpush.msra.mxu0 %v4681_v26  ;;  %1237 = vmatpush.msra.mxu1 %v4698_v30 }
 0x74a   :  { %1218 = vmatpush.msra.mxu0 %v4692_v29  ;;  %1238 = vmatpush.msra.mxu1 %v4705_v32 }
 0x7b8   :  { %v684_v5 = vpop.f32.mrf.mxu0  ;;  %v704_v6 = vpop.f32.mrf.mxu1 }
 0x7b9   :  { %v707_v9 = vadd.f32 %v684_v5, %v229_v0  ;;  %v747_v10 = vadd.f32 %v745_v2, %v704_v6 }
 0x7bb   :  { %4050 = vtanh.f32 %v707_v9  ;;  %v3919_v20 = vmul.f32 -1.442695, %v707_v9  ;;  %v3920_v21 = vmul.f32 -1.442695, %v747_v10 }
 0x7bc   :  { %4052 = vtanh.f32 %v747_v10  ;;  %v4949_v10 = vld.sshfl [vmem:[#allocation1 + $0x20] sm:$0xff pattern:$0x73625140] }
 0x7bd   :  { %4054 = vpow2.f32 %v3919_v20 }
 0x7be   :  { %4056 = vpow2.f32 %v3920_v21 }
 0x7c1   :  { %v4051_v17 = vpop.eup %4050 }
 0x7c2   :  { %v4053_v18 = vpop.eup %4052  ;;  %730 = vrot.lane.b32.xlu0 %v4051_v17, %s4501_s3 }
 0x7c3   :  { %770 = vrot.lane.b32.xlu1 %v4053_v18, %s4501_s3  ;;  %v4055_v22 = vpop.eup %4054 }
 0x7c4   :  { %v4057_v26 = vpop.eup %4056  ;;  %v711_v28 = vadd.f32 1.0, %v4055_v22 }
 0x7c5   :  { %v751_v29 = vadd.f32 1.0, %v4057_v26 }
 0x7c6   :  { %4058 = vrcp.f32 %v711_v28  ;;  %v723_v63 = vand.u32 2147483648, %v711_v28  ;;  %vm717_vm11 = vweird.f32 %v711_v28  ;;  %v721_v4 = vand.u32 2147483647, %v711_v28 }
 0x7c7   :  { %4060 = vrcp.f32 %v751_v29  ;;  %v763_v1 = vand.u32 2147483648, %v751_v29  ;;  %vm757_vm12 = vweird.f32 %v751_v29  ;;  %v761_v7 = vand.u32 2147483647, %v751_v29 }
 0x7c8   :  { %v724_v13 = vor.u32 1.1754944e-38, %v723_v63  ;;  %vm722_vm5 = vcmp.eq.f32.partialorder %v721_v4, 8.507059e+37 }
 0x7c9   :  { %v764_v14 = vor.u32 1.1754944e-38, %v763_v1  ;;  %vm762_vm6 = vcmp.eq.f32.partialorder %v761_v7, 8.507059e+37 }
 0x7cc   :  { %v4059_v30 = vpop.eup %4058 }
 0x7cd   :  { %v4061_v32 = vpop.eup %4060  ;;  %v713_v62 = vmul.f32 %v4059_v30, %v711_v28  ;;  %vm718_vm9 = vweird.f32 %v4059_v30  ;;  %v879_v28 = vrot.slane %v229_v0, 2 }
 0x7ce   :  { %v753_v47 = vmul.f32 %v4061_v32, %v751_v29  ;;  %vm758_vm10 = vweird.f32 %v4061_v32  ;;  %vm719_vm14 = vmor %vm717_vm11, %vm718_vm9 }
 0x7cf   :  { %v714_v48 = vsub.f32 1.0, %v713_v62  ;;  %vm759_vm15 = vmor %vm757_vm12, %vm758_vm10 }
 0x7d0   :  { %v754_v49 = vsub.f32 1.0, %v753_v47 }
 0x7d1   :  { %v715_v50 = vmul.f32 %v4059_v30, %v714_v48 }
 0x7d2   :  { %v755_v51 = vmul.f32 %v4061_v32, %v754_v49 }
 0x7d3   :  { %v716_v60 = vadd.f32 %v4059_v30, %v715_v50 }
 0x7d4   :  { %v756_v61 = vadd.f32 %v4061_v32, %v755_v51 }
 0x7d5   :  { %v720_v11 = vsel %vm719_vm14, %v4059_v30, %v716_v60 }
 0x7d6   :  { %v760_v12 = vsel %vm759_vm15, %v4061_v32, %v756_v61  ;;  %v725_v24 = vsel %vm722_vm5, %v724_v13, %v720_v11 }
 0x7d7   :  { %v765_v31 = vsel %vm762_vm6, %v764_v14, %v760_v12  ;;  %v728_v39 = vmul.f32 %v725_v24, %v4900_v27 }
 0x7d8   :  { %v768_v53 = vmul.f32 %v765_v31, %v4895_v19 }
 0x834   :  { %v731_v23 = vpop.permute.xlu0 %730 }
 0x835   :  { %v771_v25 = vpop.permute.xlu1 %770  ;;  %v733_v34 = vmul.f32 %v731_v23, %v725_v24 }
 0x836   :  { %v773_v35 = vmul.f32 %v771_v25, %v765_v31 }
 0x837   :  { %735 = vrot.lane.b32.xlu2 %v733_v34, %s4502_s4 }
 0x838   :  { %775 = vrot.lane.b32.xlu0 %v773_v35, %s4502_s4 }
 0x891   :  { %v736_v37 = vpop.permute.xlu2 %735 }
 0x892   :  { %v4940_v40 = vadd.f32 %v736_v37, %v728_v39 }
 0x894   :  { %4062 = vtanh.f32 %v4940_v40 }
 0x89a   :  { %v4063_v41 = vpop.eup %4062 }
 0x89b   :  { %741 = vrot.lane.b32.xlu1 %v4063_v41, %s4501_s3 }
 0x8aa   :  { %v776_v2 = vpop.permute.xlu0 %775 }
 0x8ab   :  { %v4945_v5 = vadd.f32 %v776_v2, %v768_v53 }
 0x8ad   :  { %4064 = vtanh.f32 %v4945_v5 }
 0x8b3   :  { %v4065_v6 = vpop.eup %4064 }
 0x8b4   :  { %781 = vrot.lane.b32.xlu2 %v4065_v6, %s4501_s3 }
 0x90d   :  { %v742_v9 = vpop.permute.xlu1 %741 }
 0x90e   :  { %v744_v27 = vmul.f32 %v742_v9, %v725_v24  ;;  %v782_v17 = vpop.permute.xlu2 %781 }
 0x90f   :  { %v4951_v18 = vmul.f32 %v782_v17, %v765_v31 }
 0x910   :  { %786 = vst [vmem:[#allocation1] ss:$4 sm:$0xff] %v744_v27 }
 0x911   :  { %1329 = vst [vmem:[#allocation1 + $0x20] ss:$4 sm:$0xff] %v744_v27 }
 0x917   :  { %v787_v20 = vld.sshfl [vmem:[#allocation1] sm:$0xff pattern:$0x73625140] }
 0x918   :  { %792 = vst [vmem:[#allocation1] ss:$4 sm:$0xff] %v4951_v18  ;;  %788 = vrot.lane.b32.xlu0 %v787_v20, %s4502_s4 }
 0x91f   :  { %v793_v19 = vld.sshfl [vmem:[#allocation1] sm:$0xff pattern:$0x73625140] }
 0x920   :  { %794 = vrot.lane.b32.xlu1 %v793_v19, %s4501_s3 }
 0x98a   :  { %v789_v21 = vpop.permute.xlu0 %788 }
 0x992   :  { %v795_v22 = vpop.permute.xlu1 %794 }
 0x993   :  { %v797_v26 = vsel %vm162_vm0, %v789_v21, %v795_v22 }
 0x994   :  { %3921 = vmatmul.msk.f32.vlgmr.msra.gmra.mxu2 %vm261_vm13, %v797_v26  ;;  %3922 = vmatmul.msk.f32.vlgmr.msra.gmra.mxu3 %vm261_vm13, %v797_v26 }
 0xa17   :  { %v818_v29 = vpop.f32.mrf.mxu2  ;;  %v838_v30 = vpop.f32.mrf.mxu3 }
 0xa18   :  { %v841_v32 = vadd.f32 %v818_v29, %v4796_v57  ;;  %v881_v62 = vadd.f32 %v879_v28, %v838_v30 }
 0xa1a   :  { %4066 = vtanh.f32 %v841_v32  ;;  %v3923_v49 = vmul.f32 -1.442695, %v841_v32  ;;  %v3924_v0 = vmul.f32 -1.442695, %v881_v62 }
 0xa1b   :  { %4068 = vtanh.f32 %v881_v62 }
 0xa1c   :  { %4070 = vpow2.f32 %v3923_v49 }
 0xa20   :  { %v4067_v47 = vpop.eup %4066 }
 0xa21   :  { %v4069_v48 = vpop.eup %4068  ;;  %864 = vrot.lane.b32.xlu2 %v4067_v47, %s4501_s3 }
 0xa22   :  { %904 = vrot.lane.b32.xlu0 %v4069_v48, %s4501_s3  ;;  %v4071_v50 = vpop.eup %4070 }
 0xa23   :  { %v845_v51 = vadd.f32 1.0, %v4071_v50 }
 0xa25   :  { %4072 = vrcp.f32 %v845_v51  ;;  %v857_v7 = vand.u32 2147483648, %v845_v51  ;;  %vm851_vm8 = vweird.f32 %v845_v51  ;;  %v855_v11 = vand.u32 2147483647, %v845_v51 }
 0xa26   :  { %4074 = vpow2.f32 %v3924_v0 }
 0xa27   :  { %v858_v13 = vor.u32 1.1754944e-38, %v857_v7  ;;  %vm856_vm10 = vcmp.eq.f32.partialorder %v855_v11, 8.507059e+37 }
 0xa2b   :  { %v4073_v45 = vpop.eup %4072 }
 0xa2c   :  { %v847_v60 = vmul.f32 %v4073_v45, %v845_v51  ;;  %v4075_v63 = vpop.eup %4074  ;;  %vm852_vm7 = vweird.f32 %v4073_v45  ;;  %v1013_v51 = vrot.slane %v226_v59, 2 }
 0xa2d   :  { %v885_v1 = vadd.f32 1.0, %v4075_v63  ;;  %vm853_vm9 = vmor %vm851_vm8, %vm852_vm7 }
 0xa2e   :  { %v848_v61 = vsub.f32 1.0, %v847_v60 }
 0xa2f   :  { %4076 = vrcp.f32 %v885_v1  ;;  %v897_v37 = vand.u32 2147483648, %v885_v1  ;;  %vm891_vm12 = vweird.f32 %v885_v1  ;;  %v895_v41 = vand.u32 2147483647, %v885_v1 }
 0xa30   :  { %v849_v57 = vmul.f32 %v4073_v45, %v848_v61 }
 0xa31   :  { %v898_v2 = vor.u32 1.1754944e-38, %v897_v37  ;;  %vm896_vm15 = vcmp.eq.f32.partialorder %v895_v41, 8.507059e+37 }
 0xa32   :  { %v850_v4 = vadd.f32 %v4073_v45, %v849_v57 }
 0xa34   :  { %v854_v12 = vsel %vm853_vm9, %v4073_v45, %v850_v4 }
 0xa35   :  { %v859_v23 = vsel %vm856_vm10, %v858_v13, %v854_v12  ;;  %v4077_v25 = vpop.eup %4076 }
 0xa36   :  { %v887_v31 = vmul.f32 %v4077_v25, %v885_v1  ;;  %vm892_vm11 = vweird.f32 %v4077_v25  ;;  %v862_v17 = vmul.f32 %v859_v23, %v4940_v40 }
 0xa37   :  { %vm893_vm14 = vmor %vm891_vm12, %vm892_vm11 }
 0xa38   :  { %v888_v34 = vsub.f32 1.0, %v887_v31 }
 0xa3a   :  { %v889_v35 = vmul.f32 %v4077_v25, %v888_v34 }
 0xa3c   :  { %v890_v39 = vadd.f32 %v4077_v25, %v889_v35 }
 0xa3e   :  { %v894_v53 = vsel %vm893_vm14, %v4077_v25, %v890_v39 }
 0xa3f   :  { %v899_v9 = vsel %vm896_vm15, %v898_v2, %v894_v53 }
 0xa40   :  { %v902_v20 = vmul.f32 %v899_v9, %v4945_v5 }
 0xa7b   :  { %v865_v14 = vpop.permute.xlu2 %864 }
 0xa7c   :  { %v867_v24 = vmul.f32 %v865_v14, %v859_v23 }
 0xa7e   :  { %869 = vrot.lane.b32.xlu1 %v867_v24, %s4502_s4 }
 0xa94   :  { %v905_v6 = vpop.permute.xlu0 %904 }
 0xa95   :  { %v907_v27 = vmul.f32 %v905_v6, %v899_v9 }
 0xa97   :  { %909 = vrot.lane.b32.xlu2 %v907_v27, %s4502_s4 }
 0xaf0   :  { %v870_v19 = vpop.permute.xlu1 %869 }
 0xaf1   :  { %v910_v21 = vpop.permute.xlu2 %909  ;;  %v4968_v22 = vadd.f32 %v870_v19, %v862_v17 }
 0xaf2   :  { %v4970_v26 = vadd.f32 %v910_v21, %v902_v20 }
 0xaf3   :  { %4078 = vtanh.f32 %v4968_v22 }
 0xaf4   :  { %4080 = vtanh.f32 %v4970_v26 }
 0xaf9   :  { %v4079_v28 = vpop.eup %4078 }
 0xafa   :  { %v4081_v29 = vpop.eup %4080  ;;  %875 = vrot.lane.b32.xlu0 %v4079_v28, %s4501_s3 }
 0xafb   :  { %915 = vrot.lane.b32.xlu1 %v4081_v29, %s4501_s3 }
 0xb6c   :  { %v876_v30 = vpop.permute.xlu0 %875 }
 0xb6d   :  { %v4976_v40 = vmul.f32 %v876_v30, %v859_v23  ;;  %v916_v5 = vpop.permute.xlu1 %915 }
 0xb6e   :  { %v4979_v32 = vmul.f32 %v916_v5, %v899_v9 }
 0xb6f   :  { %920 = vst [vmem:[#allocation1] ss:$4 sm:$0xff] %v4976_v40 }
 0xb76   :  { %v921_v62 = vld.sshfl [vmem:[#allocation1] sm:$0xff pattern:$0x73625140] }
 0xb77   :  { %926 = vst [vmem:[#allocation1] ss:$4 sm:$0xff] %v4979_v32  ;;  %922 = vrot.lane.b32.xlu2 %v921_v62, %s4502_s4 }
 0xb7e   :  { %v927_v47 = vld.sshfl [vmem:[#allocation1] sm:$0xff pattern:$0x73625140] }
 0xb7f   :  { %928 = vrot.lane.b32.xlu0 %v927_v47, %s4501_s3 }
 0xbd1   :  { %v923_v48 = vpop.permute.xlu2 %922 }
 0xbf1   :  { %v929_v49 = vpop.permute.xlu0 %928 }
 0xbf2   :  { %v931_v50 = vsel %vm162_vm0, %v923_v48, %v929_v49 }
 0xbf3   :  { %3925 = vmatmul.msk.f32.vlgmr.msrb.gmra.mxu0 %vm261_vm13, %v931_v50  ;;  %3926 = vmatmul.msk.f32.vlgmr.msrb.gmra.mxu1 %vm261_vm13, %v931_v50 }
 0xc70   :  { %v952_v45 = vpop.f32.mrf.mxu0  ;;  %v972_v0 = vpop.f32.mrf.mxu1 }
 0xc71   :  { %v975_v60 = vadd.f32 %v952_v45, %v232_v52  ;;  %v1015_v61 = vadd.f32 %v1013_v51, %v972_v0  ;;  %v5005_v45 = vld.sshfl [vmem:[#allocation1 + $0x20] sm:$0xff pattern:$0x73625140] }
 0xc73   :  { %4082 = vtanh.f32 %v975_v60  ;;  %v3928_v1 = vmul.f32 -1.442695, %v1015_v61  ;;  %v3927_v59 = vmul.f32 -1.442695, %v975_v60 }
 0xc74   :  { %4084 = vtanh.f32 %v1015_v61 }
 0xc75   :  { %4086 = vpow2.f32 %v3928_v1 }
 0xc79   :  { %v4083_v57 = vpop.eup %4082 }
 0xc7a   :  { %v4085_v63 = vpop.eup %4084  ;;  %998 = vrot.lane.b32.xlu1 %v4083_v57, %s4501_s3 }
 0xc7b   :  { %1038 = vrot.lane.b32.xlu2 %v4085_v63, %s4501_s3  ;;  %v4087_v4 = vpop.eup %4086 }
 0xc7c   :  { %v1019_v7 = vadd.f32 1.0, %v4087_v4  ;;  %v1147_v4 = vrot.slane %v223_v16, 2 }
 0xc7e   :  { %4088 = vrcp.f32 %v1019_v7  ;;  %v1031_v23 = vand.u32 2147483648, %v1019_v7  ;;  %vm1025_vm6 = vweird.f32 %v1019_v7  ;;  %v1029_v24 = vand.u32 2147483647, %v1019_v7 }
 0xc7f   :  { %4090 = vpow2.f32 %v3927_v59 }
 0xc80   :  { %v1032_v31 = vor.u32 1.1754944e-38, %v1031_v23  ;;  %vm1030_vm8 = vcmp.eq.f32.partialorder %v1029_v24, 8.507059e+37 }
 0xc84   :  { %v4089_v44 = vpop.eup %4088 }
 0xc85   :  { %v1021_v11 = vmul.f32 %v4089_v44, %v1019_v7  ;;  %v4091_v52 = vpop.eup %4090  ;;  %vm1026_vm5 = vweird.f32 %v4089_v44 }
 0xc86   :  { %v979_v13 = vadd.f32 1.0, %v4091_v52  ;;  %vm1027_vm7 = vmor %vm1025_vm6, %vm1026_vm5 }
 0xc87   :  { %v1022_v56 = vsub.f32 1.0, %v1021_v11 }
 0xc88   :  { %4092 = vrcp.f32 %v979_v13  ;;  %v991_v9 = vand.u32 2147483648, %v979_v13  ;;  %vm985_vm10 = vweird.f32 %v979_v13  ;;  %v989_v27 = vand.u32 2147483647, %v979_v13 }
 0xc89   :  { %v1023_v12 = vmul.f32 %v4089_v44, %v1022_v56 }
 0xc8a   :  { %v992_v20 = vor.u32 1.1754944e-38, %v991_v9  ;;  %vm990_vm12 = vcmp.eq.f32.partialorder %v989_v27, 8.507059e+37 }
 0xc8b   :  { %v1024_v14 = vadd.f32 %v4089_v44, %v1023_v12 }
 0xc8d   :  { %v1028_v25 = vsel %vm1027_vm7, %v4089_v44, %v1024_v14 }
 0xc8e   :  { %v1033_v35 = vsel %vm1030_vm8, %v1032_v31, %v1028_v25  ;;  %v4093_v39 = vpop.eup %4092 }
 0xc8f   :  { %v981_v41 = vmul.f32 %v4093_v39, %v979_v13  ;;  %vm986_vm9 = vweird.f32 %v4093_v39  ;;  %v1036_v29 = vmul.f32 %v1033_v35, %v4970_v26 }
 0xc90   :  { %vm987_vm11 = vmor %vm985_vm10, %vm986_vm9 }
 0xc91   :  { %v982_v53 = vsub.f32 1.0, %v981_v41 }
 0xc93   :  { %v983_v2 = vmul.f32 %v4093_v39, %v982_v53 }
 0xc95   :  { %v984_v6 = vadd.f32 %v4093_v39, %v983_v2 }
 0xc97   :  { %v988_v17 = vsel %vm987_vm11, %v4093_v39, %v984_v6 }
 0xc98   :  { %v993_v21 = vsel %vm990_vm12, %v992_v20, %v988_v17 }
 0xc99   :  { %v996_v47 = vmul.f32 %v993_v21, %v4968_v22 }
 0xcd5   :  { %v1039_v34 = vpop.permute.xlu2 %1038 }
 0xcd6   :  { %v1041_v37 = vmul.f32 %v1039_v34, %v1033_v35 }
 0xcd8   :  { %1043 = vrot.lane.b32.xlu1 %v1041_v37, %s4502_s4 }
 0xcec   :  { %v999_v19 = vpop.permute.xlu1 %998 }
 0xced   :  { %v1001_v28 = vmul.f32 %v999_v19, %v993_v21 }
 0xcef   :  { %1003 = vrot.lane.b32.xlu0 %v1001_v28, %s4502_s4 }
 0xd4a   :  { %v1044_v30 = vpop.permute.xlu1 %1043 }
 0xd4b   :  { %v4996_v5 = vadd.f32 %v1044_v30, %v1036_v29 }
 0xd4d   :  { %4094 = vtanh.f32 %v4996_v5 }
 0xd53   :  { %v4095_v62 = vpop.eup %4094 }
 0xd54   :  { %1049 = vrot.lane.b32.xlu0 %v4095_v62, %s4501_s3 }
 0xd61   :  { %v1004_v48 = vpop.permute.xlu0 %1003 }
 0xd62   :  { %v5001_v49 = vadd.f32 %v1004_v48, %v996_v47 }
 0xd64   :  { %4096 = vtanh.f32 %v5001_v49 }
 0xd6a   :  { %v4097_v50 = vpop.eup %4096 }
 0xd6b   :  { %1009 = vrot.lane.b32.xlu2 %v4097_v50, %s4501_s3 }
 0xdc5   :  { %v1010_v51 = vpop.permute.xlu2 %1009 }
 0xdc6   :  { %v1012_v26 = vmul.f32 %v1010_v51, %v993_v21  ;;  %v1050_v0 = vpop.permute.xlu0 %1049 }
 0xdc7   :  { %v5007_v60 = vmul.f32 %v1050_v0, %v1033_v35 }
 0xdc8   :  { %1054 = vst [vmem:[#allocation1] ss:$4 sm:$0xff] %v1012_v26 }
 0xdc9   :  { %1333 = vst [vmem:[#allocation1 + $0x20] ss:$4 sm:$0xff] %v1012_v26 }
 0xdcf   :  { %v1055_v61 = vld.sshfl [vmem:[#allocation1] sm:$0xff pattern:$0x73625140] }
 0xdd0   :  { %1060 = vst [vmem:[#allocation1] ss:$4 sm:$0xff] %v5007_v60  ;;  %1056 = vrot.lane.b32.xlu1 %v1055_v61, %s4502_s4 }
 0xdd7   :  { %v1061_v22 = vld.sshfl [vmem:[#allocation1] sm:$0xff pattern:$0x73625140] }
 0xdd8   :  { %1062 = vrot.lane.b32.xlu2 %v1061_v22, %s4501_s3 }
 0xe32   :  { %v1063_v57 = vpop.permute.xlu2 %1062 }
 0xe42   :  { %v1057_v63 = vpop.permute.xlu1 %1056 }
 0xe43   :  { %v1065_v1 = vsel %vm162_vm0, %v1057_v63, %v1063_v57 }
 0xe44   :  { %3929 = vmatmul.msk.f32.vlgmr.msrb.gmra.mxu2 %vm261_vm13, %v1065_v1  ;;  %3930 = vmatmul.msk.f32.vlgmr.msrb.gmra.mxu3 %vm261_vm13, %v1065_v1 }
 0xec7   :  { %v1086_v7 = vpop.f32.mrf.mxu2  ;;  %v1106_v44 = vpop.f32.mrf.mxu3 }
 0xec8   :  { %v1109_v59 = vadd.f32 %v1086_v7, %v234_v15  ;;  %v1149_v11 = vadd.f32 %v1147_v4, %v1106_v44 }
 0xeca   :  { %4098 = vtanh.f32 %v1109_v59  ;;  %v3931_v12 = vmul.f32 -1.442695, %v1109_v59  ;;  %v3932_v13 = vmul.f32 -1.442695, %v1149_v11 }
 0xecb   :  { %4100 = vtanh.f32 %v1149_v11 }
 0xecc   :  { %4102 = vpow2.f32 %v3931_v12 }
 0xecd   :  { %4104 = vpow2.f32 %v3932_v13 }
 0xed0   :  { %v4099_v56 = vpop.eup %4098 }
 0xed1   :  { %v4101_v52 = vpop.eup %4100  ;;  %1132 = vrot.lane.b32.xlu0 %v4099_v56, %s4501_s3 }
 0xed2   :  { %1172 = vrot.lane.b32.xlu1 %v4101_v52, %s4501_s3  ;;  %v4103_v43 = vpop.eup %4102 }
 0xed3   :  { %v4105_v16 = vpop.eup %4104  ;;  %v1113_v14 = vadd.f32 1.0, %v4103_v43 }
 0xed4   :  { %v1153_v23 = vadd.f32 1.0, %v4105_v16 }
 0xed5   :  { %4106 = vrcp.f32 %v1113_v14  ;;  %v1125_v53 = vand.u32 2147483648, %v1113_v14  ;;  %vm1119_vm5 = vweird.f32 %v1113_v14  ;;  %v1123_v6 = vand.u32 2147483647, %v1113_v14 }
 0xed6   :  { %4108 = vrcp.f32 %v1153_v23  ;;  %v1165_v2 = vand.u32 2147483648, %v1153_v23  ;;  %vm1159_vm6 = vweird.f32 %v1153_v23  ;;  %v1163_v9 = vand.u32 2147483647, %v1153_v23 }
 0xed7   :  { %v1126_v20 = vor.u32 1.1754944e-38, %v1125_v53  ;;  %vm1124_vm9 = vcmp.eq.f32.partialorder %v1123_v6, 8.507059e+37 }
 0xed8   :  { %v1166_v19 = vor.u32 1.1754944e-38, %v1165_v2  ;;  %vm1164_vm10 = vcmp.eq.f32.partialorder %v1163_v9, 8.507059e+37 }
 0xedb   :  { %v4107_v55 = vpop.eup %4106 }
 0xedc   :  { %v4109_v15 = vpop.eup %4108  ;;  %v1115_v24 = vmul.f32 %v4107_v55, %v1113_v14  ;;  %vm1120_vm14 = vweird.f32 %v4107_v55 }
 0xedd   :  { %v1155_v25 = vmul.f32 %v4109_v15, %v1153_v23  ;;  %vm1160_vm15 = vweird.f32 %v4109_v15  ;;  %vm1121_vm7 = vmor %vm1119_vm5, %vm1120_vm14 }
 0xede   :  { %v1116_v31 = vsub.f32 1.0, %v1115_v24  ;;  %vm1161_vm8 = vmor %vm1159_vm6, %vm1160_vm15 }
 0xedf   :  { %v1156_v34 = vsub.f32 1.0, %v1155_v25 }
 0xee0   :  { %v1117_v35 = vmul.f32 %v4107_v55, %v1116_v31 }
 0xee1   :  { %v1157_v39 = vmul.f32 %v4109_v15, %v1156_v34 }
 0xee2   :  { %v1118_v37 = vadd.f32 %v4107_v55, %v1117_v35 }
 0xee3   :  { %v1158_v41 = vadd.f32 %v4109_v15, %v1157_v39 }
 0xee4   :  { %v1122_v27 = vsel %vm1121_vm7, %v4107_v55, %v1118_v37 }
 0xee5   :  { %v1162_v17 = vsel %vm1161_vm8, %v4109_v15, %v1158_v41  ;;  %v1127_v28 = vsel %vm1124_vm9, %v1126_v20, %v1122_v27 }
 0xee6   :  { %v1167_v30 = vsel %vm1164_vm10, %v1166_v19, %v1162_v17  ;;  %v1130_v48 = vmul.f32 %v1127_v28, %v5001_v49 }
 0xee7   :  { %v1170_v0 = vmul.f32 %v1167_v30, %v4996_v5 }
 0xf43   :  { %v1133_v21 = vpop.permute.xlu0 %1132 }
 0xf44   :  { %v1173_v29 = vpop.permute.xlu1 %1172  ;;  %v1135_v62 = vmul.f32 %v1133_v21, %v1127_v28 }
 0xf45   :  { %v1175_v47 = vmul.f32 %v1173_v29, %v1167_v30 }
 0xf46   :  { %1137 = vrot.lane.b32.xlu2 %v1135_v62, %s4502_s4 }
 0xf47   :  { %1177 = vrot.lane.b32.xlu0 %v1175_v47, %s4502_s4 }
 0xfa0   :  { %v1138_v50 = vpop.permute.xlu2 %1137 }
 0xfa1   :  { %v5024_v51 = vadd.f32 %v1138_v50, %v1130_v48 }
 0xfa3   :  { %4110 = vtanh.f32 %v5024_v51 }
 0xfa9   :  { %v4111_v26 = vpop.eup %4110 }
 0xfaa   :  { %1143 = vrot.lane.b32.xlu1 %v4111_v26, %s4501_s3  ;;  %v1334_v26 = vld.sshfl [vmem:[#allocation1 + $0x20] sm:$0xff pattern:$0x73625140] }
 0xfb9   :  { %v1178_v61 = vpop.permute.xlu0 %1177 }
 0xfba   :  { %v5029_v22 = vadd.f32 %v1178_v61, %v1170_v0 }
 0xfbc   :  { %4112 = vtanh.f32 %v5029_v22 }
 0xfc2   :  { %v4113_v57 = vpop.eup %4112 }
 0xfc3   :  { %1183 = vrot.lane.b32.xlu2 %v4113_v57, %s4501_s3 }
0x101c   :  { %v1144_v63 = vpop.permute.xlu1 %1143 }
0x101d   :  { %v1146_v49 = vmul.f32 %v1144_v63, %v1127_v28  ;;  %v1184_v1 = vpop.permute.xlu2 %1183 }
0x101e   :  { %v5033_v4 = vmul.f32 %v1184_v1, %v1167_v30 }
0x101f   :  { %1188 = vst [vmem:[#allocation1] ss:$4 sm:$0xff] %v1146_v49 }
0x1026   :  { %v1189_v7 = vld.sshfl [vmem:[#allocation1] sm:$0xff pattern:$0x73625140] }
0x1027   :  { %1194 = vst [vmem:[#allocation1] ss:$4 sm:$0xff] %v5033_v4  ;;  %1190 = vrot.lane.b32.xlu0 %v1189_v7, %s4502_s4 }
0x102e   :  { %v1195_v5 = vld.sshfl [vmem:[#allocation1] sm:$0xff pattern:$0x73625140] }
0x102f   :  { %1322 = vst [vmem:[#allocation1] ss:$4 sm:$0xff] %v4813_v3  ;;  %1196 = vrot.lane.b32.xlu1 %v1195_v5, %s4501_s3  ;;  %v1281_v3 = vrot.slane %v4783_v46, 2 }
0x1036   :  { %v5039_v44 = vld.sshfl [vmem:[#allocation1] sm:$0xff pattern:$0x73625140] }
0x1037   :  { %1327 = vst [vmem:[#allocation1] ss:$4 sm:$0xff] %v4904_v38 }
0x103e   :  { %v5042_v59 = vld.sshfl [vmem:[#allocation1] sm:$0xff pattern:$0x73625140] }
0x103f   :  { %1331 = vst [vmem:[#allocation1] ss:$4 sm:$0xff] %v4976_v40 }
0x1046   :  { %v5045_v11 = vld.sshfl [vmem:[#allocation1] sm:$0xff pattern:$0x73625140] }
0x1047   :  { %1335 = vst [vmem:[#allocation1] ss:$4 sm:$0xff] %v1146_v49 }
0x1099   :  { %v1191_v56 = vpop.permute.xlu0 %1190 }
0x10a1   :  { %v1197_v52 = vpop.permute.xlu1 %1196 }
0x10a2   :  { %v1199_v12 = vsel %vm162_vm0, %v1191_v56, %v1197_v52 }
0x10a3   :  { %3933 = vmatmul.msk.f32.vlgmr.msra.gmra.mxu0 %vm261_vm13, %v1199_v12  ;;  %3934 = vmatmul.msk.f32.vlgmr.msra.gmra.mxu1 %vm261_vm13, %v1199_v12 }
0x1120   :  { %v1220_v13 = vpop.f32.mrf.mxu0  ;;  %v1240_v43 = vpop.f32.mrf.mxu1 }
0x1121   :  { %v1243_v38 = vadd.f32 %v1220_v13, %v236_v58  ;;  %v1283_v16 = vadd.f32 %v1281_v3, %v1240_v43  ;;  %v1427_v43 = vld [vmem:[#allocation5 + $0x70] sm:$0xff] }
0x1122   :  { %1472 = vmatpush.msra.mxu2 %v1427_v43 }
0x1123   :  { %4114 = vtanh.f32 %v1243_v38  ;;  %v3935_v23 = vmul.f32 -1.442695, %v1243_v38  ;;  %v3936_v24 = vmul.f32 -1.442695, %v1283_v16  ;;  %v1428_v38 = vld [vmem:[#allocation5 + $0x78] sm:$0xff] }
0x1124   :  { %4116 = vtanh.f32 %v1283_v16  ;;  %v1425_v16 = vld [vmem:[#allocation5 + $0x60] sm:$0xff]  ;;  %1495 = vmatpush.msra.mxu3 %v1428_v38 }
0x1125   :  { %4118 = vpow2.f32 %v3935_v23  ;;  %1473 = vmatpush.msra.mxu2 %v1425_v16 }
0x1129   :  { %v4115_v40 = vpop.eup %4114 }
0x112a   :  { %v4117_v14 = vpop.eup %4116  ;;  %1266 = vrot.lane.b32.xlu2 %v4115_v40, %s4501_s3  ;;  %v1424_v40 = vld [vmem:[#allocation5 + $0x58] sm:$0xff] }
0x112b   :  { %1306 = vrot.lane.b32.xlu0 %v4117_v14, %s4501_s3  ;;  %v4119_v55 = vpop.eup %4118 }
0x112c   :  { %v1247_v15 = vadd.f32 1.0, %v4119_v55 }
0x112e   :  { %4120 = vrcp.f32 %v1247_v15  ;;  %v1259_v39 = vand.u32 2147483648, %v1247_v15  ;;  %vm1253_vm12 = vweird.f32 %v1247_v15  ;;  %v1257_v37 = vand.u32 2147483647, %v1247_v15 }
0x112f   :  { %4122 = vpow2.f32 %v3936_v24  ;;  %v1422_v24 = vld [vmem:[#allocation5 + $0x48] sm:$0xff] }
0x1130   :  { %v1260_v53 = vor.u32 1.1754944e-38, %v1259_v39  ;;  %vm1258_vm15 = vcmp.eq.f32.partialorder %v1257_v37, 8.507059e+37  ;;  %v5098_v37 = vld [vmem:[#allocation7 + $0x70] sm:$0xff] }
0x1131   :  { %1562 = vmatpush.msrb.mxu0 %v5098_v37 }
0x1134   :  { %v4121_v46 = vpop.eup %4120 }
0x1135   :  { %v1249_v25 = vmul.f32 %v4121_v46, %v1247_v15  ;;  %v4123_v31 = vpop.eup %4122  ;;  %vm1254_vm11 = vweird.f32 %v4121_v46 }
0x1136   :  { %v1287_v34 = vadd.f32 1.0, %v4123_v31  ;;  %vm1255_vm14 = vmor %vm1253_vm12, %vm1254_vm11  ;;  %v1417_v31 = vld [vmem:[#allocation5 + $0x20] sm:$0xff] }
0x1137   :  { %v1250_v54 = vsub.f32 1.0, %v1249_v25  ;;  %v1419_v25 = vld [vmem:[#allocation5 + $0x30] sm:$0xff] }
0x1138   :  { %4124 = vrcp.f32 %v1287_v34  ;;  %v1299_v28 = vand.u32 2147483648, %v1287_v34  ;;  %vm1293_vm6 = vweird.f32 %v1287_v34  ;;  %v1297_v29 = vand.u32 2147483647, %v1287_v34 }
0x1139   :  { %v1251_v58 = vmul.f32 %v4121_v46, %v1250_v54  ;;  %v1420_v54 = vld [vmem:[#allocation5 + $0x38] sm:$0xff] }
0x113a   :  { %v1300_v62 = vor.u32 1.1754944e-38, %v1299_v28  ;;  %vm1298_vm8 = vcmp.eq.f32.partialorder %v1297_v29, 8.507059e+37  ;;  %v5113_v28 = vld [vmem:[#allocation7 + $0x30] sm:$0xff] }
0x113b   :  { %v1252_v35 = vadd.f32 %v4121_v46, %v1251_v58 }
0x113d   :  { %v1256_v41 = vsel %vm1255_vm14, %v4121_v46, %v1252_v35  ;;  %v1421_v46 = vld [vmem:[#allocation5 + $0x40] sm:$0xff] }
0x113e   :  { %v1261_v6 = vsel %vm1258_vm15, %v1260_v53, %v1256_v41  ;;  %v4125_v27 = vpop.eup %4124  ;;  %v1415_v41 = vld [vmem:[#allocation5 + $0x10] sm:$0xff]  ;;  %v1416_v53 = vld [vmem:[#allocation5 + $0x18] sm:$0xff] }
0x113f   :  { %v1289_v17 = vmul.f32 %v4125_v27, %v1287_v34  ;;  %vm1294_vm5 = vweird.f32 %v4125_v27  ;;  %v1264_v0 = vmul.f32 %v1261_v6, %v5024_v51  ;;  %v1418_v34 = vld [vmem:[#allocation5 + $0x28] sm:$0xff] }
0x1140   :  { %vm1295_vm7 = vmor %vm1293_vm6, %vm1294_vm5 }
0x1141   :  { %v1290_v20 = vsub.f32 1.0, %v1289_v17  ;;  %v5105_v17 = vld [vmem:[#allocation7 + $0x50] sm:$0xff] }
0x1143   :  { %v1291_v19 = vmul.f32 %v4125_v27, %v1290_v20  ;;  %v5109_v20 = vld [vmem:[#allocation7 + $0x40] sm:$0xff] }
0x1145   :  { %v1292_v21 = vadd.f32 %v4125_v27, %v1291_v19 }
0x1147   :  { %v1296_v30 = vsel %vm1295_vm7, %v4125_v27, %v1292_v21  ;;  %v1414_v27 = vld [vmem:[#allocation5 + $0x8] sm:$0xff] }
0x1148   :  { %v1301_v48 = vsel %vm1298_vm8, %v1300_v62, %v1296_v30  ;;  %v5117_v30 = vld [vmem:[#allocation7 + $0x20] sm:$0xff]  ;;  %v5120_v62 = vld [vmem:[#allocation7 + $0x10] sm:$0xff] }
0x1149   :  { %v1304_v61 = vmul.f32 %v1301_v48, %v5029_v22 }
0x1184   :  { %v1267_v2 = vpop.permute.xlu2 %1266 }
0x1185   :  { %v1269_v9 = vmul.f32 %v1267_v2, %v1261_v6 }
0x1187   :  { %1271 = vrot.lane.b32.xlu1 %v1269_v9, %s4502_s4  ;;  %v1413_v9 = vld [vmem:[#allocation5] sm:$0xff] }
0x119d   :  { %v1307_v47 = vpop.permute.xlu0 %1306 }
0x119e   :  { %v1309_v50 = vmul.f32 %v1307_v47, %v1301_v48  ;;  %v5122_v47 = vld [vmem:[#allocation7 + $0x78] sm:$0xff] }
0x119f   :  { %1582 = vmatpush.msrb.mxu1 %v5122_v47 }
0x11a0   :  { %1311 = vrot.lane.b32.xlu2 %v1309_v50, %s4502_s4  ;;  %v5128_v50 = vld [vmem:[#allocation7] sm:$0xff] }
0x11a8   :  { %1339 = vrot.lane.b32.xlu2 %v5039_v44, %s4502_s4 }
0x11b0   :  { %1345 = vrot.lane.b32.xlu2 %v5005_v45, %s4502_s4  ;;  %v1336_v45 = vld.sshfl [vmem:[#allocation1] sm:$0xff pattern:$0x73625140] }
0x11b8   :  { %1349 = vrot.lane.b32.xlu2 %v1334_v26, %s4502_s4  ;;  %v5130_v26 = vld [vmem:[#allocation7 + $0x58] sm:$0xff] }
0x11f9   :  { %v1272_v57 = vpop.permute.xlu1 %1271 }
0x11fa   :  { %v1312_v63 = vpop.permute.xlu2 %1311  ;;  %v1274_v49 = vadd.f32 %v1272_v57, %v1264_v0  ;;  %v5136_v0 = vld [vmem:[#allocation7 + $0x48] sm:$0xff] }
0x11fb   :  { %v1314_v1 = vadd.f32 %v1312_v63, %v1304_v61 }
0x11fc   :  { %4126 = vtanh.f32 %v1274_v49 }
0x11fd   :  { %4128 = vtanh.f32 %v1314_v1  ;;  %v5146_v1 = vld [vmem:[#allocation7 + $0x38] sm:$0xff] }
0x1202   :  { %v4127_v7 = vpop.eup %4126 }
0x1203   :  { %v4129_v5 = vpop.eup %4128  ;;  %1277 = vrot.lane.b32.xlu0 %v4127_v7, %s4501_s3  ;;  %v5151_v7 = vld [vmem:[#allocation7 + $0x28] sm:$0xff] }
0x1204   :  { %1317 = vrot.lane.b32.xlu1 %v4129_v5, %s4501_s3  ;;  %v5157_v5 = vld [vmem:[#allocation7 + $0x18] sm:$0xff] }
0x120b   :  { %1341 = vrot.lane.b32.xlu0 %v4949_v10, %s4502_s4 }
0x120c   :  { %1343 = vrot.lane.b32.xlu1 %v5042_v59, %s4502_s4 }
0x1213   :  { %1351 = vrot.lane.b32.xlu0 %v1336_v45, %s4502_s4  ;;  %v5163_v45 = vld [vmem:[#allocation7 + $0x8] sm:$0xff] }
0x1214   :  { %1347 = vrot.lane.b32.xlu1 %v5045_v11, %s4502_s4 }
0x1275   :  { %v1278_v51 = vpop.permute.xlu0 %1277 }
0x1276   :  { %v1318_v22 = vpop.permute.xlu1 %1317  ;;  %v1280_v44 = vmul.f32 %v1278_v51, %v1261_v6  ;;  %v5102_v6 = vld [vmem:[#allocation7 + $0x60] sm:$0xff] }
0x1277   :  { %v1320_v56 = vmul.f32 %v1318_v22, %v1301_v48  ;;  %1563 = vmatpush.msrb.mxu0 %v5102_v6  ;;  %v5126_v48 = vld [vmem:[#allocation7 + $0x68] sm:$0xff] }
0x1278   :  { %1337 = vst [vmem:[#allocation1 + $0x20] ss:$4 sm:$0xff] %v1280_v44  ;;  %1583 = vmatpush.msrb.mxu1 %v5126_v48 }
0x1279   :  { %1364 = vst [vmem:[#allocation1] ss:$4 sm:$0xff] %v1320_v56  ;;  %1564 = vmatpush.msrb.mxu0 %v5105_v17 }
0x127a   :  { %1584 = vmatpush.msrb.mxu1 %v5130_v26 }
0x127b   :  { %1565 = vmatpush.msrb.mxu0 %v5109_v20 }
0x127c   :  { %1585 = vmatpush.msrb.mxu1 %v5136_v0 }
0x127d   :  { %v5093_v23 = vpop.permute.xlu0 %1341  ;;  %1566 = vmatpush.msrb.mxu0 %v5113_v28 }
0x127e   :  { %v1344_v14 = vpop.permute.xlu1 %1343  ;;  %1586 = vmatpush.msrb.mxu1 %v5146_v1 }
0x127f   :  { %v1338_v52 = vld.sshfl [vmem:[#allocation1 + $0x20] sm:$0xff pattern:$0x73625140]  ;;  %1567 = vmatpush.msrb.mxu0 %v5117_v30 }
0x1280   :  { %v1365_v12 = vld.sshfl [vmem:[#allocation1] sm:$0xff pattern:$0x73625140]  ;;  %1367 = vst [vmem:[#allocation1 + $0x20] ss:$4 sm:$0xff] %v5033_v4  ;;  %1353 = vrot.lane.b32.xlu1 %v1338_v52, %s4502_s4  ;;  %1587 = vmatpush.msrb.mxu1 %v5151_v7 }
0x1281   :  { %1369 = vst [vmem:[#allocation1] ss:$4 sm:$0xff] %v5007_v60  ;;  %1381 = vrot.lane.b32.xlu0 %v1365_v12, %s4501_s3  ;;  %1568 = vmatpush.msrb.mxu0 %v5120_v62 }
0x1282   :  { %1588 = vmatpush.msrb.mxu1 %v5157_v5 }
0x1283   :  { %1569 = vmatpush.msrb.mxu0 %v5128_v50 }
0x1284   :  { %1570 = vmatmul.f32.vlgmr.msrb.gmra.mxu0 %v4500_v33  ;;  %1589 = vmatpush.msrb.mxu1 %v5163_v45 }
0x1285   :  { %v5096_v35 = vpop.permute.xlu0 %1351  ;;  %1830 = vmatpush.msra.mxu0 %v5098_v37  ;;  %1590 = vmatmul.f32.vlgmr.msrb.gmra.mxu1 %v4500_v33 }
0x1286   :  { %v1348_v58 = vpop.permute.xlu1 %1347  ;;  %1850 = vmatpush.msra.mxu1 %v5122_v47 }
0x1287   :  { %v1368_v10 = vld.sshfl [vmem:[#allocation1 + $0x20] sm:$0xff pattern:$0x73625140]  ;;  %1831 = vmatpush.msra.mxu0 %v5102_v6 }
0x1288   :  { %1371 = vst [vmem:[#allocation1 + $0x20] ss:$4 sm:$0xff] %v4979_v32  ;;  %1383 = vrot.lane.b32.xlu1 %v1368_v10, %s4501_s3  ;;  %v1370_v59 = vld.sshfl [vmem:[#allocation1] sm:$0xff pattern:$0x73625140]  ;;  %1851 = vmatpush.msra.mxu1 %v5126_v48 }
0x1289   :  { %1385 = vrot.lane.b32.xlu2 %v1370_v59, %s4501_s3  ;;  %1373 = vst [vmem:[#allocation1] ss:$4 sm:$0xff] %v4951_v18  ;;  %v1340_v18 = vpop.permute.xlu2 %1339  ;;  %1832 = vmatpush.msra.mxu0 %v5105_v17  ;;  %v1429_v59 = vld [vmem:[%s6152_s6] sm:$0x3] }
0x128a   :  { %1852 = vmatpush.msra.mxu1 %v5130_v26 }
0x128b   :  { %1833 = vmatpush.msra.mxu0 %v5109_v20 }
0x128c   :  { %1853 = vmatpush.msra.mxu1 %v5136_v0 }
0x128d   :  { %1834 = vmatpush.msra.mxu0 %v5113_v28 }
0x128e   :  { %1854 = vmatpush.msra.mxu1 %v5146_v1 }
0x128f   :  { %v1372_v11 = vld.sshfl [vmem:[#allocation1 + $0x20] sm:$0xff pattern:$0x73625140]  ;;  %1835 = vmatpush.msra.mxu0 %v5117_v30 }
0x1290   :  { %1375 = vst [vmem:[#allocation1 + $0x20] ss:$4 sm:$0xff] %v4907_v36  ;;  %1387 = vrot.lane.b32.xlu0 %v1372_v11, %s4501_s3  ;;  %v1374_v4 = vld.sshfl [vmem:[#allocation1] sm:$0xff pattern:$0x73625140]  ;;  %1855 = vmatpush.msra.mxu1 %v5151_v7  ;;  %v1432_v11 = vperm.slane %v1429_v59, 1 }
0x1291   :  { %1389 = vrot.lane.b32.xlu2 %v1374_v4, %s4501_s3  ;;  %1377 = vst [vmem:[#allocation1] ss:$4 sm:$0xff] %v4860_v42  ;;  %v5089_v36 = vpop.permute.xlu2 %1345  ;;  %v1426_v42 = vld [vmem:[#allocation5 + $0x68] sm:$0xff]  ;;  %1836 = vmatpush.msra.mxu0 %v5120_v62  ;;  %v1431_v4 = vperm.slane %v1429_v59, 0 }
0x1292   :  { %1496 = vmatpush.msra.mxu3 %v1426_v42  ;;  %1856 = vmatpush.msra.mxu1 %v5157_v5 }
0x1293   :  { %1837 = vmatpush.msra.mxu0 %v5128_v50 }
0x1294   :  { %1497 = vmatpush.msra.mxu3 %v1424_v40  ;;  %1857 = vmatpush.msra.mxu1 %v5163_v45 }
0x1295   :  { %2098 = vmatpush.msrb.mxu0 %v5098_v37 }
0x1296   :  { %1498 = vmatpush.msra.mxu3 %v1422_v24  ;;  %2118 = vmatpush.msrb.mxu1 %v5122_v47 }
0x1297   :  { %v1376_v60 = vld.sshfl [vmem:[#allocation1 + $0x20] sm:$0xff pattern:$0x73625140]  ;;  %2099 = vmatpush.msrb.mxu0 %v5102_v6 }
0x1298   :  { %1379 = vst [vmem:[#allocation1 + $0x20] ss:$4 sm:$0xff] %v4816_v8  ;;  %1391 = vrot.lane.b32.xlu0 %v1376_v60, %s4501_s3  ;;  %v1378_v32 = vld.sshfl [vmem:[#allocation1] sm:$0xff pattern:$0x73625140]  ;;  %v1423_v8 = vld [vmem:[#allocation5 + $0x50] sm:$0xff]  ;;  %1499 = vmatpush.msra.mxu3 %v1420_v54 }
0x1299   :  { %1393 = vrot.lane.b32.xlu1 %v1378_v32, %s4501_s3  ;;  %v5091_v13 = vpop.permute.xlu2 %1349  ;;  %1474 = vmatpush.msra.mxu2 %v1423_v8 }
0x129a   :  { %1500 = vmatpush.msra.mxu3 %v1418_v34  ;;  %2100 = vmatpush.msrb.mxu0 %v5105_v17 }
0x129b   :  { %1475 = vmatpush.msra.mxu2 %v1421_v46  ;;  %2119 = vmatpush.msrb.mxu1 %v5126_v48 }
0x129c   :  { %1501 = vmatpush.msra.mxu3 %v1416_v53  ;;  %2101 = vmatpush.msrb.mxu0 %v5109_v20 }
0x129d   :  { %1476 = vmatpush.msra.mxu2 %v1419_v25  ;;  %2120 = vmatpush.msrb.mxu1 %v5130_v26 }
0x129e   :  { %1502 = vmatpush.msra.mxu3 %v1414_v27  ;;  %2102 = vmatpush.msrb.mxu0 %v5113_v28 }
0x129f   :  { %v1380_v3 = vld.sshfl [vmem:[#allocation1 + $0x20] sm:$0xff pattern:$0x73625140]  ;;  %1477 = vmatpush.msra.mxu2 %v1417_v31  ;;  %2121 = vmatpush.msrb.mxu1 %v5136_v0 }
0x12a0   :  { %1395 = vrot.lane.b32.xlu2 %v1380_v3, %s4501_s3  ;;  %1716 = vmatpush.msrb.mxu3 %v5122_v47 }
0x12a1   :  { %1478 = vmatpush.msra.mxu2 %v1415_v41  ;;  %2103 = vmatpush.msrb.mxu0 %v5117_v30 }
0x12a2   :  { %1717 = vmatpush.msrb.mxu3 %v5126_v48  ;;  %2122 = vmatpush.msrb.mxu1 %v5146_v1 }
0x12a3   :  { %1479 = vmatpush.msra.mxu2 %v1413_v9  ;;  %2104 = vmatpush.msrb.mxu0 %v5120_v62 }
0x12a4   :  { %1718 = vmatpush.msrb.mxu3 %v5130_v26  ;;  %2123 = vmatpush.msrb.mxu1 %v5151_v7 }
0x12a5   :  { %1696 = vmatpush.msrb.mxu2 %v5098_v37  ;;  %2105 = vmatpush.msrb.mxu0 %v5128_v50 }
0x12a6   :  { %1719 = vmatpush.msrb.mxu3 %v5136_v0  ;;  %2124 = vmatpush.msrb.mxu1 %v5157_v5 }
0x12a7   :  { %1697 = vmatpush.msrb.mxu2 %v5102_v6 }
0x12a8   :  { %1720 = vmatpush.msrb.mxu3 %v5146_v1  ;;  %2125 = vmatpush.msrb.mxu1 %v5163_v45 }
0x12a9   :  { %1698 = vmatpush.msrb.mxu2 %v5105_v17 }
0x12aa   :  { %1721 = vmatpush.msrb.mxu3 %v5151_v7 }
0x12ab   :  { %1699 = vmatpush.msrb.mxu2 %v5109_v20 }
0x12ac   :  { %1722 = vmatpush.msrb.mxu3 %v5157_v5 }
0x12ad   :  { %1700 = vmatpush.msrb.mxu2 %v5113_v28 }
0x12ae   :  { %1723 = vmatpush.msrb.mxu3 %v5163_v45 }
0x12af   :  { %1701 = vmatpush.msrb.mxu2 %v5117_v30 }
0x12b1   :  { %1702 = vmatpush.msrb.mxu2 %v5120_v62 }
0x12b3   :  { %1703 = vmatpush.msrb.mxu2 %v5128_v50 }
0x12e3   :  { %v1386_v55 = vpop.permute.xlu2 %1385 }
0x12e4   :  { %v1407_v15 = vsel %vm162_vm0, %v1344_v14, %v1386_v55 }
0x12e5   :  { %1447 = vst [vmem:[#allocation1 + $0x2] ss:$4 sm:$0xff] %v1407_v15 }
0x12eb   :  { %v1390_v39 = vpop.permute.xlu2 %1389 }
0x12ec   :  { %v1409_v2 = vsel %vm162_vm0, %v1348_v58, %v1390_v39 }
0x12ed   :  { %1451 = vst [vmem:[#allocation1 + $0x20] ss:$4 sm:$0xff] %v1409_v2 }
0x12f2   :  { %v1354_v19 = vpop.permute.xlu1 %1353 }
0x12f3   :  { %v1382_v21 = vpop.permute.xlu0 %1381 }
0x12f4   :  { %v1405_v29 = vsel %vm162_vm0, %v1340_v18, %v1382_v21 }
0x12f5   :  { %1443 = vst [vmem:[#allocation1] ss:$4 sm:$0xff] %v1405_v29 }
0x12fa   :  { %v1384_v61 = vpop.permute.xlu1 %1383  ;;  %v1396_v57 = vpop.permute.xlu2 %1395 }
0x12fb   :  { %v1406_v63 = vsel %vm162_vm0, %v5093_v23, %v1384_v61  ;;  %v1412_v49 = vsel %vm162_vm0, %v1354_v19, %v1396_v57 }
0x12fc   :  { %1445 = vst [vmem:[#allocation1 + $0x1] ss:$4 sm:$0xff] %v1406_v63 }
0x12fd   :  { %1457 = vst [vmem:[#allocation1 + $0x23] ss:$4 sm:$0xff] %v1412_v49 }
0x1302   :  { %v1388_v51 = vpop.permute.xlu0 %1387  ;;  %v1591_v34 = vpop.f32.mrf.mxu1 }
0x1303   :  { %v1408_v22 = vsel %vm162_vm0, %v5089_v36, %v1388_v51 }
0x1304   :  { %1449 = vst [vmem:[#allocation1 + $0x3] ss:$4 sm:$0xff] %v1408_v22 }
0x130a   :  { %v1392_v44 = vpop.permute.xlu0 %1391 }
0x130b   :  { %v1458_v56 = vld.sshfl [vmem:[#allocation1] sm:$0xff pattern:$0x73625140]  ;;  %v1410_v52 = vsel %vm162_vm0, %v5091_v13, %v1392_v44  ;;  %v1394_v33 = vpop.permute.xlu1 %1393  ;;  %v1571_v13 = vpop.f32.mrf.mxu0 }
0x130c   :  { %1453 = vst [vmem:[#allocation1 + $0x21] ss:$4 sm:$0xff] %v1410_v52  ;;  %v1411_v12 = vsel %vm162_vm0, %v5096_v35, %v1394_v33  ;;  %3937 = vmatmul.msk.f32.vlgmr.msra.gmra.mxu2 %vm261_vm13, %v1458_v56  ;;  %3939 = vmatmul.msk.f32.vlgmr.msra.gmra.mxu3 %vm261_vm13, %v1458_v56 }
0x130d   :  { %1455 = vst [vmem:[#allocation1 + $0x22] ss:$4 sm:$0xff] %v1411_v12  ;;  %1964 = vmatpush.msra.mxu2 %v5098_v37  ;;  %1984 = vmatpush.msra.mxu3 %v5122_v47 }
0x130f   :  { %1965 = vmatpush.msra.mxu2 %v5102_v6  ;;  %1985 = vmatpush.msra.mxu3 %v5126_v48 }
0x1311   :  { %1966 = vmatpush.msra.mxu2 %v5105_v17  ;;  %1986 = vmatpush.msra.mxu3 %v5130_v26 }
0x1313   :  { %1967 = vmatpush.msra.mxu2 %v5109_v20  ;;  %1987 = vmatpush.msra.mxu3 %v5136_v0 }
0x1314   :  { %v1459_v10 = vld.sshfl [vmem:[#allocation1 + $0x20] sm:$0xff pattern:$0x73625140] }
0x1315   :  { %3938 = vmatmul.msk.f32.gmra.mxu2 %vm261_vm13, %v1459_v10  ;;  %3940 = vmatmul.msk.f32.gmra.mxu3 %vm261_vm13, %v1459_v10 }
0x1316   :  { %1968 = vmatpush.msra.mxu2 %v5113_v28  ;;  %1988 = vmatpush.msra.mxu3 %v5146_v1 }
0x1318   :  { %1969 = vmatpush.msra.mxu2 %v5117_v30  ;;  %1989 = vmatpush.msra.mxu3 %v5151_v7 }
0x131a   :  { %1970 = vmatpush.msra.mxu2 %v5120_v62  ;;  %1990 = vmatpush.msra.mxu3 %v5157_v5 }
0x131c   :  { %1971 = vmatpush.msra.mxu2 %v5128_v50  ;;  %1991 = vmatpush.msra.mxu3 %v5163_v45 }
0x138f   :  { %v1481_v60 = vpop.f32.mrf.mxu2  ;;  %v1504_v32 = vpop.f32.mrf.mxu3 }
0x1390   :  { %v1505_v3 = vadd.f32 %v1504_v32, %v1432_v11  ;;  %v1482_v18 = vadd.f32 %v1481_v60, %v1431_v4 }
0x1392   :  { %v1514_v36 = vrot.slane %v1505_v3, 6 }
0x1394   :  { %v5231_v43 = vsel %vm219_vm4, %v1482_v18, %v1514_v36  ;;  %v5234_v38 = vsel %vm221_vm2, %v1482_v18, %v1514_v36  ;;  %v5237_v16 = vsel %vm224_vm3, %v1482_v18, %v1514_v36  ;;  %v5240_v42 = vsel %vm227_vm1, %v1514_v36, %v1482_v18 }
0x1395   :  { %v1594_v8 = vadd.f32 %v1571_v13, %v5231_v43 }
0x1397   :  { %4130 = vtanh.f32 %v1594_v8  ;;  %v3941_v53 = vmul.f32 -1.442695, %v1594_v8 }
0x1398   :  { %v1484_v40 = vpop.f32.mrf.mxu2  ;;  %v1507_v14 = vpop.f32.mrf.mxu3 }
0x1399   :  { %v1508_v23 = vadd.f32 %v1507_v14, %v1432_v11  ;;  %v1485_v55 = vadd.f32 %v1484_v40, %v1431_v4 }
0x139b   :  { %v1515_v15 = vrot.slane %v1508_v23, 6 }
0x139d   :  { %v4131_v46 = vpop.eup %4130  ;;  %v5244_v24 = vsel %vm227_vm1, %v1515_v15, %v1485_v55  ;;  %v5247_v25 = vsel %vm224_vm3, %v1485_v55, %v1515_v15  ;;  %v5250_v54 = vsel %vm221_vm2, %v1485_v55, %v1515_v15  ;;  %v5253_v58 = vsel %vm219_vm4, %v1485_v55, %v1515_v15 }
0x139e   :  { %1617 = vrot.lane.b32.xlu0 %v4131_v46, %s4501_s3  ;;  %v1529_v31 = vrot.slane %v5244_v24, 6 }
0x13a0   :  { %v1632_v35 = vrot.slane %v1529_v31, 2 }
0x13a2   :  { %v1634_v39 = vadd.f32 %v1632_v35, %v1591_v34 }
0x13a4   :  { %4132 = vtanh.f32 %v1634_v39  ;;  %v3942_v27 = vmul.f32 -1.442695, %v1634_v39 }
0x13a5   :  { %4134 = vpow2.f32 %v3941_v53 }
0x13aa   :  { %v4133_v41 = vpop.eup %4132 }
0x13ab   :  { %1657 = vrot.lane.b32.xlu1 %v4133_v41, %s4501_s3  ;;  %v4135_v2 = vpop.eup %4134 }
0x13ac   :  { %v1598_v9 = vadd.f32 1.0, %v4135_v2 }
0x13ae   :  { %4136 = vrcp.f32 %v1598_v9  ;;  %v1610_v22 = vand.u32 2147483648, %v1598_v9  ;;  %vm1604_vm2 = vweird.f32 %v1598_v9  ;;  %v1608_v56 = vand.u32 2147483647, %v1598_v9 }
0x13af   :  { %4138 = vpow2.f32 %v3942_v27 }
0x13b0   :  { %v1611_v33 = vor.u32 1.1754944e-38, %v1610_v22  ;;  %vm1609_vm4 = vcmp.eq.f32.partialorder %v1608_v56, 8.507059e+37 }
0x13b4   :  { %v4137_v19 = vpop.eup %4136 }
0x13b5   :  { %v4139_v21 = vpop.eup %4138  ;;  %v1600_v61 = vmul.f32 %v4137_v19, %v1598_v9  ;;  %vm1605_vm1 = vweird.f32 %v4137_v19 }
0x13b6   :  { %v1638_v29 = vadd.f32 1.0, %v4139_v21  ;;  %vm1606_vm3 = vmor %vm1604_vm2, %vm1605_vm1 }
0x13b7   :  { %v1601_v57 = vsub.f32 1.0, %v1600_v61 }
0x13b8   :  { %4140 = vrcp.f32 %v1638_v29  ;;  %v1650_v32 = vand.u32 2147483648, %v1638_v29  ;;  %vm1644_vm10 = vweird.f32 %v1638_v29  ;;  %v1648_v3 = vand.u32 2147483647, %v1638_v29 }
0x13b9   :  { %v1602_v63 = vmul.f32 %v4137_v19, %v1601_v57  ;;  %v1527_v57 = vrot.slane %v5247_v25, 4 }
0x13ba   :  { %v1651_v36 = vor.u32 1.1754944e-38, %v1650_v32  ;;  %vm1649_vm12 = vcmp.eq.f32.partialorder %v1648_v3, 8.507059e+37 }
0x13bb   :  { %v1603_v51 = vadd.f32 %v4137_v19, %v1602_v63  ;;  %v1518_v63 = vrot.slane %v5234_v38, 2 }
0x13bd   :  { %v1607_v52 = vsel %vm1606_vm3, %v4137_v19, %v1603_v51 }
0x13be   :  { %v4141_v49 = vpop.eup %4140  ;;  %v1612_v59 = vsel %vm1609_vm4, %v1611_v33, %v1607_v52 }
0x13bf   :  { %v1640_v44 = vmul.f32 %v4141_v49, %v1638_v29  ;;  %vm1645_vm9 = vweird.f32 %v4141_v49  ;;  %v1615_v14 = vmul.f32 0.0, %v1612_v59 }
0x13c0   :  { %vm1646_vm11 = vmor %vm1644_vm10, %vm1645_vm9 }
0x13c1   :  { %v1641_v12 = vsub.f32 1.0, %v1640_v44 }
0x13c3   :  { %v1642_v4 = vmul.f32 %v4141_v49, %v1641_v12 }
0x13c5   :  { %v1643_v60 = vadd.f32 %v4141_v49, %v1642_v4 }
0x13c7   :  { %v1647_v18 = vsel %vm1646_vm11, %v4141_v49, %v1643_v60  ;;  %v1766_v49 = vrot.slane %v1527_v57, 2 }
0x13c8   :  { %v1652_v8 = vsel %vm1649_vm12, %v1651_v36, %v1647_v18 }
0x13c9   :  { %v1655_v46 = vmul.f32 0.0, %v1652_v8 }
0x1410   :  { %v1618_v10 = vpop.permute.xlu0 %1617 }
0x1411   :  { %v1620_v11 = vmul.f32 %v1618_v10, %v1612_v59 }
0x1413   :  { %1622 = vrot.lane.b32.xlu2 %v1620_v11, %s4502_s4 }
0x141d   :  { %v1658_v13 = vpop.permute.xlu1 %1657 }
0x141e   :  { %v1660_v40 = vmul.f32 %v1658_v13, %v1652_v8 }
0x1420   :  { %1662 = vrot.lane.b32.xlu0 %v1660_v40, %s4502_s4 }
0x146d   :  { %v1623_v23 = vpop.permute.xlu2 %1622 }
0x146e   :  { %v5262_v55 = vadd.f32 %v1623_v23, %v1615_v14 }
0x1470   :  { %4142 = vtanh.f32 %v5262_v55 }
0x1476   :  { %v4143_v15 = vpop.eup %4142 }
0x1477   :  { %1628 = vrot.lane.b32.xlu1 %v4143_v15, %s4501_s3 }
0x1492   :  { %v1663_v34 = vpop.permute.xlu0 %1662 }
0x1493   :  { %v5266_v35 = vadd.f32 %v1663_v34, %v1655_v46 }
0x1495   :  { %4144 = vtanh.f32 %v5266_v35 }
0x149b   :  { %v4145_v39 = vpop.eup %4144 }
0x149c   :  { %1668 = vrot.lane.b32.xlu2 %v4145_v39, %s4501_s3 }
0x14e9   :  { %v1629_v41 = vpop.permute.xlu1 %1628 }
0x14ea   :  { %v5270_v53 = vmul.f32 %v1629_v41, %v1612_v59 }
0x14ec   :  { %1673 = vst [vmem:[#allocation1] ss:$4 sm:$0xff] %v5270_v53 }
0x14f3   :  { %v1674_v2 = vld.sshfl [vmem:[#allocation1] sm:$0xff pattern:$0x73625140] }
0x14f4   :  { %1675 = vrot.lane.b32.xlu0 %v1674_v2, %s4502_s4 }
0x14f6   :  { %v1669_v9 = vpop.permute.xlu2 %1668 }
0x14f7   :  { %v5274_v27 = vmul.f32 %v1669_v9, %v1652_v8 }
0x14f9   :  { %1679 = vst [vmem:[#allocation1] ss:$4 sm:$0xff] %v5274_v27 }
0x1500   :  { %v1680_v19 = vld.sshfl [vmem:[#allocation1] sm:$0xff pattern:$0x73625140] }
0x1501   :  { %1681 = vrot.lane.b32.xlu1 %v1680_v19, %s4501_s3 }
0x1566   :  { %v1676_v21 = vpop.permute.xlu0 %1675 }
0x1573   :  { %v1682_v29 = vpop.permute.xlu1 %1681 }
0x1574   :  { %v1684_v61 = vsel %vm162_vm0, %v1676_v21, %v1682_v29 }
0x1575   :  { %3943 = vmatmul.msk.f32.vlgmr.msrb.gmra.mxu2 %vm261_vm13, %v1684_v61  ;;  %3944 = vmatmul.msk.f32.vlgmr.msrb.gmra.mxu3 %vm261_vm13, %v1684_v61 }
0x1576   :  { %2232 = vmatpush.msrb.mxu2 %v5098_v37  ;;  %2252 = vmatpush.msrb.mxu3 %v5122_v47 }
0x1578   :  { %2233 = vmatpush.msrb.mxu2 %v5102_v6  ;;  %2253 = vmatpush.msrb.mxu3 %v5126_v48 }
0x157a   :  { %2234 = vmatpush.msrb.mxu2 %v5105_v17  ;;  %2254 = vmatpush.msrb.mxu3 %v5130_v26 }
0x157c   :  { %2235 = vmatpush.msrb.mxu2 %v5109_v20  ;;  %2255 = vmatpush.msrb.mxu3 %v5136_v0 }
0x157e   :  { %2236 = vmatpush.msrb.mxu2 %v5113_v28  ;;  %2256 = vmatpush.msrb.mxu3 %v5146_v1 }
0x1580   :  { %2237 = vmatpush.msrb.mxu2 %v5117_v30  ;;  %2257 = vmatpush.msrb.mxu3 %v5151_v7 }
0x1582   :  { %2238 = vmatpush.msrb.mxu2 %v5120_v62  ;;  %2258 = vmatpush.msrb.mxu3 %v5157_v5 }
0x1584   :  { %2239 = vmatpush.msrb.mxu2 %v5128_v50  ;;  %2259 = vmatpush.msrb.mxu3 %v5163_v45 }
0x15f8   :  { %v1705_v51 = vpop.f32.mrf.mxu2  ;;  %v1725_v22 = vpop.f32.mrf.mxu3 }
0x15f9   :  { %v1728_v44 = vadd.f32 %v1705_v51, %v1518_v63  ;;  %v1768_v56 = vadd.f32 %v1766_v49, %v1725_v22 }
0x15fb   :  { %4146 = vtanh.f32 %v1728_v44  ;;  %v3945_v12 = vmul.f32 -1.442695, %v1728_v44  ;;  %v3946_v4 = vmul.f32 -1.442695, %v1768_v56 }
0x15fc   :  { %4148 = vtanh.f32 %v1768_v56 }
0x15fd   :  { %4150 = vpow2.f32 %v3945_v12 }
0x1601   :  { %v4147_v52 = vpop.eup %4146 }
0x1602   :  { %v4149_v33 = vpop.eup %4148  ;;  %1751 = vrot.lane.b32.xlu2 %v4147_v52, %s4501_s3 }
0x1603   :  { %1791 = vrot.lane.b32.xlu0 %v4149_v33, %s4501_s3  ;;  %v4151_v10 = vpop.eup %4150 }
0x1604   :  { %v1732_v59 = vadd.f32 1.0, %v4151_v10 }
0x1606   :  { %4152 = vrcp.f32 %v1732_v59  ;;  %v1744_v8 = vand.u32 2147483648, %v1732_v59  ;;  %vm1738_vm15 = vweird.f32 %v1732_v59  ;;  %v1742_v40 = vand.u32 2147483647, %v1732_v59 }
0x1607   :  { %4154 = vpow2.f32 %v3946_v4 }
0x1608   :  { %v1745_v23 = vor.u32 1.1754944e-38, %v1744_v8  ;;  %vm1743_vm6 = vcmp.eq.f32.partialorder %v1742_v40, 8.507059e+37  ;;  %v1525_v40 = vrot.slane %v5250_v54, 2 }
0x160c   :  { %v4153_v11 = vpop.eup %4152 }
0x160d   :  { %v1734_v60 = vmul.f32 %v4153_v11, %v1732_v59  ;;  %v4155_v18 = vpop.eup %4154  ;;  %vm1739_vm14 = vweird.f32 %v4153_v11 }
0x160e   :  { %v1772_v36 = vadd.f32 1.0, %v4155_v18  ;;  %vm1740_vm5 = vmor %vm1738_vm15, %vm1739_vm14 }
0x160f   :  { %v1735_v32 = vsub.f32 1.0, %v1734_v60 }
0x1610   :  { %4156 = vrcp.f32 %v1772_v36  ;;  %v1784_v21 = vand.u32 2147483648, %v1772_v36  ;;  %vm1778_vm8 = vweird.f32 %v1772_v36  ;;  %v1782_v29 = vand.u32 2147483647, %v1772_v36 }
0x1611   :  { %v1736_v3 = vmul.f32 %v4153_v11, %v1735_v32 }
0x1612   :  { %v1785_v49 = vor.u32 1.1754944e-38, %v1784_v21  ;;  %vm1783_vm2 = vcmp.eq.f32.partialorder %v1782_v29, 8.507059e+37 }
0x1613   :  { %v1737_v13 = vadd.f32 %v4153_v11, %v1736_v3 }
0x1615   :  { %v1741_v14 = vsel %vm1740_vm5, %v4153_v11, %v1737_v13 }
0x1616   :  { %v1746_v46 = vsel %vm1743_vm6, %v1745_v23, %v1741_v14  ;;  %v4157_v39 = vpop.eup %4156  ;;  %v1520_v14 = vrot.slane %v5237_v16, 4  ;;  %v1900_v23 = vrot.slane %v1525_v40, 2 }
0x1617   :  { %v1774_v41 = vmul.f32 %v4157_v39, %v1772_v36  ;;  %vm1779_vm7 = vweird.f32 %v4157_v39  ;;  %v1749_v56 = vmul.f32 %v1746_v46, %v5262_v55 }
0x1618   :  { %vm1780_vm1 = vmor %vm1778_vm8, %vm1779_vm7 }
0x1619   :  { %v1775_v2 = vsub.f32 1.0, %v1774_v41 }
0x161b   :  { %v1776_v9 = vmul.f32 %v4157_v39, %v1775_v2 }
0x161d   :  { %v1777_v19 = vadd.f32 %v4157_v39, %v1776_v9 }
0x161f   :  { %v1781_v61 = vsel %vm1780_vm1, %v4157_v39, %v1777_v19 }
0x1620   :  { %v1786_v22 = vsel %vm1783_vm2, %v1785_v49, %v1781_v61 }
0x1621   :  { %v1789_v52 = vmul.f32 %v1786_v22, %v5266_v35 }
0x165c   :  { %v1752_v15 = vpop.permute.xlu2 %1751 }
0x165d   :  { %v1754_v34 = vmul.f32 %v1752_v15, %v1746_v46 }
0x165f   :  { %1756 = vrot.lane.b32.xlu1 %v1754_v34, %s4502_s4 }
0x1675   :  { %v1792_v51 = vpop.permute.xlu0 %1791 }
0x1676   :  { %v1794_v44 = vmul.f32 %v1792_v51, %v1786_v22 }
0x1678   :  { %1796 = vrot.lane.b32.xlu2 %v1794_v44, %s4502_s4 }
0x16d1   :  { %v1757_v33 = vpop.permute.xlu1 %1756 }
0x16d2   :  { %v1797_v12 = vpop.permute.xlu2 %1796  ;;  %v5309_v10 = vadd.f32 %v1757_v33, %v1749_v56 }
0x16d3   :  { %v5311_v59 = vadd.f32 %v1797_v12, %v1789_v52 }
0x16d4   :  { %4158 = vtanh.f32 %v5309_v10 }
0x16d5   :  { %4160 = vtanh.f32 %v5311_v59 }
0x16da   :  { %v4159_v11 = vpop.eup %4158 }
0x16db   :  { %v4161_v4 = vpop.eup %4160  ;;  %1762 = vrot.lane.b32.xlu0 %v4159_v11, %s4501_s3 }
0x16dc   :  { %1802 = vrot.lane.b32.xlu1 %v4161_v4, %s4501_s3 }
0x174d   :  { %v1763_v60 = vpop.permute.xlu0 %1762 }
0x174e   :  { %v1765_v55 = vmul.f32 %v1763_v60, %v1746_v46  ;;  %v1803_v35 = vpop.permute.xlu1 %1802 }
0x174f   :  { %v5317_v32 = vmul.f32 %v1803_v35, %v1786_v22 }
0x1750   :  { %2614 = vst [vmem:[#allocation1 + $0x20] ss:$4 sm:$0xff] %v1765_v55 }
0x1751   :  { %1807 = vst [vmem:[#allocation1] ss:$4 sm:$0xff] %v1765_v55 }
0x1758   :  { %v1808_v3 = vld.sshfl [vmem:[#allocation1] sm:$0xff pattern:$0x73625140] }
0x1759   :  { %1809 = vrot.lane.b32.xlu2 %v1808_v3, %s4502_s4  ;;  %1813 = vst [vmem:[#allocation1] ss:$4 sm:$0xff] %v5317_v32 }
0x1760   :  { %v1814_v18 = vld.sshfl [vmem:[#allocation1] sm:$0xff pattern:$0x73625140] }
0x1761   :  { %1815 = vrot.lane.b32.xlu0 %v1814_v18, %s4501_s3 }
0x17b3   :  { %v1810_v36 = vpop.permute.xlu2 %1809 }
0x17d3   :  { %v1816_v13 = vpop.permute.xlu0 %1815 }
0x17d4   :  { %v1818_v8 = vsel %vm162_vm0, %v1810_v36, %v1816_v13 }
0x17d5   :  { %3947 = vmatmul.msk.f32.vlgmr.msra.gmra.mxu0 %vm261_vm13, %v1818_v8  ;;  %3948 = vmatmul.msk.f32.vlgmr.msra.gmra.mxu1 %vm261_vm13, %v1818_v8 }
0x17d6   :  { %2366 = vmatpush.msra.mxu0 %v5098_v37  ;;  %2386 = vmatpush.msra.mxu1 %v5122_v47 }
0x17d8   :  { %2367 = vmatpush.msra.mxu0 %v5102_v6  ;;  %2387 = vmatpush.msra.mxu1 %v5126_v48 }
0x17da   :  { %2368 = vmatpush.msra.mxu0 %v5105_v17  ;;  %2388 = vmatpush.msra.mxu1 %v5130_v26 }
0x17dc   :  { %2369 = vmatpush.msra.mxu0 %v5109_v20  ;;  %2389 = vmatpush.msra.mxu1 %v5136_v0 }
0x17de   :  { %2370 = vmatpush.msra.mxu0 %v5113_v28  ;;  %2390 = vmatpush.msra.mxu1 %v5146_v1 }
0x17e0   :  { %2371 = vmatpush.msra.mxu0 %v5117_v30  ;;  %2391 = vmatpush.msra.mxu1 %v5151_v7 }
0x17e2   :  { %2372 = vmatpush.msra.mxu0 %v5120_v62  ;;  %2392 = vmatpush.msra.mxu1 %v5157_v5 }
0x17e4   :  { %2373 = vmatpush.msra.mxu0 %v5128_v50  ;;  %2393 = vmatpush.msra.mxu1 %v5163_v45 }
0x1852   :  { %v1839_v15 = vpop.f32.mrf.mxu0  ;;  %v1859_v46 = vpop.f32.mrf.mxu1 }
0x1853   :  { %v1862_v34 = vadd.f32 %v1839_v15, %v1520_v14  ;;  %v1902_v39 = vadd.f32 %v1900_v23, %v1859_v46 }
0x1855   :  { %4162 = vtanh.f32 %v1862_v34  ;;  %v3950_v9 = vmul.f32 -1.442695, %v1902_v39  ;;  %v3949_v61 = vmul.f32 -1.442695, %v1862_v34 }
0x1856   :  { %4164 = vtanh.f32 %v1902_v39 }
0x1857   :  { %4166 = vpow2.f32 %v3950_v9 }
0x185b   :  { %v4163_v41 = vpop.eup %4162 }
0x185c   :  { %v4165_v2 = vpop.eup %4164  ;;  %1885 = vrot.lane.b32.xlu1 %v4163_v41, %s4501_s3 }
0x185d   :  { %1925 = vrot.lane.b32.xlu2 %v4165_v2, %s4501_s3  ;;  %v4167_v19 = vpop.eup %4166 }
0x185e   :  { %v1906_v21 = vadd.f32 1.0, %v4167_v19 }
0x1860   :  { %4168 = vrcp.f32 %v1906_v21  ;;  %v1918_v33 = vand.u32 2147483648, %v1906_v21  ;;  %vm1912_vm4 = vweird.f32 %v1906_v21  ;;  %v1916_v12 = vand.u32 2147483647, %v1906_v21 }
0x1861   :  { %4170 = vpow2.f32 %v3949_v61 }
0x1862   :  { %v1919_v4 = vor.u32 1.1754944e-38, %v1918_v33  ;;  %vm1917_vm10 = vcmp.eq.f32.partialorder %v1916_v12, 8.507059e+37 }
0x1866   :  { %v4169_v29 = vpop.eup %4168 }
0x1867   :  { %v1908_v49 = vmul.f32 %v4169_v29, %v1906_v21  ;;  %v4171_v22 = vpop.eup %4170  ;;  %vm1913_vm3 = vweird.f32 %v4169_v29 }
0x1868   :  { %v1866_v56 = vadd.f32 1.0, %v4171_v22  ;;  %vm1914_vm9 = vmor %vm1912_vm4, %vm1913_vm3 }
0x1869   :  { %v1909_v51 = vsub.f32 1.0, %v1908_v49 }
0x186a   :  { %4172 = vrcp.f32 %v1866_v56  ;;  %v1878_v23 = vand.u32 2147483648, %v1866_v56  ;;  %vm1872_vm12 = vweird.f32 %v1866_v56  ;;  %v1876_v15 = vand.u32 2147483647, %v1866_v56 }
0x186b   :  { %v1910_v44 = vmul.f32 %v4169_v29, %v1909_v51 }
0x186c   :  { %v1879_v34 = vor.u32 1.1754944e-38, %v1878_v23  ;;  %vm1877_vm15 = vcmp.eq.f32.partialorder %v1876_v15, 8.507059e+37 }
0x186d   :  { %v1911_v52 = vadd.f32 %v4169_v29, %v1910_v44 }
0x186f   :  { %v1915_v11 = vsel %vm1914_vm9, %v4169_v29, %v1911_v52 }
0x1870   :  { %v1920_v55 = vsel %vm1917_vm10, %v1919_v4, %v1915_v11  ;;  %v4173_v35 = vpop.eup %4172 }
0x1871   :  { %v1868_v18 = vmul.f32 %v4173_v35, %v1866_v56  ;;  %vm1873_vm11 = vweird.f32 %v4173_v35  ;;  %v1923_v9 = vmul.f32 %v1920_v55, %v5311_v59 }
0x1872   :  { %vm1874_vm14 = vmor %vm1872_vm12, %vm1873_vm11 }
0x1873   :  { %v1869_v36 = vsub.f32 1.0, %v1868_v18 }
0x1875   :  { %v1870_v13 = vmul.f32 %v4173_v35, %v1869_v36 }
0x1877   :  { %v1871_v8 = vadd.f32 %v4173_v35, %v1870_v13 }
0x1879   :  { %v1875_v46 = vsel %vm1874_vm14, %v4173_v35, %v1871_v8 }
0x187a   :  { %v1880_v41 = vsel %vm1877_vm15, %v1879_v34, %v1875_v46 }
0x187b   :  { %v1883_v61 = vmul.f32 %v1880_v41, %v5309_v10 }
0x18b7   :  { %v1926_v60 = vpop.permute.xlu2 %1925 }
0x18b8   :  { %v1928_v3 = vmul.f32 %v1926_v60, %v1920_v55 }
0x18ba   :  { %1930 = vrot.lane.b32.xlu1 %v1928_v3, %s4502_s4 }
0x18ce   :  { %v1886_v39 = vpop.permute.xlu1 %1885 }
0x18cf   :  { %v1888_v2 = vmul.f32 %v1886_v39, %v1880_v41 }
0x18d1   :  { %1890 = vrot.lane.b32.xlu0 %v1888_v2, %s4502_s4 }
0x192c   :  { %v1931_v19 = vpop.permute.xlu1 %1930 }
0x192d   :  { %v5352_v21 = vadd.f32 %v1931_v19, %v1923_v9 }
0x192f   :  { %4174 = vtanh.f32 %v5352_v21 }
0x1935   :  { %v4175_v29 = vpop.eup %4174 }
0x1936   :  { %1936 = vrot.lane.b32.xlu0 %v4175_v29, %s4501_s3 }
0x1943   :  { %v1891_v49 = vpop.permute.xlu0 %1890 }
0x1944   :  { %v5357_v51 = vadd.f32 %v1891_v49, %v1883_v61 }
0x1946   :  { %4176 = vtanh.f32 %v5357_v51 }
0x194c   :  { %v4177_v22 = vpop.eup %4176 }
0x194d   :  { %1896 = vrot.lane.b32.xlu2 %v4177_v22, %s4501_s3 }
0x19a7   :  { %v1897_v44 = vpop.permute.xlu2 %1896 }
0x19a8   :  { %v5361_v59 = vmul.f32 %v1897_v44, %v1880_v41  ;;  %v1937_v56 = vpop.permute.xlu0 %1936 }
0x19a9   :  { %v5364_v52 = vmul.f32 %v1937_v56, %v1920_v55 }
0x19aa   :  { %1941 = vst [vmem:[#allocation1] ss:$4 sm:$0xff] %v5361_v59 }
0x19b1   :  { %v1942_v33 = vld.sshfl [vmem:[#allocation1] sm:$0xff pattern:$0x73625140] }
0x19b2   :  { %1943 = vrot.lane.b32.xlu1 %v1942_v33, %s4502_s4  ;;  %1947 = vst [vmem:[#allocation1] ss:$4 sm:$0xff] %v5364_v52 }
0x19b9   :  { %v1948_v10 = vld.sshfl [vmem:[#allocation1] sm:$0xff pattern:$0x73625140] }
0x19ba   :  { %1949 = vrot.lane.b32.xlu2 %v1948_v10, %s4501_s3 }
0x1a14   :  { %v1950_v12 = vpop.permute.xlu2 %1949 }
0x1a24   :  { %v1944_v11 = vpop.permute.xlu1 %1943 }
0x1a25   :  { %v1952_v4 = vsel %vm162_vm0, %v1944_v11, %v1950_v12 }
0x1a26   :  { %3951 = vmatmul.msk.f32.vlgmr.msra.gmra.mxu2 %vm261_vm13, %v1952_v4  ;;  %3952 = vmatmul.msk.f32.vlgmr.msra.gmra.mxu3 %vm261_vm13, %v1952_v4 }
0x1a27   :  { %2500 = vmatpush.msra.mxu2 %v5098_v37  ;;  %2520 = vmatpush.msra.mxu3 %v5122_v47  ;;  %v1522_v37 = vrot.slane %v5240_v42, 6 }
0x1a29   :  { %2501 = vmatpush.msra.mxu2 %v5102_v6  ;;  %2521 = vmatpush.msra.mxu3 %v5126_v48  ;;  %v2034_v6 = vrot.slane %v5253_v58, 2 }
0x1a2b   :  { %2502 = vmatpush.msra.mxu2 %v5105_v17  ;;  %2522 = vmatpush.msra.mxu3 %v5130_v26 }
0x1a2d   :  { %2503 = vmatpush.msra.mxu2 %v5109_v20  ;;  %2523 = vmatpush.msra.mxu3 %v5136_v0 }
0x1a2f   :  { %2504 = vmatpush.msra.mxu2 %v5113_v28  ;;  %2524 = vmatpush.msra.mxu3 %v5146_v1 }
0x1a31   :  { %2505 = vmatpush.msra.mxu2 %v5117_v30  ;;  %2525 = vmatpush.msra.mxu3 %v5151_v7 }
0x1a33   :  { %2506 = vmatpush.msra.mxu2 %v5120_v62  ;;  %2526 = vmatpush.msra.mxu3 %v5157_v5 }
0x1a35   :  { %2507 = vmatpush.msra.mxu2 %v5128_v50  ;;  %2527 = vmatpush.msra.mxu3 %v5163_v45 }
0x1aa9   :  { %v1973_v17 = vpop.f32.mrf.mxu2  ;;  %v1993_v20 = vpop.f32.mrf.mxu3 }
0x1aaa   :  { %v1996_v28 = vadd.f32 %v1973_v17, %v1522_v37  ;;  %v2036_v30 = vadd.f32 %v2034_v6, %v1993_v20 }
0x1aac   :  { %4178 = vtanh.f32 %v1996_v28  ;;  %v3953_v48 = vmul.f32 -1.442695, %v1996_v28  ;;  %v3954_v50 = vmul.f32 -1.442695, %v2036_v30 }
0x1aad   :  { %4180 = vtanh.f32 %v2036_v30  ;;  %v5406_v28 = vld.sshfl [vmem:[#allocation1 + $0x20] sm:$0xff pattern:$0x73625140] }
0x1aae   :  { %4182 = vpow2.f32 %v3953_v48 }
0x1aaf   :  { %4184 = vpow2.f32 %v3954_v50 }
0x1ab2   :  { %v4179_v47 = vpop.eup %4178 }
0x1ab3   :  { %v4181_v62 = vpop.eup %4180  ;;  %2019 = vrot.lane.b32.xlu0 %v4179_v47, %s4501_s3 }
0x1ab4   :  { %2059 = vrot.lane.b32.xlu1 %v4181_v62, %s4501_s3  ;;  %v4183_v26 = vpop.eup %4182 }
0x1ab5   :  { %v4185_v0 = vpop.eup %4184  ;;  %v2000_v1 = vadd.f32 1.0, %v4183_v26 }
0x1ab6   :  { %v2040_v7 = vadd.f32 1.0, %v4185_v0  ;;  %v2168_v0 = vrot.slane %v1522_v37, 2 }
0x1ab7   :  { %4186 = vrcp.f32 %v2000_v1  ;;  %v2012_v23 = vand.u32 2147483648, %v2000_v1  ;;  %vm2006_vm7 = vweird.f32 %v2000_v1  ;;  %v2010_v46 = vand.u32 2147483647, %v2000_v1 }
0x1ab8   :  { %4188 = vrcp.f32 %v2040_v7  ;;  %v2052_v15 = vand.u32 2147483648, %v2040_v7  ;;  %vm2046_vm8 = vweird.f32 %v2040_v7  ;;  %v2050_v34 = vand.u32 2147483647, %v2040_v7 }
0x1ab9   :  { %v2013_v2 = vor.u32 1.1754944e-38, %v2012_v23  ;;  %vm2011_vm3 = vcmp.eq.f32.partialorder %v2010_v46, 8.507059e+37 }
0x1aba   :  { %v2053_v9 = vor.u32 1.1754944e-38, %v2052_v15  ;;  %vm2051_vm4 = vcmp.eq.f32.partialorder %v2050_v34, 8.507059e+37 }
0x1abd   :  { %v4187_v5 = vpop.eup %4186 }
0x1abe   :  { %v4189_v45 = vpop.eup %4188  ;;  %v2002_v60 = vmul.f32 %v4187_v5, %v2000_v1  ;;  %vm2007_vm5 = vweird.f32 %v4187_v5 }
0x1abf   :  { %v2042_v55 = vmul.f32 %v4189_v45, %v2040_v7  ;;  %vm2047_vm6 = vweird.f32 %v4189_v45  ;;  %vm2008_vm1 = vmor %vm2006_vm7, %vm2007_vm5 }
0x1ac0   :  { %v2003_v35 = vsub.f32 1.0, %v2002_v60  ;;  %vm2048_vm2 = vmor %vm2046_vm8, %vm2047_vm6 }
0x1ac1   :  { %v2043_v3 = vsub.f32 1.0, %v2042_v55 }
0x1ac2   :  { %v2004_v18 = vmul.f32 %v4187_v5, %v2003_v35 }
0x1ac3   :  { %v2044_v36 = vmul.f32 %v4189_v45, %v2043_v3 }
0x1ac4   :  { %v2005_v13 = vadd.f32 %v4187_v5, %v2004_v18 }
0x1ac5   :  { %v2045_v8 = vadd.f32 %v4189_v45, %v2044_v36 }
0x1ac6   :  { %v2009_v39 = vsel %vm2008_vm1, %v4187_v5, %v2005_v13 }
0x1ac7   :  { %v2049_v41 = vsel %vm2048_vm2, %v4189_v45, %v2045_v8  ;;  %v2014_v29 = vsel %vm2011_vm3, %v2013_v2, %v2009_v39 }
0x1ac8   :  { %v2054_v49 = vsel %vm2051_vm4, %v2053_v9, %v2049_v41  ;;  %v2017_v56 = vmul.f32 %v2014_v29, %v5357_v51 }
0x1ac9   :  { %v2057_v11 = vmul.f32 %v2054_v49, %v5352_v21 }
0x1b25   :  { %v2020_v19 = vpop.permute.xlu0 %2019 }
0x1b26   :  { %v2060_v61 = vpop.permute.xlu1 %2059  ;;  %v2022_v22 = vmul.f32 %v2020_v19, %v2014_v29 }
0x1b27   :  { %v2062_v44 = vmul.f32 %v2060_v61, %v2054_v49 }
0x1b28   :  { %2024 = vrot.lane.b32.xlu2 %v2022_v22, %s4502_s4 }
0x1b29   :  { %2064 = vrot.lane.b32.xlu0 %v2062_v44, %s4502_s4 }
0x1b82   :  { %v2025_v33 = vpop.permute.xlu2 %2024 }
0x1b83   :  { %v5397_v10 = vadd.f32 %v2025_v33, %v2017_v56 }
0x1b85   :  { %4190 = vtanh.f32 %v5397_v10 }
0x1b8b   :  { %v4191_v12 = vpop.eup %4190 }
0x1b8c   :  { %2030 = vrot.lane.b32.xlu1 %v4191_v12, %s4501_s3 }
0x1b9b   :  { %v2065_v4 = vpop.permute.xlu0 %2064 }
0x1b9c   :  { %v5402_v6 = vadd.f32 %v2065_v4, %v2057_v11 }
0x1b9e   :  { %4192 = vtanh.f32 %v5402_v6 }
0x1ba4   :  { %v4193_v17 = vpop.eup %4192 }
0x1ba5   :  { %2070 = vrot.lane.b32.xlu2 %v4193_v17, %s4501_s3 }
0x1bfe   :  { %v2031_v20 = vpop.permute.xlu1 %2030 }
0x1bff   :  { %v2033_v51 = vmul.f32 %v2031_v20, %v2014_v29  ;;  %v2071_v30 = vpop.permute.xlu2 %2070 }
0x1c00   :  { %v5408_v47 = vmul.f32 %v2071_v30, %v2054_v49 }
0x1c01   :  { %2075 = vst [vmem:[#allocation1] ss:$4 sm:$0xff] %v2033_v51 }
0x1c02   :  { %2618 = vst [vmem:[#allocation1 + $0x20] ss:$4 sm:$0xff] %v2033_v51 }
0x1c08   :  { %v2076_v62 = vld.sshfl [vmem:[#allocation1] sm:$0xff pattern:$0x73625140] }
0x1c09   :  { %2077 = vrot.lane.b32.xlu0 %v2076_v62, %s4502_s4  ;;  %2081 = vst [vmem:[#allocation1] ss:$4 sm:$0xff] %v5408_v47 }
0x1c10   :  { %v2082_v21 = vld.sshfl [vmem:[#allocation1] sm:$0xff pattern:$0x73625140] }
0x1c11   :  { %2083 = vrot.lane.b32.xlu1 %v2082_v21, %s4501_s3 }
0x1c7b   :  { %v2078_v48 = vpop.permute.xlu0 %2077 }
0x1c83   :  { %v2084_v50 = vpop.permute.xlu1 %2083 }
0x1c84   :  { %v2086_v26 = vsel %vm162_vm0, %v2078_v48, %v2084_v50 }
0x1c85   :  { %3955 = vmatmul.msk.f32.vlgmr.msrb.gmra.mxu0 %vm261_vm13, %v2086_v26  ;;  %3956 = vmatmul.msk.f32.vlgmr.msrb.gmra.mxu1 %vm261_vm13, %v2086_v26 }
0x1d02   :  { %v2107_v1 = vpop.f32.mrf.mxu0  ;;  %v2127_v7 = vpop.f32.mrf.mxu1 }
0x1d03   :  { %v2130_v5 = vadd.f32 %v2107_v1, %v5253_v58  ;;  %v2170_v45 = vadd.f32 %v2168_v0, %v2127_v7 }
0x1d05   :  { %4194 = vtanh.f32 %v2130_v5  ;;  %v3957_v35 = vmul.f32 -1.442695, %v2130_v5  ;;  %v3958_v37 = vmul.f32 -1.442695, %v2170_v45 }
0x1d06   :  { %4196 = vtanh.f32 %v2170_v45 }
0x1d07   :  { %4198 = vpow2.f32 %v3957_v35 }
0x1d0b   :  { %v4195_v60 = vpop.eup %4194 }
0x1d0c   :  { %v4197_v55 = vpop.eup %4196  ;;  %2153 = vrot.lane.b32.xlu2 %v4195_v60, %s4501_s3 }
0x1d0d   :  { %2193 = vrot.lane.b32.xlu0 %v4197_v55, %s4501_s3  ;;  %v4199_v3 = vpop.eup %4198 }
0x1d0e   :  { %v2134_v18 = vadd.f32 1.0, %v4199_v3  ;;  %v2302_v3 = vrot.slane %v1520_v14, 2 }
0x1d10   :  { %4200 = vrcp.f32 %v2134_v18  ;;  %v2146_v46 = vand.u32 2147483648, %v2134_v18  ;;  %vm2140_vm10 = vweird.f32 %v2134_v18  ;;  %v2144_v34 = vand.u32 2147483647, %v2134_v18 }
0x1d11   :  { %4202 = vpow2.f32 %v3958_v37 }
0x1d12   :  { %v2147_v41 = vor.u32 1.1754944e-38, %v2146_v46  ;;  %vm2145_vm12 = vcmp.eq.f32.partialorder %v2144_v34, 8.507059e+37 }
0x1d16   :  { %v4201_v42 = vpop.eup %4200 }
0x1d17   :  { %v2136_v36 = vmul.f32 %v4201_v42, %v2134_v18  ;;  %v4203_v8 = vpop.eup %4202  ;;  %vm2141_vm9 = vweird.f32 %v4201_v42 }
0x1d18   :  { %v2174_v23 = vadd.f32 1.0, %v4203_v8  ;;  %vm2142_vm11 = vmor %vm2140_vm10, %vm2141_vm9 }
0x1d19   :  { %v2137_v13 = vsub.f32 1.0, %v2136_v36 }
0x1d1a   :  { %4204 = vrcp.f32 %v2174_v23  ;;  %v2186_v56 = vand.u32 2147483648, %v2174_v23  ;;  %vm2180_vm15 = vweird.f32 %v2174_v23  ;;  %v2184_v33 = vand.u32 2147483647, %v2174_v23 }
0x1d1b   :  { %v2138_v58 = vmul.f32 %v4201_v42, %v2137_v13 }
0x1d1c   :  { %v2187_v11 = vor.u32 1.1754944e-38, %v2186_v56  ;;  %vm2185_vm6 = vcmp.eq.f32.partialorder %v2184_v33, 8.507059e+37 }
0x1d1d   :  { %v2139_v15 = vadd.f32 %v4201_v42, %v2138_v58 }
0x1d1f   :  { %v2143_v39 = vsel %vm2142_vm11, %v4201_v42, %v2139_v15 }
0x1d20   :  { %v2148_v9 = vsel %vm2145_vm12, %v2147_v41, %v2143_v39  ;;  %v4205_v29 = vpop.eup %4204 }
0x1d21   :  { %v2176_v61 = vmul.f32 %v4205_v29, %v2174_v23  ;;  %vm2181_vm14 = vweird.f32 %v4205_v29  ;;  %v2151_v51 = vmul.f32 %v2148_v9, %v5397_v10 }
0x1d22   :  { %vm2182_vm5 = vmor %vm2180_vm15, %vm2181_vm14 }
0x1d23   :  { %v2177_v49 = vsub.f32 1.0, %v2176_v61 }
0x1d25   :  { %v2178_v22 = vmul.f32 %v4205_v29, %v2177_v49 }
0x1d27   :  { %v2179_v44 = vadd.f32 %v4205_v29, %v2178_v22 }
0x1d29   :  { %v2183_v12 = vsel %vm2182_vm5, %v4205_v29, %v2179_v44 }
0x1d2a   :  { %v2188_v17 = vsel %vm2185_vm6, %v2187_v11, %v2183_v12 }
0x1d2b   :  { %v2191_v30 = vmul.f32 %v2188_v17, %v5402_v6 }
0x1d66   :  { %v2154_v2 = vpop.permute.xlu2 %2153 }
0x1d67   :  { %v2156_v19 = vmul.f32 %v2154_v2, %v2148_v9 }
0x1d69   :  { %2158 = vrot.lane.b32.xlu1 %v2156_v19, %s4502_s4 }
0x1d7f   :  { %v2194_v4 = vpop.permute.xlu0 %2193 }
0x1d80   :  { %v2196_v20 = vmul.f32 %v2194_v4, %v2188_v17 }
0x1d82   :  { %2198 = vrot.lane.b32.xlu2 %v2196_v20, %s4502_s4 }
0x1ddb   :  { %v2159_v62 = vpop.permute.xlu1 %2158 }
0x1ddc   :  { %v2199_v21 = vpop.permute.xlu2 %2198  ;;  %v5425_v48 = vadd.f32 %v2159_v62, %v2151_v51 }
0x1ddd   :  { %v5427_v50 = vadd.f32 %v2199_v21, %v2191_v30 }
0x1dde   :  { %4206 = vtanh.f32 %v5425_v48 }
0x1ddf   :  { %4208 = vtanh.f32 %v5427_v50 }
0x1de4   :  { %v4207_v26 = vpop.eup %4206 }
0x1de5   :  { %v4209_v0 = vpop.eup %4208  ;;  %2164 = vrot.lane.b32.xlu0 %v4207_v26, %s4501_s3 }
0x1de6   :  { %2204 = vrot.lane.b32.xlu1 %v4209_v0, %s4501_s3 }
0x1e57   :  { %v2165_v1 = vpop.permute.xlu0 %2164 }
0x1e58   :  { %v5433_v10 = vmul.f32 %v2165_v1, %v2148_v9  ;;  %v2205_v6 = vpop.permute.xlu1 %2204 }
0x1e59   :  { %v5436_v7 = vmul.f32 %v2205_v6, %v2188_v17 }
0x1e5a   :  { %2209 = vst [vmem:[#allocation1] ss:$4 sm:$0xff] %v5433_v10 }
0x1e61   :  { %v2210_v5 = vld.sshfl [vmem:[#allocation1] sm:$0xff pattern:$0x73625140] }
0x1e62   :  { %2211 = vrot.lane.b32.xlu2 %v2210_v5, %s4502_s4  ;;  %2215 = vst [vmem:[#allocation1] ss:$4 sm:$0xff] %v5436_v7 }
0x1e69   :  { %v2216_v45 = vld.sshfl [vmem:[#allocation1] sm:$0xff pattern:$0x73625140] }
0x1e6a   :  { %2217 = vrot.lane.b32.xlu0 %v2216_v45, %s4501_s3 }
0x1ebc   :  { %v2212_v60 = vpop.permute.xlu2 %2211 }
0x1edc   :  { %v2218_v55 = vpop.permute.xlu0 %2217 }
0x1edd   :  { %v2220_v35 = vsel %vm162_vm0, %v2212_v60, %v2218_v55 }
0x1ede   :  { %3959 = vmatmul.msk.f32.vlgmr.msrb.gmra.mxu2 %vm261_vm13, %v2220_v35  ;;  %3960 = vmatmul.msk.f32.vlgmr.msrb.gmra.mxu3 %vm261_vm13, %v2220_v35 }
0x1f61   :  { %v2241_v18 = vpop.f32.mrf.mxu2  ;;  %v2261_v42 = vpop.f32.mrf.mxu3 }
0x1f62   :  { %v2264_v37 = vadd.f32 %v2241_v18, %v1525_v40  ;;  %v2304_v36 = vadd.f32 %v2302_v3, %v2261_v42  ;;  %v5462_v3 = vld.sshfl [vmem:[#allocation1 + $0x20] sm:$0xff pattern:$0x73625140] }
0x1f64   :  { %4210 = vtanh.f32 %v2264_v37  ;;  %v3962_v8 = vmul.f32 -1.442695, %v2304_v36  ;;  %v3961_v14 = vmul.f32 -1.442695, %v2264_v37 }
0x1f65   :  { %4212 = vtanh.f32 %v2304_v36 }
0x1f66   :  { %4214 = vpow2.f32 %v3962_v8  ;;  %v2436_v8 = vrot.slane %v1518_v63, 2 }
0x1f6a   :  { %v4211_v13 = vpop.eup %4210 }
0x1f6b   :  { %v4213_v58 = vpop.eup %4212  ;;  %2287 = vrot.lane.b32.xlu1 %v4211_v13, %s4501_s3 }
0x1f6c   :  { %2327 = vrot.lane.b32.xlu2 %v4213_v58, %s4501_s3  ;;  %v4215_v23 = vpop.eup %4214 }
0x1f6d   :  { %v2308_v15 = vadd.f32 1.0, %v4215_v23 }
0x1f6f   :  { %4216 = vrcp.f32 %v2308_v15  ;;  %v2320_v2 = vand.u32 2147483648, %v2308_v15  ;;  %vm2314_vm8 = vweird.f32 %v2308_v15  ;;  %v2318_v9 = vand.u32 2147483647, %v2308_v15 }
0x1f70   :  { %4218 = vpow2.f32 %v3961_v14 }
0x1f71   :  { %v2321_v29 = vor.u32 1.1754944e-38, %v2320_v2  ;;  %vm2319_vm2 = vcmp.eq.f32.partialorder %v2318_v9, 8.507059e+37 }
0x1f75   :  { %v4217_v16 = vpop.eup %4216 }
0x1f76   :  { %v2310_v46 = vmul.f32 %v4217_v16, %v2308_v15  ;;  %v4219_v40 = vpop.eup %4218  ;;  %vm2315_vm7 = vweird.f32 %v4217_v16 }
0x1f77   :  { %v2268_v39 = vadd.f32 1.0, %v4219_v40  ;;  %vm2316_vm1 = vmor %vm2314_vm8, %vm2315_vm7 }
0x1f78   :  { %v2311_v54 = vsub.f32 1.0, %v2310_v46 }
0x1f79   :  { %4220 = vrcp.f32 %v2268_v39  ;;  %v2280_v4 = vand.u32 2147483648, %v2268_v39  ;;  %vm2274_vm4 = vweird.f32 %v2268_v39  ;;  %v2278_v17 = vand.u32 2147483647, %v2268_v39 }
0x1f7a   :  { %v2312_v34 = vmul.f32 %v4217_v16, %v2311_v54 }
0x1f7b   :  { %v2281_v51 = vor.u32 1.1754944e-38, %v2280_v4  ;;  %vm2279_vm10 = vcmp.eq.f32.partialorder %v2278_v17, 8.507059e+37 }
0x1f7c   :  { %v2313_v41 = vadd.f32 %v4217_v16, %v2312_v34 }
0x1f7e   :  { %v2317_v19 = vsel %vm2316_vm1, %v4217_v16, %v2313_v41 }
0x1f7f   :  { %v2322_v49 = vsel %vm2319_vm2, %v2321_v29, %v2317_v19  ;;  %v4221_v22 = vpop.eup %4220 }
0x1f80   :  { %v2270_v56 = vmul.f32 %v4221_v22, %v2268_v39  ;;  %vm2275_vm3 = vweird.f32 %v4221_v22  ;;  %v2325_v26 = vmul.f32 %v2322_v49, %v5427_v50 }
0x1f81   :  { %vm2276_vm9 = vmor %vm2274_vm4, %vm2275_vm3 }
0x1f82   :  { %v2271_v33 = vsub.f32 1.0, %v2270_v56 }
0x1f84   :  { %v2272_v12 = vmul.f32 %v4221_v22, %v2271_v33 }
0x1f86   :  { %v2273_v11 = vadd.f32 %v4221_v22, %v2272_v12 }
0x1f88   :  { %v2277_v20 = vsel %vm2276_vm9, %v4221_v22, %v2273_v11 }
0x1f89   :  { %v2282_v62 = vsel %vm2279_vm10, %v2281_v51, %v2277_v20 }
0x1f8a   :  { %v2285_v5 = vmul.f32 %v2282_v62, %v5425_v48 }
0x1fc6   :  { %v2328_v61 = vpop.permute.xlu2 %2327 }
0x1fc7   :  { %v2330_v44 = vmul.f32 %v2328_v61, %v2322_v49 }
0x1fc9   :  { %2332 = vrot.lane.b32.xlu1 %v2330_v44, %s4502_s4 }
0x1fdd   :  { %v2288_v30 = vpop.permute.xlu1 %2287 }
0x1fde   :  { %v2290_v21 = vmul.f32 %v2288_v30, %v2282_v62 }
0x1fe0   :  { %2292 = vrot.lane.b32.xlu0 %v2290_v21, %s4502_s4 }
0x203b   :  { %v2333_v0 = vpop.permute.xlu1 %2332 }
0x203c   :  { %v5453_v1 = vadd.f32 %v2333_v0, %v2325_v26 }
0x203e   :  { %4222 = vtanh.f32 %v5453_v1 }
0x2044   :  { %v4223_v6 = vpop.eup %4222 }
0x2045   :  { %2338 = vrot.lane.b32.xlu0 %v4223_v6, %s4501_s3 }
0x2052   :  { %v2293_v45 = vpop.permute.xlu0 %2292 }
0x2053   :  { %v5458_v60 = vadd.f32 %v2293_v45, %v2285_v5 }
0x2055   :  { %4224 = vtanh.f32 %v5458_v60 }
0x205b   :  { %v4225_v55 = vpop.eup %4224 }
0x205c   :  { %2298 = vrot.lane.b32.xlu2 %v4225_v55, %s4501_s3 }
0x20b6   :  { %v2299_v35 = vpop.permute.xlu2 %2298 }
0x20b7   :  { %v2301_v50 = vmul.f32 %v2299_v35, %v2282_v62  ;;  %v2339_v18 = vpop.permute.xlu0 %2338 }
0x20b8   :  { %v5464_v42 = vmul.f32 %v2339_v18, %v2322_v49 }
0x20b9   :  { %2343 = vst [vmem:[#allocation1] ss:$4 sm:$0xff] %v2301_v50 }
0x20ba   :  { %2622 = vst [vmem:[#allocation1 + $0x20] ss:$4 sm:$0xff] %v2301_v50 }
0x20c0   :  { %v2344_v37 = vld.sshfl [vmem:[#allocation1] sm:$0xff pattern:$0x73625140] }
0x20c1   :  { %2345 = vrot.lane.b32.xlu1 %v2344_v37, %s4502_s4  ;;  %2349 = vst [vmem:[#allocation1] ss:$4 sm:$0xff] %v5464_v42 }
0x20c8   :  { %v2350_v48 = vld.sshfl [vmem:[#allocation1] sm:$0xff pattern:$0x73625140] }
0x20c9   :  { %2351 = vrot.lane.b32.xlu2 %v2350_v48, %s4501_s3 }
0x2123   :  { %v2352_v36 = vpop.permute.xlu2 %2351 }
0x2133   :  { %v2346_v13 = vpop.permute.xlu1 %2345 }
0x2134   :  { %v2354_v58 = vsel %vm162_vm0, %v2346_v13, %v2352_v36 }
0x2135   :  { %3963 = vmatmul.msk.f32.vlgmr.msra.gmra.mxu0 %vm261_vm13, %v2354_v58  ;;  %3964 = vmatmul.msk.f32.vlgmr.msra.gmra.mxu1 %vm261_vm13, %v2354_v58 }
0x21b2   :  { %v2375_v23 = vpop.f32.mrf.mxu0  ;;  %v2395_v15 = vpop.f32.mrf.mxu1 }
0x21b3   :  { %v2398_v16 = vadd.f32 %v2375_v23, %v1527_v57  ;;  %v2438_v14 = vadd.f32 %v2436_v8, %v2395_v15 }
0x21b5   :  { %4226 = vtanh.f32 %v2398_v16  ;;  %v3965_v40 = vmul.f32 -1.442695, %v2398_v16  ;;  %v3966_v34 = vmul.f32 -1.442695, %v2438_v14 }
0x21b6   :  { %4228 = vtanh.f32 %v2438_v14 }
0x21b7   :  { %4230 = vpow2.f32 %v3965_v40 }
0x21b8   :  { %4232 = vpow2.f32 %v3966_v34 }
0x21bb   :  { %v4227_v46 = vpop.eup %4226 }
0x21bc   :  { %v4229_v54 = vpop.eup %4228  ;;  %2421 = vrot.lane.b32.xlu0 %v4227_v46, %s4501_s3 }
0x21bd   :  { %2461 = vrot.lane.b32.xlu1 %v4229_v54, %s4501_s3  ;;  %v4231_v38 = vpop.eup %4230 }
0x21be   :  { %v4233_v63 = vpop.eup %4232  ;;  %v2402_v39 = vadd.f32 1.0, %v4231_v38 }
0x21bf   :  { %v2442_v41 = vadd.f32 1.0, %v4233_v63 }
0x21c0   :  { %4234 = vrcp.f32 %v2402_v39  ;;  %v2414_v56 = vand.u32 2147483648, %v2402_v39  ;;  %vm2408_vm14 = vweird.f32 %v2402_v39  ;;  %v2412_v12 = vand.u32 2147483647, %v2402_v39 }
0x21c1   :  { %4236 = vrcp.f32 %v2442_v41  ;;  %v2454_v33 = vand.u32 2147483648, %v2442_v41  ;;  %vm2448_vm15 = vweird.f32 %v2442_v41  ;;  %v2452_v11 = vand.u32 2147483647, %v2442_v41 }
0x21c2   :  { %v2415_v20 = vor.u32 1.1754944e-38, %v2414_v56  ;;  %vm2413_vm7 = vcmp.eq.f32.partialorder %v2412_v12, 8.507059e+37 }
0x21c3   :  { %v2455_v51 = vor.u32 1.1754944e-38, %v2454_v33  ;;  %vm2453_vm8 = vcmp.eq.f32.partialorder %v2452_v11, 8.507059e+37 }
0x21c6   :  { %v4235_v25 = vpop.eup %4234 }
0x21c7   :  { %v4237_v57 = vpop.eup %4236  ;;  %v2404_v2 = vmul.f32 %v4235_v25, %v2402_v39  ;;  %vm2409_vm11 = vweird.f32 %v4235_v25 }
0x21c8   :  { %v2444_v9 = vmul.f32 %v4237_v57, %v2442_v41  ;;  %vm2449_vm12 = vweird.f32 %v4237_v57  ;;  %vm2410_vm5 = vmor %vm2408_vm14, %vm2409_vm11  ;;  %vm2702_vm14 = vcmask 517120  }
0x21c9   :  { %v2405_v19 = vsub.f32 1.0, %v2404_v2  ;;  %vm2450_vm6 = vmor %vm2448_vm15, %vm2449_vm12  ;;  %vm2799_vm15 = vcmask 1041409  }
0x21ca   :  { %v2445_v29 = vsub.f32 1.0, %v2444_v9 }
0x21cb   :  { %v2406_v61 = vmul.f32 %v4235_v25, %v2405_v19 }
0x21cc   :  { %v2446_v49 = vmul.f32 %v4237_v57, %v2445_v29 }
0x21cd   :  { %v2407_v22 = vadd.f32 %v4235_v25, %v2406_v61 }
0x21ce   :  { %v2447_v44 = vadd.f32 %v4237_v57, %v2446_v49 }
0x21cf   :  { %v2411_v4 = vsel %vm2410_vm5, %v4235_v25, %v2407_v22  ;;  %vm2802_vm5 = vcmask 1042434  }
0x21d0   :  { %v2451_v17 = vsel %vm2450_vm6, %v4237_v57, %v2447_v44  ;;  %v2416_v62 = vsel %vm2413_vm7, %v2415_v20, %v2411_v4  ;;  %vm2805_vm6 = vcmask 1043459   ;;  %vm2808_vm7 = vcmask 1044484  }
0x21d1   :  { %v2456_v26 = vsel %vm2453_vm8, %v2455_v51, %v2451_v17  ;;  %v2419_v5 = vmul.f32 %v2416_v62, %v5458_v60  ;;  %vm2811_vm8 = vcmask 1045509  }
0x21d2   :  { %v2459_v50 = vmul.f32 %v2456_v26, %v5453_v1 }
0x222e   :  { %v2422_v30 = vpop.permute.xlu0 %2421 }
0x222f   :  { %v2462_v21 = vpop.permute.xlu1 %2461  ;;  %v2424_v0 = vmul.f32 %v2422_v30, %v2416_v62 }
0x2230   :  { %v2464_v6 = vmul.f32 %v2462_v21, %v2456_v26 }
0x2231   :  { %2426 = vrot.lane.b32.xlu2 %v2424_v0, %s4502_s4 }
0x2232   :  { %2466 = vrot.lane.b32.xlu0 %v2464_v6, %s4502_s4 }
0x228b   :  { %v2427_v45 = vpop.permute.xlu2 %2426 }
0x228c   :  { %v5481_v55 = vadd.f32 %v2427_v45, %v2419_v5  ;;  %v2623_v45 = vld.sshfl [vmem:[#allocation1 + $0x20] sm:$0xff pattern:$0x73625140] }
0x228e   :  { %4238 = vtanh.f32 %v5481_v55 }
0x2294   :  { %v4239_v35 = vpop.eup %4238 }
0x2295   :  { %2432 = vrot.lane.b32.xlu1 %v4239_v35, %s4501_s3 }
0x22a4   :  { %v2467_v18 = vpop.permute.xlu0 %2466 }
0x22a5   :  { %v5486_v37 = vadd.f32 %v2467_v18, %v2459_v50 }
0x22a7   :  { %4240 = vtanh.f32 %v5486_v37 }
0x22ad   :  { %v4241_v48 = vpop.eup %4240 }
0x22ae   :  { %2472 = vrot.lane.b32.xlu2 %v4241_v48, %s4501_s3 }
0x2307   :  { %v2433_v36 = vpop.permute.xlu1 %2432 }
0x2308   :  { %v2435_v60 = vmul.f32 %v2433_v36, %v2416_v62  ;;  %v2473_v13 = vpop.permute.xlu2 %2472 }
0x2309   :  { %v5490_v58 = vmul.f32 %v2473_v13, %v2456_v26 }
0x230a   :  { %2477 = vst [vmem:[#allocation1] ss:$4 sm:$0xff] %v2435_v60 }
0x2311   :  { %v2478_v8 = vld.sshfl [vmem:[#allocation1] sm:$0xff pattern:$0x73625140] }
0x2312   :  { %2479 = vrot.lane.b32.xlu0 %v2478_v8, %s4502_s4  ;;  %2483 = vst [vmem:[#allocation1] ss:$4 sm:$0xff] %v5490_v58 }
0x2319   :  { %v2484_v1 = vld.sshfl [vmem:[#allocation1] sm:$0xff pattern:$0x73625140] }
0x231a   :  { %2485 = vrot.lane.b32.xlu1 %v2484_v1, %s4501_s3  ;;  %2611 = vst [vmem:[#allocation1] ss:$4 sm:$0xff] %v5270_v53  ;;  %v2570_v53 = vrot.slane %v5231_v43, 2 }
0x2321   :  { %v5496_v23 = vld.sshfl [vmem:[#allocation1] sm:$0xff pattern:$0x73625140] }
0x2322   :  { %2616 = vst [vmem:[#allocation1] ss:$4 sm:$0xff] %v5361_v59 }
0x2329   :  { %v5499_v15 = vld.sshfl [vmem:[#allocation1] sm:$0xff pattern:$0x73625140] }
0x232a   :  { %2620 = vst [vmem:[#allocation1] ss:$4 sm:$0xff] %v5433_v10 }
0x2331   :  { %v5502_v16 = vld.sshfl [vmem:[#allocation1] sm:$0xff pattern:$0x73625140] }
0x2332   :  { %2624 = vst [vmem:[#allocation1] ss:$4 sm:$0xff] %v2435_v60 }
0x2384   :  { %v2480_v14 = vpop.permute.xlu0 %2479 }
0x238c   :  { %v2486_v46 = vpop.permute.xlu1 %2485 }
0x238d   :  { %v2488_v54 = vsel %vm162_vm0, %v2480_v14, %v2486_v46 }
0x238e   :  { %3967 = vmatmul.msk.f32.vlgmr.msra.gmra.mxu2 %vm261_vm13, %v2488_v54  ;;  %3968 = vmatmul.msk.f32.vlgmr.msra.gmra.mxu3 %vm261_vm13, %v2488_v54 }
0x2411   :  { %v2509_v40 = vpop.f32.mrf.mxu2  ;;  %v2529_v34 = vpop.f32.mrf.mxu3 }
0x2412   :  { %v2532_v59 = vadd.f32 %v2509_v40, %v1529_v31  ;;  %v2572_v38 = vadd.f32 %v2570_v53, %v2529_v34  ;;  %v2718_v34 = vld [vmem:[#allocation8 + $0x30] sm:$0xff] }
0x2414   :  { %4242 = vtanh.f32 %v2532_v59  ;;  %v3969_v39 = vmul.f32 -1.442695, %v2532_v59  ;;  %v3970_v57 = vmul.f32 -1.442695, %v2572_v38 }
0x2415   :  { %4244 = vtanh.f32 %v2572_v38  ;;  %v2717_v38 = vld [vmem:[#allocation8 + $0x28] sm:$0xff] }
0x2416   :  { %4246 = vpow2.f32 %v3969_v39  ;;  %v2715_v39 = vld [vmem:[#allocation8 + $0x18] sm:$0xff] }
0x241a   :  { %v4243_v10 = vpop.eup %4242 }
0x241b   :  { %v4245_v63 = vpop.eup %4244  ;;  %2555 = vrot.lane.b32.xlu2 %v4243_v10, %s4501_s3 }
0x241c   :  { %2595 = vrot.lane.b32.xlu0 %v4245_v63, %s4501_s3  ;;  %v4247_v41 = vpop.eup %4246  ;;  %v2716_v63 = vld [vmem:[#allocation8 + $0x20] sm:$0xff] }
0x241d   :  { %v2536_v25 = vadd.f32 1.0, %v4247_v41  ;;  %v2714_v41 = vld [vmem:[#allocation8 + $0x10] sm:$0xff] }
0x241f   :  { %4248 = vrcp.f32 %v2536_v25  ;;  %v2548_v61 = vand.u32 2147483648, %v2536_v25  ;;  %vm2542_vm2 = vweird.f32 %v2536_v25  ;;  %v2546_v49 = vand.u32 2147483647, %v2536_v25 }
0x2420   :  { %4250 = vpow2.f32 %v3970_v57 }
0x2421   :  { %v2549_v44 = vor.u32 1.1754944e-38, %v2548_v61  ;;  %vm2547_vm4 = vcmp.eq.f32.partialorder %v2546_v49, 8.507059e+37  ;;  %v2854_v61 = vlaneseq }
0x2423   :  { %v2855_v49 = vshrl.u32 %v2854_v61, 7 }
0x2425   :  { %v4249_v43 = vpop.eup %4248  ;;  %3995 = vset.pattern.permute.xlu1 %v2855_v49  ;;  %3994 = vset.pattern.permute.xlu2 %v2855_v49 }
0x2426   :  { %v2538_v2 = vmul.f32 %v4249_v43, %v2536_v25  ;;  %v4251_v9 = vpop.eup %4250  ;;  %vm2543_vm1 = vweird.f32 %v4249_v43  ;;  %v2713_v25 = vld [vmem:[#allocation8 + $0x8] sm:$0xff] }
0x2427   :  { %v2576_v19 = vadd.f32 1.0, %v4251_v9  ;;  %vm2544_vm3 = vmor %vm2542_vm2, %vm2543_vm1  ;;  %vm2814_vm1 = vcmask 1046534   ;;  %vm2817_vm2 = vcmask 1047559  }
0x2428   :  { %v2539_v24 = vsub.f32 1.0, %v2538_v2 }
0x2429   :  { %4252 = vrcp.f32 %v2576_v19  ;;  %v2588_v30 = vand.u32 2147483648, %v2576_v19  ;;  %vm2582_vm10 = vweird.f32 %v2576_v19  ;;  %v2586_v62 = vand.u32 2147483647, %v2576_v19 }
0x242a   :  { %v2540_v31 = vmul.f32 %v4249_v43, %v2539_v24 }
0x242b   :  { %v2589_v26 = vor.u32 1.1754944e-38, %v2588_v30  ;;  %vm2587_vm12 = vcmp.eq.f32.partialorder %v2586_v62, 8.507059e+37 }
0x242c   :  { %v2541_v29 = vadd.f32 %v4249_v43, %v2540_v31  ;;  %v2712_v31 = vld [vmem:[#allocation8] sm:$0xff] }
0x242e   :  { %v2545_v22 = vsel %vm2544_vm3, %v4249_v43, %v2541_v29  ;;  %vm2935_vm3 = vcmask 64512  }
0x242f   :  { %v2550_v33 = vsel %vm2547_vm4, %v2549_v44, %v2545_v22  ;;  %v4253_v11 = vpop.eup %4252 }
0x2430   :  { %v2578_v4 = vmul.f32 %v4253_v11, %v2576_v19  ;;  %vm2583_vm9 = vweird.f32 %v4253_v11  ;;  %v2553_v35 = vmul.f32 %v2550_v33, %v5481_v55 }
0x2431   :  { %vm2584_vm11 = vmor %vm2582_vm10, %vm2583_vm9  ;;  %vm3642_vm10 = vcmask 1040384  }
0x2432   :  { %v2579_v17 = vsub.f32 1.0, %v2578_v4 }
0x2434   :  { %v2580_v20 = vmul.f32 %v4253_v11, %v2579_v17 }
0x2436   :  { %v2581_v51 = vadd.f32 %v4253_v11, %v2580_v20 }
0x2438   :  { %v2585_v21 = vsel %vm2584_vm11, %v4253_v11, %v2581_v51  ;;  %vm3651_vm11 = vcmask 58368  }
0x2439   :  { %v2590_v6 = vsel %vm2587_vm12, %v2589_v26, %v2585_v21 }
0x243a   :  { %v2593_v50 = vmul.f32 %v2590_v6, %v5486_v37 }
0x2475   :  { %v2556_v56 = vpop.permute.xlu2 %2555 }
0x2476   :  { %v2558_v12 = vmul.f32 %v2556_v56, %v2550_v33 }
0x2478   :  { %2560 = vrot.lane.b32.xlu1 %v2558_v12, %s4502_s4  ;;  %v2711_v12 = vld [vmem:[%s6147_s1] sm:$0x3] }
0x2479   :  { %v3268_v11 = vperm.slane %v2711_v12, 1  ;;  %v2852_v4 = vperm.slane %v2711_v12, 0 }
0x248e   :  { %v2596_v0 = vpop.permute.xlu0 %2595 }
0x248f   :  { %v2598_v5 = vmul.f32 %v2596_v0, %v2590_v6 }
0x2491   :  { %2600 = vrot.lane.b32.xlu2 %v2598_v5, %s4502_s4 }
0x2499   :  { %2628 = vrot.lane.b32.xlu2 %v5496_v23, %s4502_s4 }
0x24a1   :  { %2634 = vrot.lane.b32.xlu2 %v5462_v3, %s4502_s4  ;;  %v2625_v3 = vld.sshfl [vmem:[#allocation1] sm:$0xff pattern:$0x73625140] }
0x24a9   :  { %2638 = vrot.lane.b32.xlu2 %v2623_v45, %s4502_s4 }
0x24ea   :  { %v2561_v18 = vpop.permute.xlu1 %2560 }
0x24eb   :  { %v2601_v48 = vpop.permute.xlu2 %2600  ;;  %v2563_v36 = vadd.f32 %v2561_v18, %v2553_v35 }
0x24ec   :  { %v2603_v60 = vadd.f32 %v2601_v48, %v2593_v50 }
0x24ed   :  { %4254 = vtanh.f32 %v2563_v36 }
0x24ee   :  { %4256 = vtanh.f32 %v2603_v60 }
0x24f3   :  { %v4255_v13 = vpop.eup %4254 }
0x24f4   :  { %v4257_v8 = vpop.eup %4256  ;;  %2566 = vrot.lane.b32.xlu0 %v4255_v13, %s4501_s3 }
0x24f5   :  { %2606 = vrot.lane.b32.xlu1 %v4257_v8, %s4501_s3 }
0x24fc   :  { %2630 = vrot.lane.b32.xlu0 %v5406_v28, %s4502_s4 }
0x24fd   :  { %2632 = vrot.lane.b32.xlu1 %v5499_v15, %s4502_s4 }
0x2504   :  { %2640 = vrot.lane.b32.xlu0 %v2625_v3, %s4502_s4 }
0x2505   :  { %2636 = vrot.lane.b32.xlu1 %v5502_v16, %s4502_s4 }
0x2566   :  { %v2567_v55 = vpop.permute.xlu0 %2566 }
0x2567   :  { %v2607_v37 = vpop.permute.xlu1 %2606  ;;  %v2569_v1 = vmul.f32 %v2567_v55, %v2550_v33 }
0x2568   :  { %v2609_v23 = vmul.f32 %v2607_v37, %v2590_v6 }
0x2569   :  { %2626 = vst [vmem:[#allocation1 + $0x20] ss:$4 sm:$0xff] %v2569_v1 }
0x256a   :  { %2653 = vst [vmem:[#allocation1] ss:$4 sm:$0xff] %v2609_v23 }
0x256f   :  { %v2633_v59 = vpop.permute.xlu1 %2632 }
0x2570   :  { %v2627_v14 = vld.sshfl [vmem:[#allocation1 + $0x20] sm:$0xff pattern:$0x73625140] }
0x2571   :  { %2642 = vrot.lane.b32.xlu1 %v2627_v14, %s4502_s4  ;;  %2656 = vst [vmem:[#allocation1 + $0x20] ss:$4 sm:$0xff] %v5490_v58  ;;  %v2654_v28 = vld.sshfl [vmem:[#allocation1] sm:$0xff pattern:$0x73625140] }
0x2572   :  { %2670 = vrot.lane.b32.xlu0 %v2654_v28, %s4501_s3  ;;  %2658 = vst [vmem:[#allocation1] ss:$4 sm:$0xff] %v5464_v42 }
0x2577   :  { %v2637_v43 = vpop.permute.xlu1 %2636 }
0x2578   :  { %v2657_v15 = vld.sshfl [vmem:[#allocation1 + $0x20] sm:$0xff pattern:$0x73625140] }
0x2579   :  { %2672 = vrot.lane.b32.xlu1 %v2657_v15, %s4501_s3  ;;  %2660 = vst [vmem:[#allocation1 + $0x20] ss:$4 sm:$0xff] %v5436_v7  ;;  %v2659_v16 = vld.sshfl [vmem:[#allocation1] sm:$0xff pattern:$0x73625140] }
0x257a   :  { %2674 = vrot.lane.b32.xlu2 %v2659_v16, %s4501_s3  ;;  %2662 = vst [vmem:[#allocation1] ss:$4 sm:$0xff] %v5408_v47  ;;  %v2629_v47 = vpop.permute.xlu2 %2628 }
0x2580   :  { %v2661_v46 = vld.sshfl [vmem:[#allocation1 + $0x20] sm:$0xff pattern:$0x73625140] }
0x2581   :  { %2676 = vrot.lane.b32.xlu0 %v2661_v46, %s4501_s3  ;;  %2664 = vst [vmem:[#allocation1 + $0x20] ss:$4 sm:$0xff] %v5364_v52  ;;  %v2663_v58 = vld.sshfl [vmem:[#allocation1] sm:$0xff pattern:$0x73625140] }
0x2582   :  { %2678 = vrot.lane.b32.xlu2 %v2663_v58, %s4501_s3  ;;  %2666 = vst [vmem:[#allocation1] ss:$4 sm:$0xff] %v5317_v32  ;;  %v2635_v53 = vpop.permute.xlu2 %2634  ;;  %v2719_v52 = vld [vmem:[#allocation8 + $0x38] sm:$0xff]  ;;  %v2631_v32 = vpop.permute.xlu0 %2630 }
0x2583   :  { %2761 = vmatpush.msrb.mxu0 %v2719_v52  ;;  %v3999_v52 = vld [vmem:[%s6155_s9] ss:$0 sm:$0xff] }
0x2585   :  { %2762 = vmatpush.msrb.mxu0 %v2718_v34 }
0x2587   :  { %2763 = vmatpush.msrb.mxu0 %v2717_v38 }
0x2588   :  { %v2665_v42 = vld.sshfl [vmem:[#allocation1 + $0x20] sm:$0xff pattern:$0x73625140] }
0x2589   :  { %2680 = vrot.lane.b32.xlu0 %v2665_v42, %s4501_s3  ;;  %2668 = vst [vmem:[#allocation1 + $0x20] ss:$4 sm:$0xff] %v5274_v27  ;;  %v2667_v7 = vld.sshfl [vmem:[#allocation1] sm:$0xff pattern:$0x73625140]  ;;  %2764 = vmatpush.msrb.mxu0 %v2716_v63 }
0x258a   :  { %2682 = vrot.lane.b32.xlu1 %v2667_v7, %s4501_s3  ;;  %v5546_v40 = vpop.permute.xlu2 %2638  ;;  %v5550_v57 = vpop.permute.xlu0 %2640 }
0x258b   :  { %2765 = vmatpush.msrb.mxu0 %v2715_v39 }
0x258d   :  { %2766 = vmatpush.msrb.mxu0 %v2714_v41 }
0x258f   :  { %2767 = vmatpush.msrb.mxu0 %v2713_v25 }
0x2590   :  { %v2669_v54 = vld.sshfl [vmem:[#allocation1 + $0x20] sm:$0xff pattern:$0x73625140] }
0x2591   :  { %2684 = vrot.lane.b32.xlu2 %v2669_v54, %s4501_s3  ;;  %2768 = vmatpush.msrb.mxu0 %v2712_v31 }
0x2592   :  { %3274 = vperm.xlu1 %3995, %v3268_v11  }
0x2599   :  { %2858 = vperm.xlu2 %3994, %v2852_v4  }
0x25d4   :  { %v2675_v10 = vpop.permute.xlu2 %2674 }
0x25d5   :  { %v2696_v27 = vsel %vm162_vm0, %v2633_v59, %v2675_v10 }
0x25d6   :  { %2705 = vst.msk [vmem:[#allocation11 + $0x4] sm:$0x3] %vm2702_vm14, %v2696_v27  ;;  %v2801_v6 = vrot.slane %v2696_v27, 6  ;;  %v3223_v5 = vrot.slane %v2696_v27, 7 }
0x25d7   :  { %2736 = vst [vmem:[#allocation1 + $0x2] ss:$4 sm:$0xff] %v2696_v27 }
0x25dc   :  { %v2679_v2 = vpop.permute.xlu2 %2678 }
0x25dd   :  { %v5553_v24 = vsel %vm162_vm0, %v2637_v43, %v2679_v2 }
0x25de   :  { %2707 = vst.msk [vmem:[#allocation11 + $0x8] sm:$0x3] %vm2702_vm14, %v5553_v24  ;;  %v2807_v50 = vrot.slane %v5553_v24, 4  ;;  %v3227_v60 = vrot.slane %v5553_v24, 5 }
0x25df   :  { %2740 = vst [vmem:[#allocation1 + $0x20] ss:$4 sm:$0xff] %v5553_v24 }
0x25e3   :  { %v2643_v9 = vpop.permute.xlu1 %2642 }
0x25e4   :  { %v2671_v19 = vpop.permute.xlu0 %2670 }
0x25e5   :  { %v2694_v29 = vsel %vm162_vm0, %v2629_v47, %v2671_v19 }
0x25e6   :  { %2703 = vst.msk [vmem:[#allocation11] sm:$0x3] %vm2702_vm14, %v2694_v29  ;;  %v3221_v30 = vrot.slane %v2694_v29, 1 }
0x25e7   :  { %2732 = vst [vmem:[#allocation1] ss:$4 sm:$0xff] %v2694_v29 }
0x25eb   :  { %v2673_v22 = vpop.permute.xlu1 %2672  ;;  %v2685_v44 = vpop.permute.xlu2 %2684 }
0x25ec   :  { %v2695_v56 = vsel %vm162_vm0, %v2631_v32, %v2673_v22  ;;  %v2701_v33 = vsel %vm162_vm0, %v2643_v9, %v2685_v44 }
0x25ed   :  { %2704 = vst.msk [vmem:[#allocation11 + $0x2] sm:$0x3] %vm2702_vm14, %v2695_v56  ;;  %v2798_v17 = vrot.slane %v2695_v56, 7  ;;  %v3222_v21 = vsel %vm2799_vm15, %v2695_v56, %v3221_v30  ;;  %v2816_v3 = vrot.slane %v2701_v33, 1  ;;  %v3233_v16 = vrot.slane %v2701_v33, 2 }
0x25ee   :  { %2734 = vst [vmem:[#allocation1 + $0x1] ss:$4 sm:$0xff] %v2695_v56  ;;  %v3224_v45 = vsel %vm2802_vm5, %v3223_v5, %v3222_v21 }
0x25ef   :  { %2710 = vst.msk [vmem:[#allocation11 + $0xe] sm:$0x3] %vm2702_vm14, %v2701_v33  ;;  %v2800_v62 = vsel %vm2799_vm15, %v2798_v17, %v2694_v29 }
0x25f0   :  { %2746 = vst [vmem:[#allocation1 + $0x23] ss:$4 sm:$0xff] %v2701_v33  ;;  %v2803_v35 = vsel %vm2802_vm5, %v2801_v6, %v2800_v62 }
0x25f3   :  { %v2677_v20 = vpop.permute.xlu0 %2676 }
0x25f4   :  { %v2697_v51 = vsel %vm162_vm0, %v2635_v53, %v2677_v20 }
0x25f5   :  { %2706 = vst.msk [vmem:[#allocation11 + $0x6] sm:$0x3] %vm2702_vm14, %v2697_v51  ;;  %v2804_v26 = vrot.slane %v2697_v51, 5  ;;  %v3225_v0 = vrot.slane %v2697_v51, 6 }
0x25f6   :  { %2738 = vst [vmem:[#allocation1 + $0x3] ss:$4 sm:$0xff] %v2697_v51 }
0x25f7   :  { %v2806_v18 = vsel %vm2805_vm6, %v2804_v26, %v2803_v35  ;;  %v3226_v48 = vsel %vm2805_vm6, %v3225_v0, %v3224_v45 }
0x25f8   :  { %v2809_v23 = vsel %vm2808_vm7, %v2807_v50, %v2806_v18  ;;  %v3228_v14 = vsel %vm2808_vm7, %v3227_v60, %v3226_v48 }
0x25fb   :  { %v2681_v36 = vpop.permute.xlu0 %2680 }
0x25fc   :  { %v2699_v13 = vsel %vm162_vm0, %v5546_v40, %v2681_v36  ;;  %v2683_v8 = vpop.permute.xlu1 %2682 }
0x25fd   :  { %2708 = vst.msk [vmem:[#allocation11 + $0xa] sm:$0x3] %vm2702_vm14, %v2699_v13  ;;  %v2810_v55 = vrot.slane %v2699_v13, 3  ;;  %v3229_v37 = vrot.slane %v2699_v13, 4  ;;  %v2700_v1 = vsel %vm162_vm0, %v5550_v57, %v2683_v8 }
0x25fe   :  { %2742 = vst [vmem:[#allocation1 + $0x21] ss:$4 sm:$0xff] %v2699_v13  ;;  %v2813_v28 = vrot.slane %v2700_v1, 2  ;;  %v3231_v15 = vrot.slane %v2700_v1, 3 }
0x25ff   :  { %v2812_v46 = vsel %vm2811_vm8, %v2810_v55, %v2809_v23  ;;  %v3230_v58 = vsel %vm2811_vm8, %v3229_v37, %v3228_v14  ;;  %2709 = vst.msk [vmem:[#allocation11 + $0xc] sm:$0x3] %vm2702_vm14, %v2700_v1  ;;  %v2747_v42 = vld.sshfl [vmem:[#allocation1] sm:$0xff pattern:$0x73625140] }
0x2600   :  { %v2815_v7 = vsel %vm2814_vm1, %v2813_v28, %v2812_v46  ;;  %v3232_v54 = vsel %vm2814_vm1, %v3231_v15, %v3230_v58  ;;  %2744 = vst [vmem:[#allocation1 + $0x22] ss:$4 sm:$0xff] %v2700_v1  ;;  %3971 = vmatmul.msk.f32.vlgmr.msrb.gmra.mxu0 %vm261_vm13, %v2747_v42  ;;  %3887 = dma.vmem_to_hbm [thread:$0]  %s3880_s18, 256, %s3882_s5, [#allocation12], %s4502_s4, %s4502_s4, %s4506_s2  }
0x2601   :  { %v5592_v47 = vsel %vm2817_vm2, %v2816_v3, %v2815_v7  ;;  %v5595_v53 = vsel %vm2817_vm2, %v3233_v16, %v3232_v54  ;;  %v4503_v54 = vmov 0  }
0x2602   :  { %3208 = vmatpush.msrb.mxu1 %v5592_v47  ;;  %3996 = vset.pattern.permute.xlu0 %v4503_v54 }
0x2603   :  { %3997 = vset.pattern.permute.xlu2 %v4503_v54  ;;  %3998 = vset.pattern.permute.xlu1 %v4503_v54 }
0x2604   :  { %3621 = vmatpush.msra.mxu1 %v5595_v53 }
0x2607   :  { %v2748_v40 = vld.sshfl [vmem:[#allocation1 + $0x20] sm:$0xff pattern:$0x73625140] }
0x2608   :  { %3972 = vmatmul.msk.f32.gmra.mxu0 %vm261_vm13, %v2748_v40  ;;  %v5637_v40 = vpop.permute.xlu2 %2858 }
0x267d   :  { %v2770_v34 = vpop.f32.mrf.mxu0 }
0x267e   :  { %v2771_v59 = vadd.f32 %v3999_v52, %v2770_v34 }
0x2680   :  { %v3213_v32 = vperm.slane %v2771_v59, 1  ;;  %v2790_v38 = vperm.slane %v2771_v59, 0  ;;  %v2779_v10 = vrot.slane %v2771_v59, 4  ;;  %v2780_v27 = vrot.slane %v2771_v59, 6 }
0x2681   :  { %v2778_v63 = vrot.slane %v2771_v59, 2 }
0x2682   :  { %v3236_v39 = vmul.f32 %v5595_v53, %v3213_v32  ;;  %v2820_v41 = vmul.f32 %v5592_v47, %v2790_v38  ;;  %v2792_v25 = vperm.slane %v2779_v10, 0  ;;  %v2793_v43 = vperm.slane %v2780_v27, 0 }
0x2683   :  { %v2791_v31 = vperm.slane %v2778_v63, 0  ;;  %v3214_v29 = vperm.slane %v2778_v63, 1  ;;  %v3215_v11 = vperm.slane %v2779_v10, 1  ;;  %v3216_v26 = vperm.slane %v2780_v27, 1 }
0x2684   :  { %v3244_v57 = vsel %vm261_vm13, %v3236_v39, 0.0  ;;  %v2828_v2 = vsel %vm261_vm13, %v2820_v41, 0.0  ;;  %v2822_v24 = vmul.f32 %v5592_v47, %v2792_v25  ;;  %v2823_v22 = vmul.f32 %v5592_v47, %v2793_v43 }
0x2685   :  { %v2773_v9 = vpop.f32.mrf.mxu0  ;;  %3245 = vadd.xlane.f32.xlu1 %v3244_v57  ;;  %2829 = vadd.xlane.f32.xlu0 %v2828_v2  ;;  %v2821_v44 = vmul.f32 %v5592_v47, %v2791_v31  ;;  %v3237_v56 = vmul.f32 %v5595_v53, %v3214_v29  ;;  %v3238_v20 = vmul.f32 %v5595_v53, %v3215_v11 }
0x2686   :  { %v2834_v19 = vsel %vm261_vm13, %v2822_v24, 0.0  ;;  %v2774_v49 = vadd.f32 %v3999_v52, %v2773_v9  ;;  %v2837_v33 = vsel %vm261_vm13, %v2823_v22, 0.0  ;;  %v3239_v6 = vmul.f32 %v5595_v53, %v3216_v26 }
0x2687   :  { %2835 = vadd.xlane.f32.xlu2 %v2834_v19  ;;  %v2831_v12 = vsel %vm261_vm13, %v2821_v44, 0.0  ;;  %v3247_v17 = vsel %vm261_vm13, %v3237_v56, 0.0  ;;  %v3250_v62 = vsel %vm261_vm13, %v3238_v20, 0.0 }
0x2688   :  { %v2794_v4 = vperm.slane %v2774_v49, 0  ;;  %v2782_v30 = vrot.slane %v2774_v49, 4  ;;  %v3253_v45 = vsel %vm261_vm13, %v3239_v6, 0.0  ;;  %v3217_v50 = vperm.slane %v2774_v49, 1 }
0x2689   :  { %v2781_v60 = vrot.slane %v2774_v49, 2  ;;  %v2783_v37 = vrot.slane %v2774_v49, 6 }
0x268a   :  { %v2824_v51 = vmul.f32 %v5592_v47, %v2794_v4  ;;  %v2796_v0 = vperm.slane %v2782_v30, 0  ;;  %v3219_v18 = vperm.slane %v2782_v30, 1  ;;  %v3240_v48 = vmul.f32 %v5595_v53, %v3217_v50 }
0x268b   :  { %v2795_v3 = vperm.slane %v2781_v60, 0  ;;  %v2797_v23 = vperm.slane %v2783_v37, 0  ;;  %v3218_v15 = vperm.slane %v2781_v60, 1  ;;  %v3220_v58 = vperm.slane %v2783_v37, 1 }
0x268c   :  { %v2840_v21 = vsel %vm261_vm13, %v2824_v51, 0.0  ;;  %v2826_v5 = vmul.f32 %v5592_v47, %v2796_v0  ;;  %v3242_v36 = vmul.f32 %v5595_v53, %v3219_v18  ;;  %v3256_v13 = vsel %vm261_vm13, %v3240_v48, 0.0 }
0x268d   :  { %2838 = vadd.xlane.f32.xlu0 %v2837_v33  ;;  %2832 = vadd.xlane.f32.xlu1 %v2831_v12  ;;  %v2825_v55 = vmul.f32 %v5592_v47, %v2795_v3  ;;  %v2827_v14 = vmul.f32 %v5592_v47, %v2797_v23  ;;  %v3241_v16 = vmul.f32 %v5595_v53, %v3218_v15  ;;  %v5635_v47 = vpop.permute.xlu1 %3274 }
0x268e   :  { %v2846_v35 = vsel %vm261_vm13, %v2826_v5, 0.0  ;;  %v3262_v8 = vsel %vm261_vm13, %v3242_v36, 0.0  ;;  %v3243_v42 = vmul.f32 %v5595_v53, %v3220_v58 }
0x268f   :  { %3248 = vadd.xlane.f32.xlu2 %v3247_v17  ;;  %v2843_v1 = vsel %vm261_vm13, %v2825_v55, 0.0  ;;  %v2849_v28 = vsel %vm261_vm13, %v2827_v14, 0.0  ;;  %v3259_v46 = vsel %vm261_vm13, %v3241_v16, 0.0 }
0x2690   :  { %v3265_v7 = vsel %vm261_vm13, %v3243_v42, 0.0 }
0x2695   :  { %3251 = vadd.xlane.f32.xlu0 %v3250_v62  ;;  %2841 = vadd.xlane.f32.xlu1 %v2840_v21 }
0x269d   :  { %3254 = vadd.xlane.f32.xlu0 %v3253_v45  ;;  %2847 = vadd.xlane.f32.xlu1 %v2846_v35 }
0x26a5   :  { %3257 = vadd.xlane.f32.xlu0 %v3256_v13  ;;  %3263 = vadd.xlane.f32.xlu1 %v3262_v8 }
0x26ad   :  { %2844 = vadd.xlane.f32.xlu0 %v2843_v1 }
0x26b5   :  { %2850 = vadd.xlane.f32.xlu0 %v2849_v28 }
0x26bd   :  { %3260 = vadd.xlane.f32.xlu0 %v3259_v46 }
0x26c5   :  { %3266 = vadd.xlane.f32.xlu0 %v3265_v7 }
0x26f8   :  { %v3246_v52 = vpop.xlane.xlu1 %3245  ;;  %v2830_v34 = vpop.xlane.xlu0 %2829 }
0x26f9   :  { %v3277_v59 = vmul.f32 %v5635_v47, %v3246_v52  ;;  %v2861_v32 = vmul.f32 %v5637_v40, %v2830_v34 }
0x26fa   :  { %v2836_v38 = vpop.xlane.xlu2 %2835 }
0x26fb   :  { %v3285_v53 = vmul.f32 %v3277_v59, %v5635_v47  ;;  %v2869_v10 = vmul.f32 %v2861_v32, %v5637_v40  ;;  %v2863_v9 = vmul.f32 %v5637_v40, %v2836_v38 }
0x26fd   :  { %4258 = vtanh.f32 %v3285_v53  ;;  %v2871_v22 = vmul.f32 %v2863_v9, %v5637_v40 }
0x26fe   :  { %4260 = vtanh.f32 %v2869_v10 }
0x2700   :  { %v2839_v27 = vpop.xlane.xlu0 %2838  ;;  %v2833_v63 = vpop.xlane.xlu1 %2832 }
0x2701   :  { %v2864_v39 = vmul.f32 %v5637_v40, %v2839_v27  ;;  %v2862_v41 = vmul.f32 %v5637_v40, %v2833_v63 }
0x2702   :  { %v3249_v25 = vpop.xlane.xlu2 %3248 }
0x2703   :  { %v5645_v43 = vpop.eup %4258  ;;  %v2872_v57 = vmul.f32 %v2864_v39, %v5637_v40  ;;  %v2870_v2 = vmul.f32 %v2862_v41, %v5637_v40  ;;  %v3278_v31 = vmul.f32 %v5635_v47, %v3249_v25  ;;  %v5720_v39 = vand.u32 127, %v2854_v61 }
0x2704   :  { %v5649_v24 = vpop.eup %4260  ;;  %3310 = vperm.xlu2 %3997, %v5645_v43  }
0x2705   :  { %4262 = vtanh.f32 %v2872_v57  ;;  %2894 = vperm.xlu0 %3996, %v5649_v24   ;;  %v3286_v19 = vmul.f32 %v3278_v31, %v5635_v47 }
0x2706   :  { %4264 = vtanh.f32 %v2870_v2 }
0x2707   :  { %4266 = vtanh.f32 %v3286_v19 }
0x2708   :  { %v3252_v29 = vpop.xlane.xlu0 %3251  ;;  %v2842_v12 = vpop.xlane.xlu1 %2841 }
0x2709   :  { %v3279_v49 = vmul.f32 %v5635_v47, %v3252_v29  ;;  %v2865_v62 = vmul.f32 %v5637_v40, %v2842_v12 }
0x270b   :  { %v5658_v44 = vpop.eup %4262  ;;  %v3287_v56 = vmul.f32 %v3279_v49, %v5635_v47  ;;  %v2873_v6 = vmul.f32 %v2865_v62, %v5637_v40 }
0x270c   :  { %v5661_v33 = vpop.eup %4264  ;;  %2903 = vperm.xlu1 %3998, %v5658_v44  }
0x270d   :  { %4268 = vtanh.f32 %v3287_v56  ;;  %2897 = vperm.xlu2 %3997, %v5661_v33   ;;  %v5666_v17 = vpop.eup %4266 }
0x270e   :  { %4270 = vtanh.f32 %v2871_v22 }
0x2710   :  { %v3255_v11 = vpop.xlane.xlu0 %3254  ;;  %v2848_v26 = vpop.xlane.xlu1 %2847 }
0x2711   :  { %v3280_v4 = vmul.f32 %v5635_v47, %v3255_v11  ;;  %v2867_v35 = vmul.f32 %v5637_v40, %v2848_v26 }
0x2713   :  { %v5668_v20 = vpop.eup %4268  ;;  %v3288_v51 = vmul.f32 %v3280_v4, %v5635_v47  ;;  %v2875_v48 = vmul.f32 %v2867_v35, %v5637_v40 }
0x2714   :  { %v5671_v30 = vpop.eup %4270  ;;  %3316 = vperm.xlu0 %3996, %v5668_v20   ;;  %3313 = vperm.xlu1 %3998, %v5666_v17  }
0x2715   :  { %4272 = vtanh.f32 %v3288_v51  ;;  %2900 = vperm.xlu2 %3997, %v5671_v30  }
0x2718   :  { %v3258_v21 = vpop.xlane.xlu0 %3257  ;;  %v3264_v60 = vpop.xlane.xlu1 %3263 }
0x2719   :  { %v3281_v0 = vmul.f32 %v5635_v47, %v3258_v21  ;;  %v3283_v3 = vmul.f32 %v5635_v47, %v3264_v60 }
0x271b   :  { %v5679_v5 = vpop.eup %4272  ;;  %v3289_v45 = vmul.f32 %v3281_v0, %v5635_v47  ;;  %v3291_v1 = vmul.f32 %v3283_v3, %v5635_v47 }
0x271d   :  { %4274 = vtanh.f32 %v3289_v45  ;;  %3319 = vperm.xlu2 %3997, %v5679_v5  }
0x271e   :  { %4276 = vtanh.f32 %v2873_v6 }
0x2720   :  { %v2845_v50 = vpop.xlane.xlu0 %2844 }
0x2721   :  { %v2866_v18 = vmul.f32 %v5637_v40, %v2845_v50 }
0x2723   :  { %v5686_v36 = vpop.eup %4274  ;;  %v2874_v13 = vmul.f32 %v2866_v18, %v5637_v40 }
0x2724   :  { %v5689_v8 = vpop.eup %4276  ;;  %3322 = vperm.xlu1 %3998, %v5686_v36  }
0x2725   :  { %4278 = vtanh.f32 %v2874_v13  ;;  %2906 = vperm.xlu2 %3997, %v5689_v8  }
0x2726   :  { %4280 = vtanh.f32 %v2875_v48 }
0x2728   :  { %v2851_v55 = vpop.xlane.xlu0 %2850 }
0x2729   :  { %v2868_v37 = vmul.f32 %v5637_v40, %v2851_v55 }
0x272b   :  { %v5696_v23 = vpop.eup %4278  ;;  %v2876_v14 = vmul.f32 %v2868_v37, %v5637_v40 }
0x272c   :  { %v5699_v28 = vpop.eup %4280  ;;  %2909 = vperm.xlu0 %3996, %v5696_v23  }
0x272d   :  { %4282 = vtanh.f32 %v2876_v14  ;;  %2912 = vperm.xlu2 %3997, %v5699_v28  }
0x272e   :  { %4284 = vtanh.f32 %v3291_v1 }
0x2730   :  { %v3261_v15 = vpop.xlane.xlu0 %3260 }
0x2731   :  { %v3282_v16 = vmul.f32 %v5635_v47, %v3261_v15 }
0x2733   :  { %v5704_v46 = vpop.eup %4282  ;;  %v3290_v58 = vmul.f32 %v3282_v16, %v5635_v47 }
0x2734   :  { %v5707_v42 = vpop.eup %4284  ;;  %2915 = vperm.xlu0 %3996, %v5704_v46  }
0x2735   :  { %4286 = vtanh.f32 %v3290_v58  ;;  %3328 = vperm.xlu2 %3997, %v5707_v42  }
0x2738   :  { %v3267_v7 = vpop.xlane.xlu0 %3266 }
0x2739   :  { %v3284_v54 = vmul.f32 %v5635_v47, %v3267_v7 }
0x273b   :  { %v5712_v52 = vpop.eup %4286  ;;  %v3292_v34 = vmul.f32 %v3284_v54, %v5635_v47 }
0x273c   :  { %3325 = vperm.xlu0 %3996, %v5712_v52  }
0x273d   :  { %4288 = vtanh.f32 %v3292_v34 }
0x2743   :  { %v5716_v59 = vpop.eup %4288 }
0x2744   :  { %3331 = vperm.xlu1 %3998, %v5716_v59  }
0x275e   :  { %v3311_v32 = vpop.permute.xlu2 %3310 }
0x275f   :  { %v3333_v50 = vperm.slane %v3311_v32, %v5720_v39 }
0x2767   :  { %v2898_v38 = vpop.permute.xlu2 %2897 }
0x2768   :  { %v2920_v2 = vperm.slane %v2898_v38, %v5720_v39 }
0x276f   :  { %v2901_v53 = vpop.permute.xlu2 %2900 }
0x2770   :  { %v2921_v19 = vperm.slane %v2901_v53, %v5720_v39 }
0x2777   :  { %v2895_v10 = vpop.permute.xlu0 %2894  ;;  %v3320_v27 = vpop.permute.xlu2 %3319 }
0x2778   :  { %v2919_v41 = vperm.slane %v2895_v10, %v5720_v39  ;;  %v3336_v37 = vperm.slane %v3320_v27, %v5720_v39 }
0x277a   :  { %v2927_v31 = vsel %vm2799_vm15, %v2920_v2, %v2919_v41 }
0x277b   :  { %v2928_v22 = vsel %vm2802_vm5, %v2921_v19, %v2927_v31 }
0x277e   :  { %v2904_v57 = vpop.permute.xlu1 %2903 }
0x277f   :  { %v2907_v25 = vpop.permute.xlu2 %2906  ;;  %v2922_v9 = vperm.slane %v2904_v57, %v5720_v39 }
0x2780   :  { %v2923_v49 = vperm.slane %v2907_v25, %v5720_v39 }
0x2781   :  { %v2929_v61 = vsel %vm2805_vm6, %v2922_v9, %v2928_v22 }
0x2782   :  { %v2930_v11 = vsel %vm2808_vm7, %v2923_v49, %v2929_v61 }
0x2786   :  { %v3317_v63 = vpop.permute.xlu0 %3316  ;;  %v3314_v4 = vpop.permute.xlu1 %3313 }
0x2787   :  { %v2913_v12 = vpop.permute.xlu2 %2912  ;;  %v3334_v6 = vperm.slane %v3314_v4, %v5720_v39  ;;  %v3335_v18 = vperm.slane %v3317_v63, %v5720_v39 }
0x2788   :  { %v2925_v62 = vperm.slane %v2913_v12, %v5720_v39 }
0x2789   :  { %v3341_v48 = vsel %vm2799_vm15, %v3334_v6, %v3333_v50 }
0x278a   :  { %v3342_v3 = vsel %vm2802_vm5, %v3335_v18, %v3341_v48 }
0x278b   :  { %v3343_v15 = vsel %vm2805_vm6, %v3336_v37, %v3342_v3 }
0x278f   :  { %v3329_v14 = vpop.permute.xlu2 %3328 }
0x2790   :  { %v3339_v7 = vperm.slane %v3329_v14, %v5720_v39 }
0x2796   :  { %v3323_v60 = vpop.permute.xlu1 %3322 }
0x2797   :  { %v3337_v55 = vperm.slane %v3323_v60, %v5720_v39 }
0x2799   :  { %v3344_v16 = vsel %vm2808_vm7, %v3337_v55, %v3343_v15 }
0x279e   :  { %v2910_v29 = vpop.permute.xlu0 %2909 }
0x279f   :  { %v2924_v56 = vperm.slane %v2910_v29, %v5720_v39 }
0x27a1   :  { %v2931_v51 = vsel %vm2811_vm8, %v2924_v56, %v2930_v11 }
0x27a2   :  { %v2932_v0 = vsel %vm2814_vm1, %v2925_v62, %v2931_v51 }
0x27a6   :  { %v2916_v21 = vpop.permute.xlu0 %2915 }
0x27a7   :  { %v2926_v26 = vperm.slane %v2916_v21, %v5720_v39 }
0x27a9   :  { %v2933_v45 = vsel %vm2817_vm2, %v2926_v26, %v2932_v0 }
0x27aa   :  { %v2936_v35 = vsel %vm2935_vm3, %v2933_v45, -inf }
0x27ab   :  { %2937 = vmax.xlane.f32.xlu0 %v2936_v35 }
0x27ae   :  { %v3326_v13 = vpop.permute.xlu0 %3325 }
0x27af   :  { %v3338_v1 = vperm.slane %v3326_v13, %v5720_v39 }
0x27b1   :  { %v3345_v58 = vsel %vm2811_vm8, %v3338_v1, %v3344_v16 }
0x27b2   :  { %v3346_v32 = vsel %vm2814_vm1, %v3339_v7, %v3345_v58 }
0x27b6   :  { %v3332_v54 = vpop.permute.xlu1 %3331 }
0x27b7   :  { %v3340_v34 = vperm.slane %v3332_v54, %v5720_v39 }
0x27b9   :  { %v3347_v38 = vsel %vm2817_vm2, %v3340_v34, %v3346_v32 }
0x27ba   :  { %v3349_v53 = vsel %vm2935_vm3, %v3347_v38, -inf }
0x27bb   :  { %3350 = vmax.xlane.f32.xlu2 %v3349_v53 }
0x281e   :  { %v5754_v10 = vpop.xlane.xlu0 %2937 }
0x281f   :  { %v2940_v27 = vperm.slane %v5754_v10, 0  ;;  %v2945_v63 = vperm.slane %v5754_v10, 5  ;;  %v2946_v41 = vperm.slane %v5754_v10, 6  ;;  %v2941_v25 = vperm.slane %v5754_v10, 1 }
0x2820   :  { %v2942_v22 = vperm.slane %v5754_v10, 2  ;;  %v2943_v4 = vperm.slane %v5754_v10, 3 }
0x2821   :  { %v2956_v57 = vsub.f32 %v5649_v24, %v2940_v27  ;;  %v2961_v2 = vsub.f32 %v5696_v23, %v2945_v63  ;;  %v2962_v31 = vsub.f32 %v5699_v28, %v2946_v41  ;;  %v2957_v19 = vsub.f32 %v5661_v33, %v2941_v25 }
0x2822   :  { %v2958_v24 = vsub.f32 %v5671_v30, %v2942_v22  ;;  %v2959_v35 = vsub.f32 %v5658_v44, %v2943_v4 }
0x2823   :  { %v2964_v9 = vmul.f32 1.442695, %v2956_v57  ;;  %v2974_v29 = vmul.f32 1.442695, %v2961_v2  ;;  %v2976_v49 = vmul.f32 1.442695, %v2962_v31 }
0x2824   :  { %v2966_v61 = vmul.f32 1.442695, %v2957_v19  ;;  %v2968_v51 = vmul.f32 1.442695, %v2958_v24  ;;  %v2970_v18 = vmul.f32 1.442695, %v2959_v35 }
0x2825   :  { %4290 = vpow2.f32 %v2964_v9 }
0x2826   :  { %4292 = vpow2.f32 %v2974_v29 }
0x2827   :  { %4294 = vpow2.f32 %v2976_v49 }
0x2828   :  { %4296 = vpow2.f32 %v2966_v61 }
0x2829   :  { %4298 = vpow2.f32 %v2968_v51 }
0x282b   :  { %v5765_v56 = vpop.eup %4290 }
0x282c   :  { %2989 = vperm.xlu1 %3998, %v5765_v56   ;;  %v5773_v12 = vpop.eup %4292 }
0x282d   :  { %v5775_v11 = vpop.eup %4294  ;;  %3004 = vperm.xlu2 %3997, %v5773_v12  }
0x282e   :  { %v5769_v23 = vpop.xlane.xlu2 %3350  ;;  %3007 = vperm.xlu0 %3996, %v5775_v11   ;;  %v5782_v21 = vpop.eup %4296 }
0x282f   :  { %v3355_v28 = vperm.slane %v5769_v23, 2  ;;  %v3356_v33 = vperm.slane %v5769_v23, 3  ;;  %v3358_v26 = vperm.slane %v5769_v23, 5  ;;  %v3359_v6 = vperm.slane %v5769_v23, 6  ;;  %v5791_v48 = vpop.eup %4298 }
0x2830   :  { %v3353_v16 = vperm.slane %v5769_v23, 0  ;;  %v3354_v54 = vperm.slane %v5769_v23, 1  ;;  %v3357_v38 = vperm.slane %v5769_v23, 4 }
0x2831   :  { %v3371_v62 = vsub.f32 %v5668_v20, %v3355_v28  ;;  %v3372_v30 = vsub.f32 %v5679_v5, %v3356_v33  ;;  %v3374_v50 = vsub.f32 %v5712_v52, %v3358_v26  ;;  %v3375_v20 = vsub.f32 %v5707_v42, %v3359_v6 }
0x2832   :  { %v2944_v5 = vperm.slane %v5754_v10, 4  ;;  %v2947_v42 = vperm.slane %v5754_v10, 7  ;;  %v3369_v7 = vsub.f32 %v5645_v43, %v3353_v16  ;;  %v3370_v32 = vsub.f32 %v5666_v17, %v3354_v54 }
0x2833   :  { %v3381_v0 = vmul.f32 1.442695, %v3371_v62  ;;  %v3383_v45 = vmul.f32 1.442695, %v3372_v30  ;;  %v3387_v60 = vmul.f32 1.442695, %v3374_v50  ;;  %v3373_v27 = vsub.f32 %v5686_v36, %v3357_v38 }
0x2834   :  { %2992 = vperm.xlu1 %3998, %v5782_v21   ;;  %v3389_v13 = vmul.f32 1.442695, %v3375_v20  ;;  %v2960_v44 = vsub.f32 %v5689_v8, %v2944_v5  ;;  %v2963_v8 = vsub.f32 %v5704_v46, %v2947_v42  ;;  %v3377_v46 = vmul.f32 1.442695, %v3369_v7 }
0x2835   :  { %4300 = vpow2.f32 %v3381_v0  ;;  %v3379_v53 = vmul.f32 1.442695, %v3370_v32  ;;  %v3360_v43 = vperm.slane %v5769_v23, 7  ;;  %v3385_v63 = vmul.f32 1.442695, %v3373_v27 }
0x2836   :  { %4302 = vpow2.f32 %v3383_v45  ;;  %v2972_v52 = vmul.f32 1.442695, %v2960_v44  ;;  %v2978_v15 = vmul.f32 1.442695, %v2963_v8 }
0x2837   :  { %4304 = vpow2.f32 %v2970_v18  ;;  %v3376_v17 = vsub.f32 %v5716_v59, %v3360_v43 }
0x2838   :  { %4306 = vpow2.f32 %v3387_v60 }
0x2839   :  { %4308 = vpow2.f32 %v3389_v13  ;;  %v3391_v25 = vmul.f32 1.442695, %v3376_v17 }
0x283a   :  { %4310 = vpow2.f32 %v2972_v52 }
0x283b   :  { %v5794_v3 = vpop.eup %4300  ;;  %4312 = vpow2.f32 %v2978_v15 }
0x283c   :  { %2995 = vperm.xlu1 %3998, %v5791_v48   ;;  %v5797_v55 = vpop.eup %4302  ;;  %3408 = vperm.xlu0 %3996, %v5794_v3   ;;  %4314 = vpow2.f32 %v3377_v46 }
0x283d   :  { %3411 = vperm.xlu2 %3997, %v5797_v55   ;;  %v5802_v37 = vpop.eup %4304  ;;  %4316 = vpow2.f32 %v3379_v53 }
0x283e   :  { %v5805_v1 = vpop.eup %4306  ;;  %4318 = vpow2.f32 %v3385_v63 }
0x283f   :  { %v5808_v14 = vpop.eup %4308  ;;  %4320 = vpow2.f32 %v3391_v25 }
0x2840   :  { %v5813_v58 = vpop.eup %4310 }
0x2841   :  { %v5818_v34 = vpop.eup %4312 }
0x2842   :  { %v5823_v10 = vpop.eup %4314 }
0x2843   :  { %v5828_v41 = vpop.eup %4316 }
0x2844   :  { %2998 = vperm.xlu1 %3998, %v5802_v37   ;;  %3417 = vperm.xlu0 %3996, %v5805_v1   ;;  %v5832_v57 = vpop.eup %4318 }
0x2845   :  { %3420 = vperm.xlu2 %3997, %v5808_v14   ;;  %v5835_v2 = vpop.eup %4320 }
0x284c   :  { %3001 = vperm.xlu1 %3998, %v5813_v58  }
0x2854   :  { %3010 = vperm.xlu1 %3998, %v5818_v34  }
0x285c   :  { %3402 = vperm.xlu1 %3998, %v5823_v10  }
0x2864   :  { %3405 = vperm.xlu1 %3998, %v5828_v41  }
0x286c   :  { %3414 = vperm.xlu1 %3998, %v5832_v57  }
0x2874   :  { %3423 = vperm.xlu1 %3998, %v5835_v2  }
0x2887   :  { %v3005_v28 = vpop.permute.xlu2 %3004 }
0x2888   :  { %v3017_v62 = vperm.slane %v3005_v28, %v5720_v39 }
0x2897   :  { %v3412_v44 = vpop.permute.xlu2 %3411 }
0x2898   :  { %v3428_v7 = vperm.slane %v3412_v44, %v5720_v39 }
0x289e   :  { %v2990_v36 = vpop.permute.xlu1 %2989 }
0x289f   :  { %v3012_v59 = vperm.slane %v2990_v36, %v5720_v39  ;;  %v3421_v53 = vpop.permute.xlu2 %3420 }
0x28a0   :  { %v3008_v30 = vpop.permute.xlu0 %3007  ;;  %v3431_v63 = vperm.slane %v3421_v53, %v5720_v39 }
0x28a1   :  { %v3018_v0 = vperm.slane %v3008_v30, %v5720_v39 }
0x28a6   :  { %v2993_v31 = vpop.permute.xlu1 %2992 }
0x28a7   :  { %v3013_v29 = vperm.slane %v2993_v31, %v5720_v39 }
0x28a9   :  { %v3020_v24 = vsel %vm2799_vm15, %v3013_v29, %v3012_v59 }
0x28ae   :  { %v2996_v9 = vpop.permute.xlu1 %2995  ;;  %v3409_v18 = vpop.permute.xlu0 %3408 }
0x28af   :  { %v3014_v49 = vperm.slane %v2996_v9, %v5720_v39  ;;  %v3427_v8 = vperm.slane %v3409_v18, %v5720_v39 }
0x28b1   :  { %v3021_v33 = vsel %vm2802_vm5, %v3014_v49, %v3020_v24 }
0x28b6   :  { %v2999_v19 = vpop.permute.xlu1 %2998  ;;  %v3418_v46 = vpop.permute.xlu0 %3417 }
0x28b7   :  { %v3015_v22 = vperm.slane %v2999_v19, %v5720_v39  ;;  %v3430_v27 = vperm.slane %v3418_v46, %v5720_v39 }
0x28b9   :  { %v3022_v4 = vsel %vm2805_vm6, %v3015_v22, %v3021_v33 }
0x28be   :  { %v3002_v61 = vpop.permute.xlu1 %3001 }
0x28bf   :  { %v3016_v23 = vperm.slane %v3002_v61, %v5720_v39 }
0x28c1   :  { %v3023_v51 = vsel %vm2808_vm7, %v3016_v23, %v3022_v4 }
0x28c2   :  { %v3024_v26 = vsel %vm2811_vm8, %v3017_v62, %v3023_v51 }
0x28c3   :  { %v3025_v35 = vsel %vm2814_vm1, %v3018_v0, %v3024_v26 }
0x28c6   :  { %v3011_v6 = vpop.permute.xlu1 %3010 }
0x28c7   :  { %v3019_v45 = vperm.slane %v3011_v6, %v5720_v39 }
0x28c9   :  { %v3026_v50 = vsel %vm2817_vm2, %v3019_v45, %v3025_v35 }
0x28ca   :  { %v3028_v20 = vsel %vm2935_vm3, %v3026_v50, 0.0 }
0x28cb   :  { %3029 = vadd.xlane.f32.xlu0 %v3028_v20 }
0x28ce   :  { %v3403_v5 = vpop.permute.xlu1 %3402 }
0x28cf   :  { %v3425_v42 = vperm.slane %v3403_v5, %v5720_v39 }
0x28d6   :  { %v3406_v60 = vpop.permute.xlu1 %3405 }
0x28d7   :  { %v3426_v13 = vperm.slane %v3406_v60, %v5720_v39 }
0x28d9   :  { %v3433_v52 = vsel %vm2799_vm15, %v3426_v13, %v3425_v42 }
0x28da   :  { %v3434_v15 = vsel %vm2802_vm5, %v3427_v8, %v3433_v52 }
0x28db   :  { %v3435_v32 = vsel %vm2805_vm6, %v3428_v7, %v3434_v15 }
0x28de   :  { %v3415_v16 = vpop.permute.xlu1 %3414 }
0x28df   :  { %v3429_v54 = vperm.slane %v3415_v16, %v5720_v39 }
0x28e1   :  { %v3436_v38 = vsel %vm2808_vm7, %v3429_v54, %v3435_v32 }
0x28e2   :  { %v3437_v43 = vsel %vm2811_vm8, %v3430_v27, %v3436_v38 }
0x28e3   :  { %v3438_v36 = vsel %vm2814_vm1, %v3431_v63, %v3437_v43 }
0x28e6   :  { %v3424_v17 = vpop.permute.xlu1 %3423 }
0x28e7   :  { %v3432_v25 = vperm.slane %v3424_v17, %v5720_v39 }
0x28e9   :  { %v3439_v31 = vsel %vm2817_vm2, %v3432_v25, %v3438_v36 }
0x28ea   :  { %v3441_v9 = vsel %vm2935_vm3, %v3439_v31, 0.0 }
0x28eb   :  { %3442 = vadd.xlane.f32.xlu2 %v3441_v9 }
0x293e   :  { %v3030_v19 = vpop.xlane.xlu0 %3029 }
0x293f   :  { %4322 = vrcp.f32 %v3030_v19 }
0x2945   :  { %v4323_v29 = vpop.eup %4322 }
0x2946   :  { %v3038_v49 = vperm.slane %v4323_v29, 5  ;;  %v3033_v59 = vperm.slane %v4323_v29, 0  ;;  %v3039_v22 = vperm.slane %v4323_v29, 6  ;;  %v3034_v51 = vperm.slane %v4323_v29, 1 }
0x2947   :  { %v3036_v26 = vperm.slane %v4323_v29, 3  ;;  %v3037_v45 = vperm.slane %v4323_v29, 4  ;;  %v3040_v60 = vperm.slane %v4323_v29, 7 }
0x2948   :  { %v3054_v61 = vmul.f32 %v5773_v12, %v3038_v49  ;;  %v3049_v24 = vmul.f32 %v5765_v56, %v3033_v59  ;;  %v3055_v23 = vmul.f32 %v5775_v11, %v3039_v22  ;;  %v3050_v56 = vmul.f32 %v5782_v21, %v3034_v51 }
0x2949   :  { %v3035_v11 = vperm.slane %v4323_v29, 2  ;;  %v3052_v6 = vmul.f32 %v5802_v37, %v3036_v26  ;;  %v3053_v50 = vmul.f32 %v5813_v58, %v3037_v45 }
0x294a   :  { %v5874_v28 = vmul.f32 %v3054_v61, %v5637_v40  ;;  %v5877_v33 = vmul.f32 %v3049_v24, %v5637_v40  ;;  %v5880_v4 = vmul.f32 %v3055_v23, %v5637_v40  ;;  %v5887_v12 = vmul.f32 %v3050_v56, %v5637_v40 }
0x294b   :  { %v3051_v62 = vmul.f32 %v5791_v48, %v3035_v11  ;;  %v5897_v21 = vmul.f32 %v3052_v6, %v5637_v40  ;;  %v5904_v13 = vmul.f32 %v3053_v50, %v5637_v40 }
0x294c   :  { %3089 = vperm.xlu0 %3996, %v5874_v28   ;;  %3074 = vperm.xlu1 %3998, %v5877_v33  }
0x294d   :  { %3092 = vperm.xlu2 %3997, %v5880_v4   ;;  %v5892_v30 = vmul.f32 %v3051_v62, %v5637_v40 }
0x2954   :  { %3077 = vperm.xlu1 %3998, %v5887_v12  }
0x295c   :  { %3080 = vperm.xlu1 %3998, %v5892_v30  }
0x295e   :  { %v3443_v0 = vpop.xlane.xlu2 %3442 }
0x295f   :  { %4324 = vrcp.f32 %v3443_v0 }
0x2964   :  { %3083 = vperm.xlu1 %3998, %v5897_v21  }
0x2965   :  { %v4325_v35 = vpop.eup %4324 }
0x2966   :  { %v3449_v48 = vperm.slane %v4325_v35, 3  ;;  %v3447_v20 = vperm.slane %v4325_v35, 1  ;;  %v3452_v42 = vperm.slane %v4325_v35, 6  ;;  %v3450_v52 = vperm.slane %v4325_v35, 4 }
0x2967   :  { %v3446_v16 = vperm.slane %v4325_v35, 0  ;;  %v3453_v54 = vperm.slane %v4325_v35, 7  ;;  %v3451_v53 = vperm.slane %v4325_v35, 5 }
0x2968   :  { %v3465_v5 = vmul.f32 %v5797_v55, %v3449_v48  ;;  %v3463_v18 = vmul.f32 %v5828_v41, %v3447_v20  ;;  %v3056_v55 = vmul.f32 %v5818_v34, %v3040_v60  ;;  %v3468_v58 = vmul.f32 %v5808_v14, %v3452_v42 }
0x2969   :  { %v3466_v41 = vmul.f32 %v5832_v57, %v3450_v52  ;;  %v3462_v14 = vmul.f32 %v5823_v10, %v3446_v16  ;;  %v3469_v34 = vmul.f32 %v5835_v2, %v3453_v54  ;;  %v3448_v57 = vperm.slane %v4325_v35, 2 }
0x296a   :  { %v5907_v37 = vmul.f32 %v3465_v5, %v5635_v47  ;;  %v5910_v44 = vmul.f32 %v3463_v18, %v5635_v47  ;;  %v5919_v8 = vmul.f32 %v3056_v55, %v5637_v40  ;;  %v5922_v15 = vmul.f32 %v3468_v58, %v5635_v47 }
0x296b   :  { %v5925_v7 = vmul.f32 %v3466_v41, %v5635_v47  ;;  %v5933_v40 = vmul.f32 %v3462_v14, %v5635_v47  ;;  %v5936_v46 = vmul.f32 %v3469_v34, %v5635_v47  ;;  %v3464_v32 = vmul.f32 %v5794_v3, %v3448_v57 }
0x296c   :  { %3086 = vperm.xlu1 %3998, %v5904_v13   ;;  %3496 = vperm.xlu2 %3997, %v5907_v37   ;;  %v3467_v10 = vmul.f32 %v5805_v1, %v3451_v53 }
0x296d   :  { %3490 = vperm.xlu0 %3996, %v5910_v44   ;;  %v5942_v38 = vmul.f32 %v3464_v32, %v5635_v47 }
0x296e   :  { %v5947_v2 = vmul.f32 %v3467_v10, %v5635_v47 }
0x2974   :  { %3095 = vperm.xlu1 %3998, %v5919_v8   ;;  %3505 = vperm.xlu2 %3997, %v5922_v15  }
0x2975   :  { %3499 = vperm.xlu0 %3996, %v5925_v7  }
0x297c   :  { %3487 = vperm.xlu1 %3998, %v5933_v40  }
0x297d   :  { %3508 = vperm.xlu0 %3996, %v5936_v46  }
0x2984   :  { %3493 = vperm.xlu1 %3998, %v5942_v38  }
0x298c   :  { %3502 = vperm.xlu1 %3998, %v5947_v2  }
0x29a7   :  { %v3093_v22 = vpop.permute.xlu2 %3092 }
0x29a8   :  { %v3103_v23 = vperm.slane %v3093_v22, %v5720_v39 }
0x29be   :  { %v3075_v27 = vpop.permute.xlu1 %3074  ;;  %v3090_v19 = vpop.permute.xlu0 %3089 }
0x29bf   :  { %v3097_v36 = vperm.slane %v3075_v27, %v5720_v39  ;;  %v3102_v61 = vperm.slane %v3090_v19, %v5720_v39 }
0x29c6   :  { %v3078_v43 = vpop.permute.xlu1 %3077  ;;  %v3497_v45 = vpop.permute.xlu2 %3496 }
0x29c7   :  { %v3098_v25 = vperm.slane %v3078_v43, %v5720_v39  ;;  %v3513_v42 = vperm.slane %v3497_v45, %v5720_v39 }
0x29c9   :  { %v3105_v1 = vsel %vm2799_vm15, %v3098_v25, %v3097_v36 }
0x29ce   :  { %v3081_v63 = vpop.permute.xlu1 %3080  ;;  %v3506_v52 = vpop.permute.xlu2 %3505 }
0x29cf   :  { %v3099_v3 = vperm.slane %v3081_v63, %v5720_v39  ;;  %v3516_v14 = vperm.slane %v3506_v52, %v5720_v39 }
0x29d1   :  { %v3106_v29 = vsel %vm2802_vm5, %v3099_v3, %v3105_v1 }
0x29d6   :  { %v3084_v17 = vpop.permute.xlu1 %3083 }
0x29d7   :  { %v3100_v31 = vperm.slane %v3084_v17, %v5720_v39 }
0x29d9   :  { %v3107_v49 = vsel %vm2805_vm6, %v3100_v31, %v3106_v29 }
0x29de   :  { %v3087_v9 = vpop.permute.xlu1 %3086 }
0x29df   :  { %v3101_v47 = vperm.slane %v3087_v9, %v5720_v39  ;;  %v3491_v26 = vpop.permute.xlu0 %3490 }
0x29e0   :  { %v3511_v20 = vperm.slane %v3491_v26, %v5720_v39 }
0x29e1   :  { %v3108_v59 = vsel %vm2808_vm7, %v3101_v47, %v3107_v49 }
0x29e2   :  { %v3109_v24 = vsel %vm2811_vm8, %v3102_v61, %v3108_v59 }
0x29e3   :  { %v3110_v11 = vsel %vm2814_vm1, %v3103_v23, %v3109_v24 }
0x29e6   :  { %v3096_v51 = vpop.permute.xlu1 %3095 }
0x29e7   :  { %v3104_v56 = vperm.slane %v3096_v51, %v5720_v39  ;;  %v3500_v35 = vpop.permute.xlu0 %3499 }
0x29e8   :  { %v3514_v58 = vperm.slane %v3500_v35, %v5720_v39 }
0x29e9   :  { %v3111_v62 = vsel %vm2817_vm2, %v3104_v56, %v3110_v11 }
0x29ea   :  { %v3113_v0 = vsel %vm2935_vm3, %v3111_v62, 0.0 }
0x29eb   :  { %3114 = vadd.xlane.f32.xlu1 %v3113_v0 }
0x29ee   :  { %v3488_v6 = vpop.permute.xlu1 %3487 }
0x29ef   :  { %v3510_v50 = vperm.slane %v3488_v6, %v5720_v39  ;;  %v3509_v41 = vpop.permute.xlu0 %3508 }
0x29f0   :  { %v3517_v57 = vperm.slane %v3509_v41, %v5720_v39 }
0x29f1   :  { %v3518_v18 = vsel %vm2799_vm15, %v3511_v20, %v3510_v50 }
0x29f6   :  { %v3494_v48 = vpop.permute.xlu1 %3493 }
0x29f7   :  { %v3512_v5 = vperm.slane %v3494_v48, %v5720_v39 }
0x29f9   :  { %v3519_v60 = vsel %vm2802_vm5, %v3512_v5, %v3518_v18 }
0x29fa   :  { %v3520_v55 = vsel %vm2805_vm6, %v3513_v42, %v3519_v60 }
0x29fb   :  { %v3521_v34 = vsel %vm2808_vm7, %v3514_v58, %v3520_v55 }
0x29fe   :  { %v3503_v16 = vpop.permute.xlu1 %3502 }
0x29ff   :  { %v3515_v54 = vperm.slane %v3503_v16, %v5720_v39 }
0x2a01   :  { %v3522_v32 = vsel %vm2811_vm8, %v3515_v54, %v3521_v34 }
0x2a02   :  { %v3523_v53 = vsel %vm2814_vm1, %v3516_v14, %v3522_v32 }
0x2a03   :  { %v3524_v10 = vsel %vm2817_vm2, %v3517_v57, %v3523_v53 }
0x2a04   :  { %v3526_v27 = vsel %vm2935_vm3, %v3524_v10, 0.0 }
0x2a05   :  { %3527 = vadd.xlane.f32.xlu2 %v3526_v27 }
0x2a5e   :  { %v3115_v43 = vpop.xlane.xlu1 %3114 }
0x2a5f   :  { %vm3116_vm4 = vcmp.gt.f32.partialorder %v3115_v43, 0.0 }
0x2a60   :  { %v3117_v63 = vsel %vm3116_vm4, %v3115_v43, 1.0 }
0x2a61   :  { %4326 = vrcp.f32 %v3117_v63 }
0x2a67   :  { %v4327_v17 = vpop.eup %4326 }
0x2a68   :  { %v3126_v25 = vperm.slane %v4327_v17, 6  ;;  %v3125_v3 = vperm.slane %v4327_v17, 5  ;;  %v3120_v36 = vperm.slane %v4327_v17, 0  ;;  %v3121_v47 = vperm.slane %v4327_v17, 1 }
0x2a69   :  { %v3122_v29 = vperm.slane %v4327_v17, 2 }
0x2a6a   :  { %v3142_v31 = vmul.f32 %v3126_v25, %v5880_v4  ;;  %v3141_v9 = vmul.f32 %v3125_v3, %v5874_v28  ;;  %v3136_v1 = vmul.f32 %v3120_v36, %v5877_v33  ;;  %v3137_v19 = vmul.f32 %v3121_v47, %v5887_v12 }
0x2a6b   :  { %v3138_v22 = vmul.f32 %v3122_v29, %v5892_v30  ;;  %v3123_v4 = vperm.slane %v4327_v17, 3  ;;  %v3124_v12 = vperm.slane %v4327_v17, 4 }
0x2a6c   :  { %3171 = vperm.xlu2 %3997, %v3142_v31   ;;  %3168 = vperm.xlu1 %3998, %v3141_v9  }
0x2a6d   :  { %3153 = vperm.xlu0 %3996, %v3136_v1   ;;  %v3139_v33 = vmul.f32 %v3123_v4, %v5897_v21  ;;  %v3140_v62 = vmul.f32 %v3124_v12, %v5904_v13  ;;  %v3127_v21 = vperm.slane %v4327_v17, 7 }
0x2a75   :  { %3156 = vperm.xlu0 %3996, %v3137_v19  }
0x2a78   :  { %v3528_v49 = vpop.xlane.xlu2 %3527 }
0x2a79   :  { %vm3529_vm9 = vcmp.gt.f32.partialorder %v3528_v49, 0.0 }
0x2a7a   :  { %v3530_v59 = vsel %vm3529_vm9, %v3528_v49, 1.0 }
0x2a7b   :  { %4328 = vrcp.f32 %v3530_v59 }
0x2a7d   :  { %3159 = vperm.xlu0 %3996, %v3138_v22  }
0x2a81   :  { %v4329_v61 = vpop.eup %4328 }
0x2a82   :  { %v3536_v28 = vperm.slane %v4329_v61, 3  ;;  %v3535_v24 = vperm.slane %v4329_v61, 2  ;;  %v3539_v56 = vperm.slane %v4329_v61, 6  ;;  %v3538_v11 = vperm.slane %v4329_v61, 5 }
0x2a83   :  { %v3534_v6 = vperm.slane %v4329_v61, 1  ;;  %v3537_v13 = vperm.slane %v4329_v61, 4 }
0x2a84   :  { %v3552_v23 = vmul.f32 %v3536_v28, %v5907_v37  ;;  %v3551_v51 = vmul.f32 %v3535_v24, %v5942_v38  ;;  %v3555_v30 = vmul.f32 %v3539_v56, %v5922_v15  ;;  %v3554_v26 = vmul.f32 %v3538_v11, %v5947_v2 }
0x2a85   :  { %3162 = vperm.xlu0 %3996, %v3139_v33   ;;  %v3143_v37 = vmul.f32 %v3127_v21, %v5919_v8  ;;  %v3533_v38 = vperm.slane %v4329_v61, 0  ;;  %v3550_v45 = vmul.f32 %v3534_v6, %v5910_v44  ;;  %v3553_v15 = vmul.f32 %v3537_v13, %v5925_v7  ;;  %v3710_v6 = vld [vmem:[%s6156_s10 + $0x18] sm:$0xff]  ;;  %v3708_v13 = vld [vmem:[%s6156_s10 + $0x8] sm:$0xff] }
0x2a86   :  { %3575 = vperm.xlu2 %3997, %v3552_v23   ;;  %3572 = vperm.xlu1 %3998, %v3551_v51   ;;  %v3540_v2 = vperm.slane %v4329_v61, 7 }
0x2a87   :  { %v3549_v0 = vmul.f32 %v3533_v38, %v5933_v40  ;;  %v3713_v38 = vld [vmem:[%s6156_s10 + $0x30] sm:$0xff] }
0x2a88   :  { %v3556_v35 = vmul.f32 %v3540_v2, %v5936_v46 }
0x2a8d   :  { %3165 = vperm.xlu0 %3996, %v3140_v62  }
0x2a8e   :  { %3584 = vperm.xlu2 %3997, %v3555_v30   ;;  %3581 = vperm.xlu1 %3998, %v3554_v26  }
0x2a95   :  { %3174 = vperm.xlu0 %3996, %v3143_v37   ;;  %v3714_v37 = vld [vmem:[%s6156_s10 + $0x38] sm:$0xff] }
0x2a96   :  { %3756 = vmatpush.msrb.mxu2 %v3714_v37 }
0x2a98   :  { %3757 = vmatpush.msrb.mxu2 %v3713_v38 }
0x2a9d   :  { %3566 = vperm.xlu0 %3996, %v3549_v0   ;;  %v3711_v0 = vld [vmem:[%s6156_s10 + $0x20] sm:$0xff] }
0x2aa5   :  { %3569 = vperm.xlu0 %3996, %v3550_v45   ;;  %v3709_v45 = vld [vmem:[%s6156_s10 + $0x10] sm:$0xff] }
0x2aad   :  { %3578 = vperm.xlu0 %3996, %v3553_v15   ;;  %v3707_v15 = vld [vmem:[%s6156_s10] sm:$0xff] }
0x2ab5   :  { %3587 = vperm.xlu0 %3996, %v3556_v35   ;;  %v3776_v35 = vld [vmem:[%s6158_s12 + $0x18] sm:$0xff] }
0x2ab6   :  { %3799 = vmatpush.msrb.mxu3 %v3776_v35 }
0x2ac6   :  { %v3172_v50 = vpop.permute.xlu2 %3171 }
0x2ac7   :  { %v3182_v40 = vperm.slane %v3172_v50, %v5720_v39  ;;  %v3775_v50 = vld [vmem:[%s6158_s12 + $0x10] sm:$0xff] }
0x2ac8   :  { %3800 = vmatpush.msrb.mxu3 %v3775_v50 }
0x2ade   :  { %v3169_v60 = vpop.permute.xlu1 %3168 }
0x2adf   :  { %v3154_v48 = vpop.permute.xlu0 %3153  ;;  %v3181_v27 = vperm.slane %v3169_v60, %v5720_v39 }
0x2ae0   :  { %v3576_v8 = vpop.permute.xlu2 %3575  ;;  %v3176_v34 = vperm.slane %v3154_v48, %v5720_v39 }
0x2ae1   :  { %v3592_v46 = vperm.slane %v3576_v8, %v5720_v39 }
0x2ae7   :  { %v3157_v20 = vpop.permute.xlu0 %3156 }
0x2ae8   :  { %v3585_v5 = vpop.permute.xlu2 %3584  ;;  %v3177_v14 = vperm.slane %v3157_v20, %v5720_v39 }
0x2ae9   :  { %v3595_v44 = vperm.slane %v3585_v5, %v5720_v39 }
0x2aea   :  { %v3184_v32 = vsel %vm2799_vm15, %v3177_v14, %v3176_v34 }
0x2aeb   :  { %v3649_v18 = vsel %vm3642_vm10, %v3182_v40, %v3595_v44 }
0x2aec   :  { %3658 = vst.msk [vmem:[#allocation10 + $0xc] sm:$0x3] %vm3651_vm11, %v3649_v18 }
0x2aef   :  { %v3160_v7 = vpop.permute.xlu0 %3159 }
0x2af0   :  { %v3178_v58 = vperm.slane %v3160_v7, %v5720_v39 }
0x2af2   :  { %v3185_v43 = vsel %vm2802_vm5, %v3178_v58, %v3184_v32 }
0x2af7   :  { %v3163_v42 = vpop.permute.xlu0 %3162 }
0x2af8   :  { %v3179_v52 = vperm.slane %v3163_v42, %v5720_v39  ;;  %v3573_v55 = vpop.permute.xlu1 %3572 }
0x2af9   :  { %v3591_v41 = vperm.slane %v3573_v55, %v5720_v39 }
0x2afa   :  { %v3646_v16 = vsel %vm3642_vm10, %v3179_v52, %v3592_v46  ;;  %v3186_v17 = vsel %vm2805_vm6, %v3179_v52, %v3185_v43 }
0x2afb   :  { %3655 = vst.msk [vmem:[#allocation10 + $0x6] sm:$0x3] %vm3651_vm11, %v3646_v16  ;;  %v3645_v54 = vsel %vm3642_vm10, %v3178_v58, %v3591_v41 }
0x2afc   :  { %3654 = vst.msk [vmem:[#allocation10 + $0x4] sm:$0x3] %vm3651_vm11, %v3645_v54 }
0x2aff   :  { %v3166_v57 = vpop.permute.xlu0 %3165 }
0x2b00   :  { %v3180_v53 = vperm.slane %v3166_v57, %v5720_v39  ;;  %v3582_v10 = vpop.permute.xlu1 %3581 }
0x2b01   :  { %v3594_v63 = vperm.slane %v3582_v10, %v5720_v39 }
0x2b02   :  { %v3187_v25 = vsel %vm2808_vm7, %v3180_v53, %v3186_v17 }
0x2b03   :  { %v3648_v3 = vsel %vm3642_vm10, %v3181_v27, %v3594_v63  ;;  %v3188_v36 = vsel %vm2811_vm8, %v3181_v27, %v3187_v25 }
0x2b04   :  { %3657 = vst.msk [vmem:[#allocation10 + $0xa] sm:$0x3] %vm3651_vm11, %v3648_v3  ;;  %v3189_v1 = vsel %vm2814_vm1, %v3182_v40, %v3188_v36 }
0x2b07   :  { %v3175_v31 = vpop.permute.xlu0 %3174 }
0x2b08   :  { %v3183_v9 = vperm.slane %v3175_v31, %v5720_v39 }
0x2b0a   :  { %v3190_v47 = vsel %vm2817_vm2, %v3183_v9, %v3189_v1 }
0x2b0b   :  { %3973 = vmatmul.msk.f32.vlgmr.msrb.gmra.mxu1 %vm2935_vm3, %v3190_v47  ;;  %v3774_v47 = vld [vmem:[%s6158_s12 + $0x8] sm:$0xff] }
0x2b0c   :  { %3801 = vmatpush.msrb.mxu3 %v3774_v47 }
0x2b0f   :  { %v3567_v19 = vpop.permute.xlu0 %3566 }
0x2b10   :  { %v3589_v29 = vperm.slane %v3567_v19, %v5720_v39  ;;  %v3773_v19 = vld [vmem:[%s6158_s12] sm:$0xff] }
0x2b11   :  { %3802 = vmatpush.msrb.mxu3 %v3773_v19 }
0x2b12   :  { %v3643_v49 = vsel %vm3642_vm10, %v3176_v34, %v3589_v29 }
0x2b13   :  { %3652 = vst.msk [vmem:[#allocation10] sm:$0x3] %vm3651_vm11, %v3643_v49 }
0x2b17   :  { %v3570_v59 = vpop.permute.xlu0 %3569 }
0x2b18   :  { %v3590_v22 = vperm.slane %v3570_v59, %v5720_v39 }
0x2b1a   :  { %v3644_v4 = vsel %vm3642_vm10, %v3177_v14, %v3590_v22  ;;  %v3597_v61 = vsel %vm2799_vm15, %v3590_v22, %v3589_v29  ;;  %v4000_v29 = vld [vmem:[%s6157_s11] ss:$0 sm:$0xff]  ;;  %s4504_s11 = smov [#allocation10]  }
0x2b1b   :  { %3653 = vst.msk [vmem:[#allocation10 + $0x2] sm:$0x3] %vm3651_vm11, %v3644_v4  ;;  %v3598_v28 = vsel %vm2802_vm5, %v3591_v41, %v3597_v61  ;;  %s3866_s12 = sshll.u32 %s4504_s11, 4  ;;  %s3867_s12 = int_to_ptr.vmem [resolvable:$true] %s3866_s12 }
0x2b1c   :  { %v3599_v23 = vsel %vm2805_vm6, %v3592_v46, %v3598_v28 }
0x2b1f   :  { %v3579_v24 = vpop.permute.xlu0 %3578 }
0x2b20   :  { %v3593_v33 = vperm.slane %v3579_v24, %v5720_v39  ;;  %v4001_v24 = vld [vmem:[%s6159_s13] ss:$0 sm:$0xff] }
0x2b22   :  { %v3647_v51 = vsel %vm3642_vm10, %v3180_v53, %v3593_v33  ;;  %v3600_v12 = vsel %vm2808_vm7, %v3593_v33, %v3599_v23 }
0x2b23   :  { %3656 = vst.msk [vmem:[#allocation10 + $0x8] sm:$0x3] %vm3651_vm11, %v3647_v51  ;;  %v3601_v56 = vsel %vm2811_vm8, %v3594_v63, %v3600_v12 }
0x2b24   :  { %v3602_v30 = vsel %vm2814_vm1, %v3595_v44, %v3601_v56 }
0x2b27   :  { %v3588_v11 = vpop.permute.xlu0 %3587 }
0x2b28   :  { %v3596_v62 = vperm.slane %v3588_v11, %v5720_v39  ;;  %v3712_v39 = vld [vmem:[%s6156_s10 + $0x28] sm:$0xff] }
0x2b29   :  { %3758 = vmatpush.msrb.mxu2 %v3712_v39 }
0x2b2a   :  { %v3603_v26 = vsel %vm2817_vm2, %v3596_v62, %v3602_v30  ;;  %v3650_v21 = vsel %vm3642_vm10, %v3183_v9, %v3596_v62 }
0x2b2b   :  { %3659 = vst.msk [vmem:[#allocation10 + $0xe] sm:$0x3] %vm3651_vm11, %v3650_v21  ;;  %3974 = vmatmul.msk.f32.vlgmr.msra.gmra.mxu1 %vm2935_vm3, %v3603_v26  ;;  %3759 = vmatpush.msrb.mxu2 %v3711_v0 }
0x2b2c   :  { %3874 = dma.vmem_to_hbm [thread:$0]  %s3867_s12, 256, %s3869_s0, [#allocation4], %s4502_s4, %s4502_s4, %s4506_s2  }
0x2b2d   :  { %3760 = vmatpush.msrb.mxu2 %v3710_v6 }
0x2b2f   :  { %3761 = vmatpush.msrb.mxu2 %v3709_v45 }
0x2b31   :  { %3762 = vmatpush.msrb.mxu2 %v3708_v13 }
0x2b33   :  { %3763 = vmatpush.msrb.mxu2 %v3707_v15 }
0x2b88   :  { %v3210_v2 = vpop.f32.mrf.mxu1 }
0x2b89   :  { %v3661_v48 = vrot.slane %v3210_v2, 1  ;;  %v3662_v8 = vrot.slane %v3210_v2, 2  ;;  %v3663_v20 = vrot.slane %v3210_v2, 3  ;;  %v3664_v5 = vrot.slane %v3210_v2, 4 }
0x2b8a   :  { %v3665_v14 = vrot.slane %v3210_v2, 5  ;;  %v3666_v63 = vrot.slane %v3210_v2, 6  ;;  %v3667_v25 = vrot.slane %v3210_v2, 7 }
0x2ba8   :  { %v3623_v40 = vpop.f32.mrf.mxu1 }
0x2ba9   :  { %v3676_v44 = vrot.slane %v3623_v40, 1  ;;  %v3677_v18 = vrot.slane %v3623_v40, 2  ;;  %v3678_v7 = vrot.slane %v3623_v40, 3  ;;  %v3679_v60 = vrot.slane %v3623_v40, 4 }
0x2baa   :  { %v3680_v42 = vrot.slane %v3623_v40, 5  ;;  %v3681_v46 = vrot.slane %v3623_v40, 6  ;;  %v3682_v52 = vrot.slane %v3623_v40, 7  ;;  %v3683_v55 = vperm.slane %v3623_v40, 0 }
0x2bab   :  { %v3684_v58 = vperm.slane %v3676_v44, 0  ;;  %v3685_v41 = vperm.slane %v3677_v18, 0  ;;  %v3686_v16 = vperm.slane %v3678_v7, 0  ;;  %v3687_v54 = vperm.slane %v3679_v60, 0 }
0x2bac   :  { %v3688_v34 = vperm.slane %v3680_v42, 0  ;;  %v3689_v57 = vperm.slane %v3681_v46, 0  ;;  %v3699_v32 = vsel %vm3642_vm10, %v3210_v2, %v3683_v55  ;;  %v3690_v53 = vperm.slane %v3682_v52, 0 }
0x2bad   :  { %v3700_v10 = vsel %vm3642_vm10, %v3661_v48, %v3684_v58  ;;  %v3701_v27 = vsel %vm3642_vm10, %v3662_v8, %v3685_v41  ;;  %v3702_v43 = vsel %vm3642_vm10, %v3663_v20, %v3686_v16  ;;  %3727 = vst [vmem:[#allocation1] ss:$4 sm:$0xff] %v3699_v32  ;;  %v3703_v17 = vsel %vm3642_vm10, %v3664_v5, %v3687_v54 }
0x2bae   :  { %3729 = vst [vmem:[#allocation1 + $0x1] ss:$4 sm:$0xff] %v3700_v10  ;;  %v3704_v3 = vsel %vm3642_vm10, %v3665_v14, %v3688_v34  ;;  %v3705_v36 = vsel %vm3642_vm10, %v3666_v63, %v3689_v57  ;;  %v3706_v31 = vsel %vm3642_vm10, %v3667_v25, %v3690_v53 }
0x2baf   :  { %3731 = vst [vmem:[#allocation1 + $0x2] ss:$4 sm:$0xff] %v3701_v27 }
0x2bb0   :  { %3733 = vst [vmem:[#allocation1 + $0x3] ss:$4 sm:$0xff] %v3702_v43 }
0x2bb1   :  { %3735 = vst [vmem:[#allocation1 + $0x20] ss:$4 sm:$0xff] %v3703_v17 }
0x2bb2   :  { %3737 = vst [vmem:[#allocation1 + $0x21] ss:$4 sm:$0xff] %v3704_v3 }
0x2bb3   :  { %3739 = vst [vmem:[#allocation1 + $0x22] ss:$4 sm:$0xff] %v3705_v36 }
0x2bb4   :  { %3741 = vst [vmem:[#allocation1 + $0x23] ss:$4 sm:$0xff] %v3706_v31 }
0x2bb7   :  { %v3742_v9 = vld.sshfl [vmem:[#allocation1] sm:$0xff pattern:$0x73625140] }
0x2bb8   :  { %3975 = vmatmul.msk.f32.vlgmr.msrb.gmra.mxu2 %vm261_vm13, %v3742_v9 }
0x2bbb   :  { %v3743_v1 = vld.sshfl [vmem:[#allocation1 + $0x20] sm:$0xff pattern:$0x73625140] }
0x2bc0   :  { %3976 = vmatmul.msk.f32.gmra.mxu2 %vm261_vm13, %v3743_v1  ;;  %vm3810_vm13 = vcmask 56320  }
0x2c3b   :  { %v3765_v49 = vpop.f32.mrf.mxu2 }
0x2c3c   :  { %v3766_v59 = vadd.f32 %v4000_v29, %v3765_v49 }
0x2c3e   :  { %v3771_v22 = vmax.f32 %v3766_v59, 0.0 }
0x2c40   :  { %3977 = vmatmul.msk.f32.vlgmr.msrb.gmra.mxu3 %vm162_vm0, %v3771_v22 }
0x2c43   :  { %v3768_v4 = vpop.f32.mrf.mxu2 }
0x2c44   :  { %v3769_v61 = vadd.f32 %v4000_v29, %v3768_v4 }
0x2c46   :  { %v3772_v28 = vmax.f32 %v3769_v61, 0.0 }
0x2c48   :  { %3978 = vmatmul.msk.f32.gmra.mxu3 %vm162_vm0, %v3772_v28  ;;  %vm3851_vm0 = vcmask 50176  }
0x2cc3   :  { %v3804_v33 = vpop.f32.mrf.mxu3 }
0x2cc4   :  { %v3805_v23 = vadd.f32 %v4001_v24, %v3804_v33 }
0x2cc6   :  { %v3811_v51 = vsel %vm3810_vm13, %v3805_v23, -inf }
0x2cc7   :  { %3812 = vmax.xlane.f32.xlu1 %v3811_v51 }
0x2ccb   :  { %v3807_v12 = vpop.f32.mrf.mxu3 }
0x2ccc   :  { %v3808_v56 = vadd.f32 %v4001_v24, %v3807_v12 }
0x2cce   :  { %v3814_v11 = vsel %vm3810_vm13, %v3808_v56, -inf }
0x2ccf   :  { %3815 = vmax.xlane.f32.xlu2 %v3814_v11 }
0x2d3a   :  { %v3813_v62 = vpop.xlane.xlu1 %3812 }
0x2d3b   :  { %v3817_v30 = vsub.f32 %v3805_v23, %v3813_v62 }
0x2d3d   :  { %v3819_v26 = vmul.f32 1.442695, %v3817_v30 }
0x2d3f   :  { %4330 = vpow2.f32 %v3819_v26 }
0x2d42   :  { %v3816_v21 = vpop.xlane.xlu2 %3815 }
0x2d43   :  { %v3818_v37 = vsub.f32 %v3808_v56, %v3816_v21 }
0x2d45   :  { %v4331_v38 = vpop.eup %4330  ;;  %v3821_v39 = vmul.f32 1.442695, %v3818_v37 }
0x2d46   :  { %v3823_v0 = vsel %vm3810_vm13, %v4331_v38, 0.0 }
0x2d47   :  { %4332 = vpow2.f32 %v3821_v39  ;;  %3824 = vadd.xlane.f32.xlu0 %v3823_v0 }
0x2d4d   :  { %v4333_v6 = vpop.eup %4332 }
0x2d4e   :  { %v3826_v45 = vsel %vm3810_vm13, %v4333_v6, 0.0 }
0x2d4f   :  { %3827 = vadd.xlane.f32.xlu1 %v3826_v45 }
0x2dba   :  { %v3825_v13 = vpop.xlane.xlu0 %3824 }
0x2dbb   :  { %4334 = vlog2.f32 %v3825_v13 }
0x2dc1   :  { %v4335_v15 = vpop.eup %4334 }
0x2dc2   :  { %v3830_v2 = vmul.f32 0.6931472, %v4335_v15  ;;  %v3828_v35 = vpop.xlane.xlu1 %3827 }
0x2dc3   :  { %4336 = vlog2.f32 %v3828_v35 }
0x2dc4   :  { %v3833_v50 = vadd.f32 %v3830_v2, %v3813_v62 }
0x2dc6   :  { %v3835_v48 = vsub.f32 %v3805_v23, %v3833_v50 }
0x2dc8   :  { %v3839_v8 = vrot.slane %v3835_v48, 2  ;;  %v3840_v20 = vrot.slane %v3835_v48, 4  ;;  %v3841_v5 = vrot.slane %v3835_v48, 6  ;;  %3852 = vst.msk [vmem:[%s6160_s14] sm:$0x3] %vm3851_vm0, %v3835_v48 }
0x2dc9   :  { %v4337_v40 = vpop.eup %4336 }
0x2dca   :  { %3853 = vst.msk [vmem:[%s6160_s14 + $0x2] sm:$0x3] %vm3851_vm0, %v3839_v8  ;;  %v3832_v44 = vmul.f32 0.6931472, %v4337_v40 }
0x2dcb   :  { %3854 = vst.msk [vmem:[%s6160_s14 + $0x4] sm:$0x3] %vm3851_vm0, %v3840_v20 }
0x2dcc   :  { %3855 = vst.msk [vmem:[%s6160_s14 + $0x6] sm:$0x3] %vm3851_vm0, %v3841_v5  ;;  %v3834_v18 = vadd.f32 %v3832_v44, %v3816_v21 }
0x2dce   :  { %v3836_v7 = vsub.f32 %v3808_v56, %v3834_v18 }
0x2dd0   :  { %v3842_v60 = vrot.slane %v3836_v7, 2  ;;  %v3843_v42 = vrot.slane %v3836_v7, 4  ;;  %v3844_v46 = vrot.slane %v3836_v7, 6  ;;  %3856 = vst.msk [vmem:[%s6160_s14 + $0x8] sm:$0x3] %vm3851_vm0, %v3836_v7 }
0x2dd2   :  { %3857 = vst.msk [vmem:[%s6160_s14 + $0xa] sm:$0x3] %vm3851_vm0, %v3842_v60 }
0x2dd3   :  { %3858 = vst.msk [vmem:[%s6160_s14 + $0xc] sm:$0x3] %vm3851_vm0, %v3843_v42 }
0x2dd4   :  { %3859 = vst.msk [vmem:[%s6160_s14 + $0xe] sm:$0x3] %vm3851_vm0, %v3844_v46 }
0x2dd5   :  { %4488 = dma.done.wait [#allocation4], 256  }
0x2dd6   :  { %4489 = vsyncadd [#allocation4], 4294967040 }
0x2dd7   :  { %4490 = dma.done.wait [#allocation12], 256  }
0x2dd8   :  { %4491 = vsyncadd [#allocation12], 4294967040 }
0x2dd9   :  { %3898 = vsyncpa [#allocation3], 1 }
0x2dda   :  { %3899 = vsyncpa [#allocation6], 1 }
0x2ddb   :  { %3900 = vsyncpa [#allocation9], 1 }
0x2ddc   :  { %3901 = vsyncpa [#allocation4], 1 }
0x2ddd   :  { %3902 = vsyncpa [#allocation12], 1 }

</bundles_post_ra>
